<compile_context>
chip_gen: v7x
topology: tpu7x:2x2x1
jax: 0.10.0
libtpu: 0.0.40
codegen_flags: <defaults>
</compile_context>

<pallas_src>
import functools

import numpy as np

import jax
import jax.numpy as jnp
from jax.experimental import pallas as pl
from jax.experimental.pallas import tpu as pltpu


# ---------------------------------------------------------------------------
# Pallas kernels
# ---------------------------------------------------------------------------
def _stem_kernel(x_ref, w_ref, b_ref, o_ref):
    # 1x1 conv (Cin=1) + relu: pure VPU broadcast.
    # x: (tm, 1) f32, w: (1, C) f32, b: (1, C) f32 -> o: (tm, C) f32
    o_ref[...] = jnp.maximum(x_ref[...] * w_ref[...] + b_ref[...], 0.0)


def _gemm_kernel(*refs, act, has_skip):
    # Fused A @ W + bias (+relu) (+skip).  A/W bf16, acc f32.
    if has_skip:
        a_ref, w_ref, b_ref, skip_ref, o_ref = refs
    else:
        a_ref, w_ref, b_ref, o_ref = refs
        skip_ref = None
    acc = jnp.dot(a_ref[...], w_ref[...], preferred_element_type=jnp.float32)
    acc = acc + b_ref[...]
    if act == "relu":
        acc = jnp.maximum(acc, 0.0)
    if has_skip:
        acc = acc + skip_ref[...]          # reference: x = relu(dec(x)); x += skip
    o_ref[...] = acc


def _enc2_attention_kernel(a_ref, w_ref, b_ref, w1_ref, w2_ref,
                           samm_ref, samx_ref, o_ref):
    # enc2 (3x3/s2 conv as one GEMM) + ChannelAttention + SpatialAttention.
    # a: (N*HW, K) bf16, w: (K, C) bf16, b: (1, C) f32,
    # w1: (C, Cr) bf16, w2: (Cr, C) bf16, samm/samx: (HW, HW) bf16,
    # o: (N, HW, C) f32
    n, hw, c = o_ref.shape

    xb = jnp.dot(a_ref[...], w_ref[...], preferred_element_type=jnp.float32)
    xb = jnp.maximum(xb + b_ref[...], 0.0)                 # (N*HW, C)
    x = xb.reshape(n, hw, c)                               # (N, HW, C)

    # --- channel attention (batched over N; fc2 factored out of the sum) ---
    avg_p = jnp.mean(x, axis=1)                            # (N, C)
    max_p = jnp.max(x, axis=1)                             # (N, C)
    w1 = w1_ref[...]
    h = (jnp.maximum(jnp.dot(avg_p.astype(jnp.bfloat16), w1,
                             preferred_element_type=jnp.float32), 0.0)
         + jnp.maximum(jnp.dot(max_p.astype(jnp.bfloat16), w1,
                               preferred_element_type=jnp.float32), 0.0))
    ca = jax.nn.sigmoid(jnp.dot(h.astype(jnp.bfloat16), w2_ref[...],
                                preferred_element_type=jnp.float32))  # (N, C)
    x1 = x * ca[:, None, :]

    # --- spatial attention: 3x3 conv as precomputed (HW,HW) matrices,
    #     applied in row-vector form, batched over N ---
    mean_c = jnp.mean(x1, axis=2)                          # (N, HW)
    max_c = jnp.max(x1, axis=2)                            # (N, HW)
    logit = (jnp.dot(mean_c.astype(jnp.bfloat16), samm_ref[...],
                     preferred_element_type=jnp.float32)
             + jnp.dot(max_c.astype(jnp.bfloat16), samx_ref[...],
                       preferred_element_type=jnp.float32))
    sa = jax.nn.sigmoid(logit)                             # (N, HW)
    o_ref[...] = x1 * sa[:, :, None]
    # TODO(synk): AttentionInfo(1, spAtt, chAtt) is a logging side-effect hook
    # in the reference module; it has no Pallas equivalent and is a no-op here.


# ---------------------------------------------------------------------------
# pallas_call wrappers
# ---------------------------------------------------------------------------
def _stem(x_flat, w, b):
    m = x_flat.shape[0]
    c = w.shape[1]
    gm = 2 if m % 16 == 0 else 1          # 2-way M split feeds both TCs on v7x
    tm = m // gm
    return pl.pallas_call(
        _stem_kernel,
        out_shape=jax.ShapeDtypeStruct((m, c), jnp.float32),
        grid=(gm,),
        in_specs=[
            pl.BlockSpec((tm, 1), lambda i: (i, 0)),
            pl.BlockSpec((1, c), lambda i: (0, 0)),
            pl.BlockSpec((1, c), lambda i: (0, 0)),
        ],
        out_specs=pl.BlockSpec((tm, c), lambda i: (i, 0)),
        compiler_params=pltpu.CompilerParams(
            dimension_semantics=("parallel",)),
    )(x_flat, w, b)


def _gemm(a, w, b, *, act="none", skip=None):
    # a: (M, K) bf16, w: (K, N) bf16, b: (1, nb) f32, skip: (M, N) f32 or None
    m, k = a.shape
    n_out = w.shape[1]
    nb = b.shape[1]
    # Only split M (for v7x's 2 TCs) when M is big enough to be worth an
    # extra grid step on single-TC v5e/v6e.
    gm = 2 if (m >= 64 and m % 16 == 0) else 1
    tm = m // gm
    kernel = functools.partial(_gemm_kernel, act=act, has_skip=skip is not None)
    in_specs = [
        pl.BlockSpec((tm, k), lambda i: (i, 0)),
        pl.BlockSpec((k, n_out), lambda i: (0, 0)),
        pl.BlockSpec((1, nb), lambda i: (0, 0)),
    ]
    args = [a, w, b]
    if skip is not None:
        in_specs.append(pl.BlockSpec((tm, n_out), lambda i: (i, 0)))
        args.append(skip)
    return pl.pallas_call(
        kernel,
        out_shape=jax.ShapeDtypeStruct((m, n_out), jnp.float32),
        grid=(gm,),
        in_specs=in_specs,
        out_specs=pl.BlockSpec((tm, n_out), lambda i: (i, 0)),
        compiler_params=pltpu.CompilerParams(
            dimension_semantics=("parallel",)),
    )(*args)


def _enc2_attention(taps, w, b, w1, w2, samm, samx, n, hw):
    k = taps.shape[1]
    c = w.shape[1]
    cr = w1.shape[1]
    return pl.pallas_call(
        _enc2_attention_kernel,
        out_shape=jax.ShapeDtypeStruct((n, hw, c), jnp.float32),
        grid=(1,),
        in_specs=[
            pl.BlockSpec((n * hw, k), lambda i: (0, 0)),
            pl.BlockSpec((k, c), lambda i: (0, 0)),
            pl.BlockSpec((1, c), lambda i: (0, 0)),
            pl.BlockSpec((c, cr), lambda i: (0, 0)),
            pl.BlockSpec((cr, c), lambda i: (0, 0)),
            pl.BlockSpec((hw, hw), lambda i: (0, 0)),
            pl.BlockSpec((hw, hw), lambda i: (0, 0)),
        ],
        out_specs=pl.BlockSpec((n, hw, c), lambda i: (0, 0, 0)),
    )(taps, w, b, w1, w2, samm, samx)


# ---------------------------------------------------------------------------
# Host-side glue (thin, layout-only ops on tiny tensors)
# ---------------------------------------------------------------------------
_PAD1 = ((0, 0), (1, 1), (1, 1), (0, 0))


def _extract_taps_k(xpad, k, stride, ho, wo, *, transpose=False):
    """xpad (N,Hp,Wp,C) f32 -> (N*ho*wo, k*k*C) bf16 tap matrix (taps in K)."""
    c = xpad.shape[-1]
    taps = []
    for i in range(k):
        for j in range(k):
            t = xpad[:, i:i + stride * (ho - 1) + 1:stride,
                     j:j + stride * (wo - 1) + 1:stride, :]
            taps.append(t.reshape(-1, c))
    a = jnp.concatenate(taps, axis=-1).astype(jnp.bfloat16)
    return a.T if transpose else a


def _phase_fold(s):
    """(N, 2h, 2w, C) -> (N*h*w, 4*C); col block p=a*2+b holds (2h+a, 2w+b)."""
    n, h2, w2, c = s.shape
    h, w = h2 // 2, w2 // 2
    return (s.reshape(n, h, 2, w, 2, c).transpose(0, 1, 3, 2, 4, 5)
            .reshape(n * h * w, 4 * c))


def _phase_unfold(o, n, h, w, c):
    """(N*h*w, 4*C) phase-folded output -> (N, 2h, 2w, C) interleaved."""
    return (o.reshape(n, h, w, 2, 2, c).transpose(0, 1, 3, 2, 4, 5)
            .reshape(n, 2 * h, 2 * w, c))


# ---------------------------------------------------------------------------
# One-time parameter packing (hoisted out of the forward)
# ---------------------------------------------------------------------------
def _pack_conv(w):
    """Conv2d weight (Cout, Cin, kh, kw) -> (kh*kw*Cin, Cout) bf16 (taps in K)."""
    cout, cin, kh, kw = w.shape
    return (jnp.transpose(w, (2, 3, 1, 0)).reshape(kh * kw * cin, cout)
            .astype(jnp.bfloat16))


def _pack_deconv(w):
    """ConvTranspose2d(k=4,s=2,p=1) weight (Cin, Cout, 4, 4) ->
    (9*Cin, 4*Cout) bf16: rows = 3x3 taps x Cin, column block p=a*2+b = phase."""
    cin, cout = w.shape[0], w.shape[1]
    zero = jnp.zeros((cin, cout), w.dtype)
    rows = []
    for i in range(3):
        for j in range(3):
            cols = []
            for a in range(2):
                for b in range(2):
                    if a <= i <= a + 1 and b <= j <= b + 1:
                        cols.append(w[:, :, 3 - 2 * i + a, 3 - 2 * j + b])
                    else:
                        cols.append(zero)
            rows.append(jnp.concatenate(cols, axis=1))
    return jnp.concatenate(rows, axis=0).astype(jnp.bfloat16)


def _sa_matrices(w_sa, h, w):
    """SpatialAttention 3x3 conv (pad=1, 2 in-channels) as two transposed
    (HW, HW) matrices (row-vector form), bf16."""
    hw = h * w
    rows, cols, widx = [], [], []
    for hh in range(h):
        for ww in range(w):
            for dh in (-1, 0, 1):
                for dw in (-1, 0, 1):
                    hi, wi = hh + dh, ww + dw
                    if 0 <= hi < h and 0 <= wi < w:
                        rows.append(hh * w + ww)
                        cols.append(hi * w + wi)
                        widx.append((dh + 1) * 3 + (dw + 1))
    rows = np.asarray(rows)
    cols = np.asarray(cols)
    widx = np.asarray(widx)
    wm = w_sa[0, 0].reshape(9)[widx].astype(jnp.float32)
    wx = w_sa[0, 1].reshape(9)[widx].astype(jnp.float32)
    mm = jnp.zeros((hw, hw), jnp.float32).at[rows, cols].add(wm)
    mx = jnp.zeros((hw, hw), jnp.float32).at[rows, cols].add(wx)
    return mm.T.astype(jnp.bfloat16), mx.T.astype(jnp.bfloat16)


def prepare_params(p, input_hw=(16, 16)):
    h2, w2 = input_hw[0] // 4, input_hw[1] // 4      # bottleneck spatial size
    sa_mm_t, sa_mx_t = _sa_matrices(p["sa_w"], h2, w2)

    def rep4(b):  # bias repeated for the 4 phase column blocks
        return jnp.tile(b.reshape(1, -1), (1, 4)).astype(jnp.float32)

    return {
        "stem_w": p["inputLayer_w"].reshape(1, -1).astype(jnp.float32),   # (1,32)
        "stem_b": p["inputLayer_b"].reshape(1, -1).astype(jnp.float32),
        "enc1_w": _pack_conv(p["enc1_w"]),                                # (288,64)
        "enc1_b": p["enc1_b"].reshape(1, -1).astype(jnp.float32),
        "enc2_w": _pack_conv(p["enc2_w"]),                                # (576,128)
        "enc2_b": p["enc2_b"].reshape(1, -1).astype(jnp.float32),
        "ca_w1": p["ca_fc1_w"].reshape(p["ca_fc1_w"].shape[0], -1).T
                 .astype(jnp.bfloat16),                                   # (128,16)
        "ca_w2": p["ca_fc2_w"].reshape(p["ca_fc2_w"].shape[0], -1).T
                 .astype(jnp.bfloat16),                                   # (16,128)
        "sa_mm_t": sa_mm_t,
        "sa_mx_t": sa_mx_t,
        "dec1_w": _pack_deconv(p["dec1_w"]),                              # (1152,256)
        "dec1_b": rep4(p["dec1_b"]),
        "dec2_w": _pack_deconv(p["dec2_w"]),                              # (576,128)
        "dec2_b": rep4(p["dec2_b"]),
        "out_wt": _pack_deconv(p["out_w"]).T,                             # (4,288)
        "out_b": p["out_b"].reshape(1, 1).astype(jnp.float32),
    }


# ---------------------------------------------------------------------------
# Forward pass (6 pallas_calls total)
# ---------------------------------------------------------------------------
def autoencoder_forward(x_nchw, pp):
    n, _, h0, w0 = x_nchw.shape
    h1, w1 = h0 // 2, w0 // 2
    h2, w2 = h1 // 2, w1 // 2

    # inputLayer: 1x1 conv (Cin=1) + relu.  C==1, so NCHW flattens like NHWC.
    skip1 = _stem(x_nchw.reshape(n * h0 * w0, 1).astype(jnp.float32),
                  pp["stem_w"], pp["stem_b"])
    skip1 = skip1.reshape(n, h0, w0, 32)

    # enc1: 3x3 stride-2 conv + relu (taps folded into K -> one MXU pass)
    taps = _extract_taps_k(jnp.pad(skip1, _PAD1), 3, 2, h1, w1)
    skip2 = _gemm(taps, pp["enc1_w"], pp["enc1_b"], act="relu")
    skip2 = skip2.reshape(n, h1, w1, 64)

    # enc2 + channel attention + spatial attention: one fused kernel
    taps = _extract_taps_k(jnp.pad(skip2, _PAD1), 3, 2, h2, w2)
    xb = _enc2_attention(taps, pp["enc2_w"], pp["enc2_b"], pp["ca_w1"],
                         pp["ca_w2"], pp["sa_mm_t"], pp["sa_mx_t"],
                         n, h2 * w2)
    xb = xb.reshape(n, h2, w2, 128)

    # dec1: ConvTranspose(4,2,1) + relu + skip2; 4 output phases folded into N
    taps = _extract_taps_k(jnp.pad(xb, _PAD1), 3, 1, h2, w2)
    d1 = _gemm(taps, pp["dec1_w"], pp["dec1_b"], act="relu",
               skip=_phase_fold(skip2))
    d1 = _phase_unfold(d1, n, h2, w2, 64)                  # (n, h1, w1, 64)

    # dec2: ConvTranspose(4,2,1) + relu + skip1
    taps = _extract_taps_k(jnp.pad(d1, _PAD1), 3, 1, h1, w1)
    d2 = _gemm(taps, pp["dec2_w"], pp["dec2_b"], act="relu",
               skip=_phase_fold(skip1))
    d2 = _phase_unfold(d2, n, h1, w1, 32)                  # (n, h0, w0, 32)

    # outputLayer: ConvTranspose(4,2,1), no act/skip; computed transposed so
    # the kernel's output block is lane-dense (4, M) instead of (M, 1)/(M, 4).
    taps_t = _extract_taps_k(jnp.pad(d2, _PAD1), 3, 1, h0, w0, transpose=True)
    o = _gemm(pp["out_wt"], taps_t, pp["out_b"], act="none")   # (4, n*h0*w0)
    o = (o.reshape(2, 2, n, h0, w0).transpose(2, 3, 0, 4, 1)
         .reshape(n, 2 * h0, 2 * w0))
    return o[:, None, :, :]                                 # NCHW (n,1,2h0,2w0)


# ---------------------------------------------------------------------------
# Deterministic parameter initialization (shapes follow nn.Module.__init__).
# ---------------------------------------------------------------------------
def init_params(key):
    def w(k, shape, scale=0.05):
        return scale * jax.random.normal(k, shape, dtype=jnp.float32)

    keys = iter(jax.random.split(key, 32))
    return {
        "inputLayer_w": w(next(keys), (32, 1, 1, 1)),
        "inputLayer_b": w(next(keys), (32,)),
        "enc1_w": w(next(keys), (64, 32, 3, 3)),
        "enc1_b": w(next(keys), (64,)),
        "enc2_w": w(next(keys), (128, 64, 3, 3)),
        "enc2_b": w(next(keys), (128,)),
        "ca_fc1_w": w(next(keys), (16, 128, 1, 1)),   # ChannelAttention(128, 8) fc1
        "ca_fc2_w": w(next(keys), (128, 16, 1, 1)),   # ChannelAttention fc2
        "sa_w": w(next(keys), (1, 2, 3, 3)),          # SpatialAttention conv (k=3)
        "dec1_w": w(next(keys), (128, 64, 4, 4)),     # ConvTranspose2d(in,out,4,4)
        "dec1_b": w(next(keys), (64,)),
        "dec2_w": w(next(keys), (64, 32, 4, 4)),
        "dec2_b": w(next(keys), (32,)),
        "out_w": w(next(keys), (32, 1, 4, 4)),
        "out_b": w(next(keys), (1,)),
    }


if __name__ == "__main__":
    key = jax.random.PRNGKey(0)
    pkey, xkey = jax.random.split(key)
    params = init_params(pkey)
    packed = prepare_params(params, input_hw=(16, 16))   # done once, not per step

    # batch=2, 1 input channel (inputLayer expects Cin=1), 16x16 spatial
    x = jax.random.normal(xkey, (2, 1, 16, 16), dtype=jnp.float32)

    fwd = jax.jit(autoencoder_forward)
    out = jax.block_until_ready(fwd(x, packed))

    # final ConvTranspose2d(stride=2) upsamples once more than the encoder downsamples
    assert out.shape == (2, 1, 32, 32), out.shape
    assert bool(jnp.all(jnp.isfinite(out)))
    print("KERNEL_OK")
</pallas_src>

<mosaic_0001>
module attributes {stable_mosaic.version = 11 : i64} {
  func.func @_stem_kernel(%arg0: i32, %arg1: memref<256x1xf32, #tpu.memory_space<vmem>>, %arg2: memref<1x32xf32, #tpu.memory_space<vmem>>, %arg3: memref<1x32xf32, #tpu.memory_space<vmem>>, %arg4: memref<256x32xf32, #tpu.memory_space<vmem>>) attributes {dimension_semantics = [#tpu.dimension_semantics<parallel>], iteration_bounds = array<i64: 2>, scalar_prefetch = 0 : i64, scratch_operands = 0 : i64, tpu.core_type = #tpu.core_type<tc>, window_params = [{transform_indices = @transform_0, window_bounds = array<i64: 256, 1>}, {pipeline_mode = #tpu.pipeline_mode<synchronous>, transform_indices = @transform_1, window_bounds = array<i64: 1, 32>}, {pipeline_mode = #tpu.pipeline_mode<synchronous>, transform_indices = @transform_2, window_bounds = array<i64: 1, 32>}, {transform_indices = @transform_3, window_bounds = array<i64: 256, 32>}]} {
    %c0 = arith.constant 0 : index
    %c0_0 = arith.constant 0 : index
    %0 = vector.load %arg1[%c0, %c0_0] : memref<256x1xf32, #tpu.memory_space<vmem>>, vector<256x1xf32>
    %c0_1 = arith.constant 0 : index
    %c0_2 = arith.constant 0 : index
    %1 = vector.load %arg2[%c0_1, %c0_2] : memref<1x32xf32, #tpu.memory_space<vmem>>, vector<1x32xf32>
    %2 = vector.broadcast %0 : vector<256x1xf32> to vector<256x32xf32>
    %3 = vector.broadcast %1 : vector<1x32xf32> to vector<256x32xf32>
    %4 = arith.mulf %2, %3 : vector<256x32xf32>
    %c0_3 = arith.constant 0 : index
    %c0_4 = arith.constant 0 : index
    %5 = vector.load %arg3[%c0_3, %c0_4] : memref<1x32xf32, #tpu.memory_space<vmem>>, vector<1x32xf32>
    %6 = vector.broadcast %5 : vector<1x32xf32> to vector<256x32xf32>
    %7 = arith.addf %4, %6 : vector<256x32xf32>
    %cst = arith.constant 0.000000e+00 : f32
    %8 = vector.broadcast %cst : f32 to vector<256x32xf32>
    %9 = arith.maximumf %7, %8 : vector<256x32xf32>
    %c0_5 = arith.constant 0 : index
    %c0_6 = arith.constant 0 : index
    %10 = vector.load %arg4[%c0_5, %c0_6] : memref<256x32xf32, #tpu.memory_space<vmem>>, vector<256x32xf32>
    tpu.vector_store %arg4[%c0_5, %c0_6], %9 {strides = array<i32>} : memref<256x32xf32, #tpu.memory_space<vmem>>, vector<256x32xf32>,
    return
  }
  func.func @transform_0(%arg0: i32) -> (i32, i32) {
    %c0_i32 = arith.constant 0 : i32
    %c0_i32_0 = arith.constant 0 : i32
    return %arg0, %c0_i32 : i32, i32
  }
  func.func @transform_1(%arg0: i32) -> (i32, i32) {
    %c0_i32 = arith.constant 0 : i32
    %c0_i32_0 = arith.constant 0 : i32
    %c0_i32_1 = arith.constant 0 : i32
    return %c0_i32, %c0_i32_0 : i32, i32
  }
  func.func @transform_2(%arg0: i32) -> (i32, i32) {
    %c0_i32 = arith.constant 0 : i32
    %c0_i32_0 = arith.constant 0 : i32
    %c0_i32_1 = arith.constant 0 : i32
    return %c0_i32, %c0_i32_0 : i32, i32
  }
  func.func @transform_3(%arg0: i32) -> (i32, i32) {
    %c0_i32 = arith.constant 0 : i32
    %c0_i32_0 = arith.constant 0 : i32
    return %arg0, %c0_i32 : i32, i32
  }
}

module attributes {stable_mosaic.version = 11 : i64} {
  func.func @_gemm_kernel(%arg0: i32, %arg1: memref<64x288xbf16, #tpu.memory_space<vmem>>, %arg2: memref<288x64xbf16, #tpu.memory_space<vmem>>, %arg3: memref<1x64xf32, #tpu.memory_space<vmem>>, %arg4: memref<64x64xf32, #tpu.memory_space<vmem>>) attributes {dimension_semantics = [#tpu.dimension_semantics<parallel>], iteration_bounds = array<i64: 2>, scalar_prefetch = 0 : i64, scratch_operands = 0 : i64, tpu.core_type = #tpu.core_type<tc>, window_params = [{transform_indices = @transform_0, window_bounds = array<i64: 64, 288>}, {pipeline_mode = #tpu.pipeline_mode<synchronous>, transform_indices = @transform_1, window_bounds = array<i64: 288, 64>}, {pipeline_mode = #tpu.pipeline_mode<synchronous>, transform_indices = @transform_2, window_bounds = array<i64: 1, 64>}, {transform_indices = @transform_3, window_bounds = array<i64: 64, 64>}]} {
    %c0 = arith.constant 0 : index
    %c0_0 = arith.constant 0 : index
    %0 = vector.load %arg1[%c0, %c0_0] : memref<64x288xbf16, #tpu.memory_space<vmem>>, vector<64x288xbf16>
    %c0_1 = arith.constant 0 : index
    %c0_2 = arith.constant 0 : index
    %1 = vector.load %arg2[%c0_1, %c0_2] : memref<288x64xbf16, #tpu.memory_space<vmem>>, vector<288x64xbf16>
    %cst = arith.constant dense<0.000000e+00> : vector<64x64xf32>
    %2 = tpu.matmul %0, %1, %cst {dimension_numbers = #tpu.dot_dimension_numbers<[1], [0], [0], [1], [0, 0, 1, 1], [], []>} : vector<64x288xbf16>, vector<288x64xbf16>, vector<64x64xf32> -> vector<64x64xf32>
    %c0_3 = arith.constant 0 : index
    %c0_4 = arith.constant 0 : index
    %3 = vector.load %arg3[%c0_3, %c0_4] : memref<1x64xf32, #tpu.memory_space<vmem>>, vector<1x64xf32>
    %4 = vector.broadcast %3 : vector<1x64xf32> to vector<64x64xf32>
    %5 = arith.addf %2, %4 : vector<64x64xf32>
    %cst_5 = arith.constant 0.000000e+00 : f32
    %6 = vector.broadcast %cst_5 : f32 to vector<64x64xf32>
    %7 = arith.maximumf %5, %6 : vector<64x64xf32>
    %c0_6 = arith.constant 0 : index
    %c0_7 = arith.constant 0 : index
    %8 = vector.load %arg4[%c0_6, %c0_7] : memref<64x64xf32, #tpu.memory_space<vmem>>, vector<64x64xf32>
    tpu.vector_store %arg4[%c0_6, %c0_7], %7 {strides = array<i32>} : memref<64x64xf32, #tpu.memory_space<vmem>>, vector<64x64xf32>,
    return
  }
  func.func @transform_0(%arg0: i32) -> (i32, i32) {
    %c0_i32 = arith.constant 0 : i32
    %c0_i32_0 = arith.constant 0 : i32
    return %arg0, %c0_i32 : i32, i32
  }
  func.func @transform_1(%arg0: i32) -> (i32, i32) {
    %c0_i32 = arith.constant 0 : i32
    %c0_i32_0 = arith.constant 0 : i32
    %c0_i32_1 = arith.constant 0 : i32
    return %c0_i32, %c0_i32_0 : i32, i32
  }
  func.func @transform_2(%arg0: i32) -> (i32, i32) {
    %c0_i32 = arith.constant 0 : i32
    %c0_i32_0 = arith.constant 0 : i32
    %c0_i32_1 = arith.constant 0 : i32
    return %c0_i32, %c0_i32_0 : i32, i32
  }
  func.func @transform_3(%arg0: i32) -> (i32, i32) {
    %c0_i32 = arith.constant 0 : i32
    %c0_i32_0 = arith.constant 0 : i32
    return %arg0, %c0_i32 : i32, i32
  }
}

module attributes {stable_mosaic.version = 11 : i64} {
  func.func @_enc2_attention_kernel(%arg0: i32, %arg1: memref<32x576xbf16, #tpu.memory_space<vmem>>, %arg2: memref<576x128xbf16, #tpu.memory_space<vmem>>, %arg3: memref<1x128xf32, #tpu.memory_space<vmem>>, %arg4: memref<128x16xbf16, #tpu.memory_space<vmem>>, %arg5: memref<16x128xbf16, #tpu.memory_space<vmem>>, %arg6: memref<16x16xbf16, #tpu.memory_space<vmem>>, %arg7: memref<16x16xbf16, #tpu.memory_space<vmem>>, %arg8: memref<2x16x128xf32, #tpu.memory_space<vmem>>) attributes {dimension_semantics = [#tpu.dimension_semantics<arbitrary>], iteration_bounds = array<i64: 1>, scalar_prefetch = 0 : i64, scratch_operands = 0 : i64, tpu.core_type = #tpu.core_type<tc>, window_params = [{pipeline_mode = #tpu.pipeline_mode<synchronous>, transform_indices = @transform_0, window_bounds = array<i64: 32, 576>}, {pipeline_mode = #tpu.pipeline_mode<synchronous>, transform_indices = @transform_1, window_bounds = array<i64: 576, 128>}, {pipeline_mode = #tpu.pipeline_mode<synchronous>, transform_indices = @transform_2, window_bounds = array<i64: 1, 128>}, {pipeline_mode = #tpu.pipeline_mode<synchronous>, transform_indices = @transform_3, window_bounds = array<i64: 128, 16>}, {pipeline_mode = #tpu.pipeline_mode<synchronous>, transform_indices = @transform_4, window_bounds = array<i64: 16, 128>}, {pipeline_mode = #tpu.pipeline_mode<synchronous>, transform_indices = @transform_5, window_bounds = array<i64: 16, 16>}, {pipeline_mode = #tpu.pipeline_mode<synchronous>, transform_indices = @transform_6, window_bounds = array<i64: 16, 16>}, {pipeline_mode = #tpu.pipeline_mode<synchronous>, transform_indices = @transform_7, window_bounds = array<i64: 2, 16, 128>}]} {
    %c0 = arith.constant 0 : index
    %c0_0 = arith.constant 0 : index
    %0 = vector.load %arg1[%c0, %c0_0] : memref<32x576xbf16, #tpu.memory_space<vmem>>, vector<32x576xbf16>
    %c0_1 = arith.constant 0 : index
    %c0_2 = arith.constant 0 : index
    %1 = vector.load %arg2[%c0_1, %c0_2] : memref<576x128xbf16, #tpu.memory_space<vmem>>, vector<576x128xbf16>
    %cst = arith.constant dense<0.000000e+00> : vector<32x128xf32>
    %2 = tpu.matmul %0, %1, %cst {dimension_numbers = #tpu.dot_dimension_numbers<[1], [0], [0], [1], [0, 0, 1, 1], [], []>} : vector<32x576xbf16>, vector<576x128xbf16>, vector<32x128xf32> -> vector<32x128xf32>
    %c0_3 = arith.constant 0 : index
    %c0_4 = arith.constant 0 : index
    %3 = vector.load %arg3[%c0_3, %c0_4] : memref<1x128xf32, #tpu.memory_space<vmem>>, vector<1x128xf32>
    %4 = vector.broadcast %3 : vector<1x128xf32> to vector<32x128xf32>
    %5 = arith.addf %2, %4 : vector<32x128xf32>
    %cst_5 = arith.constant 0.000000e+00 : f32
    %6 = vector.broadcast %cst_5 : f32 to vector<32x128xf32>
    %7 = arith.maximumf %5, %6 : vector<32x128xf32>
    %8 = vector.shape_cast %7 : vector<32x128xf32> to vector<2x16x128xf32>
    %cst_6 = arith.constant dense<0.000000e+00> : vector<2x128xf32>
    %9 = vector.multi_reduction <add>, %8, %cst_6 [1] : vector<2x16x128xf32> to vector<2x128xf32>
    %cst_7 = arith.constant 1.600000e+01 : f32
    %10 = vector.broadcast %cst_7 : f32 to vector<2x128xf32>
    %11 = arith.divf %9, %10 : vector<2x128xf32>
    %cst_8 = arith.constant dense<0xFF800000> : vector<2x128xf32>
    %12 = vector.multi_reduction <maximumf>, %8, %cst_8 [1] : vector<2x16x128xf32> to vector<2x128xf32>
    %c0_9 = arith.constant 0 : index
    %c0_10 = arith.constant 0 : index
    %13 = vector.load %arg4[%c0_9, %c0_10] : memref<128x16xbf16, #tpu.memory_space<vmem>>, vector<128x16xbf16>
    %14 = arith.truncf %11 : vector<2x128xf32> to vector<2x128xbf16>
    %cst_11 = arith.constant dense<0.000000e+00> : vector<2x16xf32>
    %15 = tpu.matmul %14, %13, %cst_11 {dimension_numbers = #tpu.dot_dimension_numbers<[1], [0], [0], [1], [0, 0, 1, 1], [], []>} : vector<2x128xbf16>, vector<128x16xbf16>, vector<2x16xf32> -> vector<2x16xf32>
    %cst_12 = arith.constant 0.000000e+00 : f32
    %16 = vector.broadcast %cst_12 : f32 to vector<2x16xf32>
    %17 = arith.maximumf %15, %16 : vector<2x16xf32>
    %18 = arith.truncf %12 : vector<2x128xf32> to vector<2x128xbf16>
    %cst_13 = arith.constant dense<0.000000e+00> : vector<2x16xf32>
    %19 = tpu.matmul %18, %13, %cst_13 {dimension_numbers = #tpu.dot_dimension_numbers<[1], [0], [0], [1], [0, 0, 1, 1], [], []>} : vector<2x128xbf16>, vector<128x16xbf16>, vector<2x16xf32> -> vector<2x16xf32>
    %cst_14 = arith.constant 0.000000e+00 : f32
    %20 = vector.broadcast %cst_14 : f32 to vector<2x16xf32>
    %21 = arith.maximumf %19, %20 : vector<2x16xf32>
    %22 = arith.addf %17, %21 : vector<2x16xf32>
    %23 = arith.truncf %22 : vector<2x16xf32> to vector<2x16xbf16>
    %c0_15 = arith.constant 0 : index
    %c0_16 = arith.constant 0 : index
    %24 = vector.load %arg5[%c0_15, %c0_16] : memref<16x128xbf16, #tpu.memory_space<vmem>>, vector<16x128xbf16>
    %cst_17 = arith.constant dense<0.000000e+00> : vector<2x128xf32>
    %25 = tpu.matmul %23, %24, %cst_17 {dimension_numbers = #tpu.dot_dimension_numbers<[1], [0], [0], [1], [0, 0, 1, 1], [], []>} : vector<2x16xbf16>, vector<16x128xbf16>, vector<2x128xf32> -> vector<2x128xf32>
    %26 = arith.negf %25 : vector<2x128xf32>
    %27 = math.exp %26 : vector<2x128xf32>
    %cst_18 = arith.constant 1.000000e+00 : f32
    %28 = vector.broadcast %cst_18 : f32 to vector<2x128xf32>
    %29 = arith.addf %28, %27 : vector<2x128xf32>
    %30 = arith.divf %28, %29 : vector<2x128xf32>
    %31 = vector.shape_cast %30 : vector<2x128xf32> to vector<2x1x128xf32>
    %32 = vector.broadcast %31 : vector<2x1x128xf32> to vector<2x16x128xf32>
    %33 = arith.mulf %8, %32 : vector<2x16x128xf32>
    %cst_19 = arith.constant dense<0.000000e+00> : vector<2x16xf32>
    %34 = vector.multi_reduction <add>, %33, %cst_19 [2] : vector<2x16x128xf32> to vector<2x16xf32>
    %cst_20 = arith.constant 1.280000e+02 : f32
    %35 = vector.broadcast %cst_20 : f32 to vector<2x16xf32>
    %36 = arith.divf %34, %35 : vector<2x16xf32>
    %cst_21 = arith.constant dense<0xFF800000> : vector<2x16xf32>
    %37 = vector.multi_reduction <maximumf>, %33, %cst_21 [2] : vector<2x16x128xf32> to vector<2x16xf32>
    %38 = arith.truncf %36 : vector<2x16xf32> to vector<2x16xbf16>
    %c0_22 = arith.constant 0 : index
    %c0_23 = arith.constant 0 : index
    %39 = vector.load %arg6[%c0_22, %c0_23] : memref<16x16xbf16, #tpu.memory_space<vmem>>, vector<16x16xbf16>
    %cst_24 = arith.constant dense<0.000000e+00> : vector<2x16xf32>
    %40 = tpu.matmul %38, %39, %cst_24 {dimension_numbers = #tpu.dot_dimension_numbers<[1], [0], [0], [1], [0, 0, 1, 1], [], []>} : vector<2x16xbf16>, vector<16x16xbf16>, vector<2x16xf32> -> vector<2x16xf32>
    %41 = arith.truncf %37 : vector<2x16xf32> to vector<2x16xbf16>
    %c0_25 = arith.constant 0 : index
    %c0_26 = arith.constant 0 : index
    %42 = vector.load %arg7[%c0_25, %c0_26] : memref<16x16xbf16, #tpu.memory_space<vmem>>, vector<16x16xbf16>
    %cst_27 = arith.constant dense<0.000000e+00> : vector<2x16xf32>
    %43 = tpu.matmul %41, %42, %cst_27 {dimension_numbers = #tpu.dot_dimension_numbers<[1], [0], [0], [1], [0, 0, 1, 1], [], []>} : vector<2x16xbf16>, vector<16x16xbf16>, vector<2x16xf32> -> vector<2x16xf32>
    %44 = arith.addf %40, %43 : vector<2x16xf32>
    %45 = arith.negf %44 : vector<2x16xf32>
    %46 = math.exp %45 : vector<2x16xf32>
    %cst_28 = arith.constant 1.000000e+00 : f32
    %47 = vector.broadcast %cst_28 : f32 to vector<2x16xf32>
    %48 = arith.addf %47, %46 : vector<2x16xf32>
    %49 = arith.divf %47, %48 : vector<2x16xf32>
    %50 = vector.shape_cast %49 : vector<2x16xf32> to vector<2x16x1xf32>
    %51 = vector.broadcast %50 : vector<2x16x1xf32> to vector<2x16x128xf32>
    %52 = arith.mulf %33, %51 : vector<2x16x128xf32>
    %c0_29 = arith.constant 0 : index
    %c0_30 = arith.constant 0 : index
    %c0_31 = arith.constant 0 : index
    %53 = vector.load %arg8[%c0_29, %c0_30, %c0_31] : memref<2x16x128xf32, #tpu.memory_space<vmem>>, vector<2x16x128xf32>
    tpu.vector_store %arg8[%c0_29, %c0_30, %c0_31], %52 {strides = array<i32>} : memref<2x16x128xf32, #tpu.memory_space<vmem>>, vector<2x16x128xf32>,
    return
  }
  func.func @transform_0(%arg0: i32) -> (i32, i32) {
    %c0_i32 = arith.constant 0 : i32
    %c0_i32_0 = arith.constant 0 : i32
    %c0_i32_1 = arith.constant 0 : i32
    return %c0_i32, %c0_i32_0 : i32, i32
  }
  func.func @transform_1(%arg0: i32) -> (i32, i32) {
    %c0_i32 = arith.constant 0 : i32
    %c0_i32_0 = arith.constant 0 : i32
    %c0_i32_1 = arith.constant 0 : i32
    return %c0_i32, %c0_i32_0 : i32, i32
  }
  func.func @transform_2(%arg0: i32) -> (i32, i32) {
    %c0_i32 = arith.constant 0 : i32
    %c0_i32_0 = arith.constant 0 : i32
    %c0_i32_1 = arith.constant 0 : i32
    return %c0_i32, %c0_i32_0 : i32, i32
  }
  func.func @transform_3(%arg0: i32) -> (i32, i32) {
    %c0_i32 = arith.constant 0 : i32
    %c0_i32_0 = arith.constant 0 : i32
    %c0_i32_1 = arith.constant 0 : i32
    return %c0_i32, %c0_i32_0 : i32, i32
  }
  func.func @transform_4(%arg0: i32) -> (i32, i32) {
    %c0_i32 = arith.constant 0 : i32
    %c0_i32_0 = arith.constant 0 : i32
    %c0_i32_1 = arith.constant 0 : i32
    return %c0_i32, %c0_i32_0 : i32, i32
  }
  func.func @transform_5(%arg0: i32) -> (i32, i32) {
    %c0_i32 = arith.constant 0 : i32
    %c0_i32_0 = arith.constant 0 : i32
    %c0_i32_1 = arith.constant 0 : i32
    return %c0_i32, %c0_i32_0 : i32, i32
  }
  func.func @transform_6(%arg0: i32) -> (i32, i32) {
    %c0_i32 = arith.constant 0 : i32
    %c0_i32_0 = arith.constant 0 : i32
    %c0_i32_1 = arith.constant 0 : i32
    return %c0_i32, %c0_i32_0 : i32, i32
  }
  func.func @transform_7(%arg0: i32) -> (i32, i32, i32) {
    %c0_i32 = arith.constant 0 : i32
    %c0_i32_0 = arith.constant 0 : i32
    %c0_i32_1 = arith.constant 0 : i32
    %c0_i32_2 = arith.constant 0 : i32
    return %c0_i32, %c0_i32_0, %c0_i32_1 : i32, i32, i32
  }
}

module attributes {stable_mosaic.version = 11 : i64} {
  func.func @_gemm_kernel(%arg0: i32, %arg1: memref<32x1152xbf16, #tpu.memory_space<vmem>>, %arg2: memref<1152x256xbf16, #tpu.memory_space<vmem>>, %arg3: memref<1x256xf32, #tpu.memory_space<vmem>>, %arg4: memref<32x256xf32, #tpu.memory_space<vmem>>, %arg5: memref<32x256xf32, #tpu.memory_space<vmem>>) attributes {dimension_semantics = [#tpu.dimension_semantics<parallel>], iteration_bounds = array<i64: 1>, scalar_prefetch = 0 : i64, scratch_operands = 0 : i64, tpu.core_type = #tpu.core_type<tc>, window_params = [{transform_indices = @transform_0, window_bounds = array<i64: 32, 1152>}, {pipeline_mode = #tpu.pipeline_mode<synchronous>, transform_indices = @transform_1, window_bounds = array<i64: 1152, 256>}, {pipeline_mode = #tpu.pipeline_mode<synchronous>, transform_indices = @transform_2, window_bounds = array<i64: 1, 256>}, {transform_indices = @transform_3, window_bounds = array<i64: 32, 256>}, {transform_indices = @transform_4, window_bounds = array<i64: 32, 256>}]} {
    %c0 = arith.constant 0 : index
    %c0_0 = arith.constant 0 : index
    %0 = vector.load %arg1[%c0, %c0_0] : memref<32x1152xbf16, #tpu.memory_space<vmem>>, vector<32x1152xbf16>
    %c0_1 = arith.constant 0 : index
    %c0_2 = arith.constant 0 : index
    %1 = vector.load %arg2[%c0_1, %c0_2] : memref<1152x256xbf16, #tpu.memory_space<vmem>>, vector<1152x256xbf16>
    %cst = arith.constant dense<0.000000e+00> : vector<32x256xf32>
    %2 = tpu.matmul %0, %1, %cst {dimension_numbers = #tpu.dot_dimension_numbers<[1], [0], [0], [1], [0, 0, 1, 1], [], []>} : vector<32x1152xbf16>, vector<1152x256xbf16>, vector<32x256xf32> -> vector<32x256xf32>
    %c0_3 = arith.constant 0 : index
    %c0_4 = arith.constant 0 : index
    %3 = vector.load %arg3[%c0_3, %c0_4] : memref<1x256xf32, #tpu.memory_space<vmem>>, vector<1x256xf32>
    %4 = vector.broadcast %3 : vector<1x256xf32> to vector<32x256xf32>
    %5 = arith.addf %2, %4 : vector<32x256xf32>
    %cst_5 = arith.constant 0.000000e+00 : f32
    %6 = vector.broadcast %cst_5 : f32 to vector<32x256xf32>
    %7 = arith.maximumf %5, %6 : vector<32x256xf32>
    %c0_6 = arith.constant 0 : index
    %c0_7 = arith.constant 0 : index
    %8 = vector.load %arg4[%c0_6, %c0_7] : memref<32x256xf32, #tpu.memory_space<vmem>>, vector<32x256xf32>
    %9 = arith.addf %7, %8 : vector<32x256xf32>
    %c0_8 = arith.constant 0 : index
    %c0_9 = arith.constant 0 : index
    %10 = vector.load %arg5[%c0_8, %c0_9] : memref<32x256xf32, #tpu.memory_space<vmem>>, vector<32x256xf32>
    tpu.vector_store %arg5[%c0_8, %c0_9], %9 {strides = array<i32>} : memref<32x256xf32, #tpu.memory_space<vmem>>, vector<32x256xf32>,
    return
  }
  func.func @transform_0(%arg0: i32) -> (i32, i32) {
    %c0_i32 = arith.constant 0 : i32
    %c0_i32_0 = arith.constant 0 : i32
    return %arg0, %c0_i32 : i32, i32
  }
  func.func @transform_1(%arg0: i32) -> (i32, i32) {
    %c0_i32 = arith.constant 0 : i32
    %c0_i32_0 = arith.constant 0 : i32
    %c0_i32_1 = arith.constant 0 : i32
    return %c0_i32, %c0_i32_0 : i32, i32
  }
  func.func @transform_2(%arg0: i32) -> (i32, i32) {
    %c0_i32 = arith.constant 0 : i32
    %c0_i32_0 = arith.constant 0 : i32
    %c0_i32_1 = arith.constant 0 : i32
    return %c0_i32, %c0_i32_0 : i32, i32
  }
  func.func @transform_3(%arg0: i32) -> (i32, i32) {
    %c0_i32 = arith.constant 0 : i32
    %c0_i32_0 = arith.constant 0 : i32
    return %arg0, %c0_i32 : i32, i32
  }
  func.func @transform_4(%arg0: i32) -> (i32, i32) {
    %c0_i32 = arith.constant 0 : i32
    %c0_i32_0 = arith.constant 0 : i32
    return %arg0, %c0_i32 : i32, i32
  }
}

module attributes {stable_mosaic.version = 11 : i64} {
  func.func @_gemm_kernel(%arg0: i32, %arg1: memref<64x576xbf16, #tpu.memory_space<vmem>>, %arg2: memref<576x128xbf16, #tpu.memory_space<vmem>>, %arg3: memref<1x128xf32, #tpu.memory_space<vmem>>, %arg4: memref<64x128xf32, #tpu.memory_space<vmem>>, %arg5: memref<64x128xf32, #tpu.memory_space<vmem>>) attributes {dimension_semantics = [#tpu.dimension_semantics<parallel>], iteration_bounds = array<i64: 2>, scalar_prefetch = 0 : i64, scratch_operands = 0 : i64, tpu.core_type = #tpu.core_type<tc>, window_params = [{transform_indices = @transform_0, window_bounds = array<i64: 64, 576>}, {pipeline_mode = #tpu.pipeline_mode<synchronous>, transform_indices = @transform_1, window_bounds = array<i64: 576, 128>}, {pipeline_mode = #tpu.pipeline_mode<synchronous>, transform_indices = @transform_2, window_bounds = array<i64: 1, 128>}, {transform_indices = @transform_3, window_bounds = array<i64: 64, 128>}, {transform_indices = @transform_4, window_bounds = array<i64: 64, 128>}]} {
    %c0 = arith.constant 0 : index
    %c0_0 = arith.constant 0 : index
    %0 = vector.load %arg1[%c0, %c0_0] : memref<64x576xbf16, #tpu.memory_space<vmem>>, vector<64x576xbf16>
    %c0_1 = arith.constant 0 : index
    %c0_2 = arith.constant 0 : index
    %1 = vector.load %arg2[%c0_1, %c0_2] : memref<576x128xbf16, #tpu.memory_space<vmem>>, vector<576x128xbf16>
    %cst = arith.constant dense<0.000000e+00> : vector<64x128xf32>
    %2 = tpu.matmul %0, %1, %cst {dimension_numbers = #tpu.dot_dimension_numbers<[1], [0], [0], [1], [0, 0, 1, 1], [], []>} : vector<64x576xbf16>, vector<576x128xbf16>, vector<64x128xf32> -> vector<64x128xf32>
    %c0_3 = arith.constant 0 : index
    %c0_4 = arith.constant 0 : index
    %3 = vector.load %arg3[%c0_3, %c0_4] : memref<1x128xf32, #tpu.memory_space<vmem>>, vector<1x128xf32>
    %4 = vector.broadcast %3 : vector<1x128xf32> to vector<64x128xf32>
    %5 = arith.addf %2, %4 : vector<64x128xf32>
    %cst_5 = arith.constant 0.000000e+00 : f32
    %6 = vector.broadcast %cst_5 : f32 to vector<64x128xf32>
    %7 = arith.maximumf %5, %6 : vector<64x128xf32>
    %c0_6 = arith.constant 0 : index
    %c0_7 = arith.constant 0 : index
    %8 = vector.load %arg4[%c0_6, %c0_7] : memref<64x128xf32, #tpu.memory_space<vmem>>, vector<64x128xf32>
    %9 = arith.addf %7, %8 : vector<64x128xf32>
    %c0_8 = arith.constant 0 : index
    %c0_9 = arith.constant 0 : index
    %10 = vector.load %arg5[%c0_8, %c0_9] : memref<64x128xf32, #tpu.memory_space<vmem>>, vector<64x128xf32>
    tpu.vector_store %arg5[%c0_8, %c0_9], %9 {strides = array<i32>} : memref<64x128xf32, #tpu.memory_space<vmem>>, vector<64x128xf32>,
    return
  }
  func.func @transform_0(%arg0: i32) -> (i32, i32) {
    %c0_i32 = arith.constant 0 : i32
    %c0_i32_0 = arith.constant 0 : i32
    return %arg0, %c0_i32 : i32, i32
  }
  func.func @transform_1(%arg0: i32) -> (i32, i32) {
    %c0_i32 = arith.constant 0 : i32
    %c0_i32_0 = arith.constant 0 : i32
    %c0_i32_1 = arith.constant 0 : i32
    return %c0_i32, %c0_i32_0 : i32, i32
  }
  func.func @transform_2(%arg0: i32) -> (i32, i32) {
    %c0_i32 = arith.constant 0 : i32
    %c0_i32_0 = arith.constant 0 : i32
    %c0_i32_1 = arith.constant 0 : i32
    return %c0_i32, %c0_i32_0 : i32, i32
  }
  func.func @transform_3(%arg0: i32) -> (i32, i32) {
    %c0_i32 = arith.constant 0 : i32
    %c0_i32_0 = arith.constant 0 : i32
    return %arg0, %c0_i32 : i32, i32
  }
  func.func @transform_4(%arg0: i32) -> (i32, i32) {
    %c0_i32 = arith.constant 0 : i32
    %c0_i32_0 = arith.constant 0 : i32
    return %arg0, %c0_i32 : i32, i32
  }
}

module attributes {stable_mosaic.version = 11 : i64} {
  func.func @_gemm_kernel(%arg0: i32, %arg1: memref<4x288xbf16, #tpu.memory_space<vmem>>, %arg2: memref<288x512xbf16, #tpu.memory_space<vmem>>, %arg3: memref<1x1xf32, #tpu.memory_space<vmem>>, %arg4: memref<4x512xf32, #tpu.memory_space<vmem>>) attributes {dimension_semantics = [#tpu.dimension_semantics<parallel>], iteration_bounds = array<i64: 1>, scalar_prefetch = 0 : i64, scratch_operands = 0 : i64, tpu.core_type = #tpu.core_type<tc>, window_params = [{transform_indices = @transform_0, window_bounds = array<i64: 4, 288>}, {pipeline_mode = #tpu.pipeline_mode<synchronous>, transform_indices = @transform_1, window_bounds = array<i64: 288, 512>}, {pipeline_mode = #tpu.pipeline_mode<synchronous>, transform_indices = @transform_2, window_bounds = array<i64: 1, 1>}, {transform_indices = @transform_3, window_bounds = array<i64: 4, 512>}]} {
    %c0 = arith.constant 0 : index
    %c0_0 = arith.constant 0 : index
    %0 = vector.load %arg1[%c0, %c0_0] : memref<4x288xbf16, #tpu.memory_space<vmem>>, vector<4x288xbf16>
    %c0_1 = arith.constant 0 : index
    %c0_2 = arith.constant 0 : index
    %1 = vector.load %arg2[%c0_1, %c0_2] : memref<288x512xbf16, #tpu.memory_space<vmem>>, vector<288x512xbf16>
    %cst = arith.constant dense<0.000000e+00> : vector<4x512xf32>
    %2 = tpu.matmul %0, %1, %cst {dimension_numbers = #tpu.dot_dimension_numbers<[1], [0], [0], [1], [0, 0, 1, 1], [], []>} : vector<4x288xbf16>, vector<288x512xbf16>, vector<4x512xf32> -> vector<4x512xf32>
    %c0_3 = arith.constant 0 : index
    %c0_4 = arith.constant 0 : index
    %3 = vector.load %arg3[%c0_3, %c0_4] : memref<1x1xf32, #tpu.memory_space<vmem>>, vector<1x1xf32>
    %4 = vector.broadcast %3 : vector<1x1xf32> to vector<4x512xf32>
    %5 = arith.addf %2, %4 : vector<4x512xf32>
    %c0_5 = arith.constant 0 : index
    %c0_6 = arith.constant 0 : index
    %6 = vector.load %arg4[%c0_5, %c0_6] : memref<4x512xf32, #tpu.memory_space<vmem>>, vector<4x512xf32>
    tpu.vector_store %arg4[%c0_5, %c0_6], %5 {strides = array<i32>} : memref<4x512xf32, #tpu.memory_space<vmem>>, vector<4x512xf32>,
    return
  }
  func.func @transform_0(%arg0: i32) -> (i32, i32) {
    %c0_i32 = arith.constant 0 : i32
    %c0_i32_0 = arith.constant 0 : i32
    return %arg0, %c0_i32 : i32, i32
  }
  func.func @transform_1(%arg0: i32) -> (i32, i32) {
    %c0_i32 = arith.constant 0 : i32
    %c0_i32_0 = arith.constant 0 : i32
    %c0_i32_1 = arith.constant 0 : i32
    return %c0_i32, %c0_i32_0 : i32, i32
  }
  func.func @transform_2(%arg0: i32) -> (i32, i32) {
    %c0_i32 = arith.constant 0 : i32
    %c0_i32_0 = arith.constant 0 : i32
    %c0_i32_1 = arith.constant 0 : i32
    return %c0_i32, %c0_i32_0 : i32, i32
  }
  func.func @transform_3(%arg0: i32) -> (i32, i32) {
    %c0_i32 = arith.constant 0 : i32
    %c0_i32_0 = arith.constant 0 : i32
    return %arg0, %c0_i32 : i32, i32
  }
}

</mosaic_0001>

<bundles_post_ra>
// kernel: autoencoder_forward.6
= control target key start
LH: loop header
LB: loop body
LE: loop exit
PB: predicated region body
PF: predicated region fallthrough
CT: control target
= control target key end

     0   :  { %s618_s12 = smov 0   ;;  %s816_s0 = inlined_call_operand.vmem [shape: f32[512,1], index: 0, kind: input, shape index: {}]   ;;  %s817_s1 = inlined_call_operand.vmem [shape: f32[1,32], index: 1, kind: input, shape index: {}]   ;;  %s818_s2 = inlined_call_operand.vmem [shape: f32[1,32], index: 2, kind: input, shape index: {}]   ;;  %s819_s3 = inlined_call_operand.vmem [shape: f32[512,32], index: 3, kind: output, shape index: {}]  }
   0x1 LB: > { %s565_s13 = sadd.s32 4294967295, %s595_s12   ;;  %p569_p0 = scmp.ge.s32.totalorder %s595_s12, 1  ;;  %s595_s12 = sphi %s618_s12, %s13_s12  }
   0x2   : > { %p138_p1 = scmp.lt.s32.totalorder %s595_s12, 3 }
   0x4   : > { %p139_p2 = pnand %p569_p0, %p138_p1 }
   0x5   : > { %s570_s14 = sshll.u32 (!%p139_p2), %s565_s13, 5  ;;  %v597_v0 = vmov (!%p139_p2), 0   ;;  %v671_v33 = vld [vmem:[%s817_s1] ss:$0 sm:$0xff] (!%p139_p2)  ;;  %vm476_vm0 = vcmask (!%p139_p2), 261120  }
   0x6   : > { %142 = sbr.rel (%p139_p2) target bundleno = 212 (0xd4), region = 32  ;;  %588 = vset.pattern.permute.xlu1 (!%p139_p2), %v597_v0  ;;  %587 = vset.pattern.permute.xlu0 (!%p139_p2), %v597_v0  ;;  %p163_p3 = scmp.lt.s32.totalorder (!%p139_p2), %s570_s14, 63  ;;  %v676_v34 = vld [vmem:[%s818_s2] ss:$0 sm:$0xff] (!%p139_p2) }
   0xd   : > { %s821_s14 = smov (!%p163_p3, %s570_s14), 63 }
   0xe   : > { %s571_s15 = sshll.u32 %s821_s14, 3 }
   0xf   : > { %s634_s18 = scalar_lea.vmem %s816_s0, %s571_s15  ;;  %s687_s25 = scalar_lea.vmem %s819_s3, %s571_s15 }
  0x10   : > { %v176_v1 = vld [vmem:[%s634_s18 + $0x10] sm:$0xff]  ;;  %v174_v2 = vld [vmem:[%s634_s18] sm:$0xff]  ;;  %v177_v3 = vld [vmem:[%s634_s18 + $0x18] sm:$0xff] }
  0x11   : > { %219 = vperm.xlu1 %588, %v176_v1   ;;  %209 = vperm.xlu0 %587, %v174_v2   ;;  %v175_v4 = vld [vmem:[%s634_s18 + $0x8] sm:$0xff]  ;;  %v178_v6 = vld [vmem:[%s634_s18 + $0x20] sm:$0xff]  ;;  %v181_v7 = vld [vmem:[%s634_s18 + $0x38] sm:$0xff] }
  0x12   : > { %v179_v5 = vld [vmem:[%s634_s18 + $0x28] sm:$0xff]  ;;  %v180_v8 = vld [vmem:[%s634_s18 + $0x30] sm:$0xff]  ;;  %v182_v10 = vld [vmem:[%s634_s18 + $0x40] sm:$0xff] }
  0x13   : > { %v183_v9 = vld [vmem:[%s634_s18 + $0x48] sm:$0xff]  ;;  %v185_v11 = vld [vmem:[%s634_s18 + $0x58] sm:$0xff]  ;;  %v184_v12 = vld [vmem:[%s634_s18 + $0x50] sm:$0xff] }
  0x14   : > { %v187_v13 = vld [vmem:[%s634_s18 + $0x68] sm:$0xff]  ;;  %v186_v14 = vld [vmem:[%s634_s18 + $0x60] sm:$0xff]  ;;  %v189_v15 = vld [vmem:[%s634_s18 + $0x78] sm:$0xff] }
  0x15   : > { %224 = vperm.xlu1 %588, %v177_v3   ;;  %214 = vperm.xlu0 %587, %v175_v4   ;;  %v188_v16 = vld [vmem:[%s634_s18 + $0x70] sm:$0xff]  ;;  %v191_v17 = vld [vmem:[%s634_s18 + $0x88] sm:$0xff]  ;;  %v190_v18 = vld [vmem:[%s634_s18 + $0x80] sm:$0xff] }
  0x16   : > { %v193_v19 = vld [vmem:[%s634_s18 + $0x98] sm:$0xff]  ;;  %v192_v20 = vld [vmem:[%s634_s18 + $0x90] sm:$0xff]  ;;  %v195_v21 = vld [vmem:[%s634_s18 + $0xa8] sm:$0xff] }
  0x17   : > { %v194_v22 = vld [vmem:[%s634_s18 + $0xa0] sm:$0xff]  ;;  %v197_v23 = vld [vmem:[%s634_s18 + $0xb8] sm:$0xff]  ;;  %v196_v24 = vld [vmem:[%s634_s18 + $0xb0] sm:$0xff] }
  0x18   : > { %v199_v25 = vld [vmem:[%s634_s18 + $0xc8] sm:$0xff]  ;;  %v198_v26 = vld [vmem:[%s634_s18 + $0xc0] sm:$0xff]  ;;  %v201_v27 = vld [vmem:[%s634_s18 + $0xd8] sm:$0xff] }
  0x19   : > { %234 = vperm.xlu1 %588, %v179_v5   ;;  %229 = vperm.xlu0 %587, %v178_v6   ;;  %v200_v28 = vld [vmem:[%s634_s18 + $0xd0] sm:$0xff]  ;;  %v203_v29 = vld [vmem:[%s634_s18 + $0xe8] sm:$0xff]  ;;  %v202_v30 = vld [vmem:[%s634_s18 + $0xe0] sm:$0xff] }
  0x1a   : > { %v205_v31 = vld [vmem:[%s634_s18 + $0xf8] sm:$0xff]  ;;  %v204_v32 = vld [vmem:[%s634_s18 + $0xf0] sm:$0xff] }
  0x1d   : > { %244 = vperm.xlu1 %588, %v181_v7   ;;  %239 = vperm.xlu0 %587, %v180_v8  }
  0x21   : > { %254 = vperm.xlu1 %588, %v183_v9   ;;  %249 = vperm.xlu0 %587, %v182_v10  }
  0x25   : > { %264 = vperm.xlu1 %588, %v185_v11   ;;  %259 = vperm.xlu0 %587, %v184_v12  }
  0x29   : > { %274 = vperm.xlu1 %588, %v187_v13   ;;  %269 = vperm.xlu0 %587, %v186_v14  }
  0x2d   : > { %284 = vperm.xlu1 %588, %v189_v15   ;;  %279 = vperm.xlu0 %587, %v188_v16  }
  0x31   : > { %294 = vperm.xlu1 %588, %v191_v17   ;;  %289 = vperm.xlu0 %587, %v190_v18  }
  0x35   : > { %304 = vperm.xlu1 %588, %v193_v19   ;;  %299 = vperm.xlu0 %587, %v192_v20  }
  0x39   : > { %314 = vperm.xlu1 %588, %v195_v21   ;;  %309 = vperm.xlu0 %587, %v194_v22  }
  0x3d   : > { %324 = vperm.xlu1 %588, %v197_v23   ;;  %319 = vperm.xlu0 %587, %v196_v24  }
  0x41   : > { %334 = vperm.xlu1 %588, %v199_v25   ;;  %329 = vperm.xlu0 %587, %v198_v26  }
  0x45   : > { %344 = vperm.xlu1 %588, %v201_v27   ;;  %339 = vperm.xlu0 %587, %v200_v28  }
  0x49   : > { %354 = vperm.xlu1 %588, %v203_v29   ;;  %349 = vperm.xlu0 %587, %v202_v30  }
  0x4d   : > { %364 = vperm.xlu1 %588, %v205_v31   ;;  %359 = vperm.xlu0 %587, %v204_v32  }
  0x90   : > { %v220_v35 = vpop.permute.xlu1 %219  ;;  %v210_v36 = vpop.permute.xlu0 %209 }
  0x91   : > { %v375_v37 = vmul.f32 %v671_v33, %v220_v35  ;;  %v373_v38 = vmul.f32 %v671_v33, %v210_v36 }
  0x93   : > { %v414_v39 = vadd.f32 %v676_v34, %v375_v37  ;;  %v412_v40 = vadd.f32 %v676_v34, %v373_v38 }
  0x94   : > { %v225_v41 = vpop.permute.xlu1 %224  ;;  %v215_v42 = vpop.permute.xlu0 %214 }
  0x95   : > { %v446_v43 = vmax.f32 %v414_v39, 0.0  ;;  %v444_v44 = vmax.f32 %v412_v40, 0.0  ;;  %v376_v45 = vmul.f32 %v671_v33, %v225_v41  ;;  %v374_v46 = vmul.f32 %v671_v33, %v215_v42 }
  0x97   : > { %479 = vst.msk [vmem:[%s687_s25 + $0x10] sm:$0xff] %vm476_vm0, %v446_v43  ;;  %477 = vst.msk [vmem:[%s687_s25] sm:$0xff] %vm476_vm0, %v444_v44  ;;  %v415_v47 = vadd.f32 %v676_v34, %v376_v45  ;;  %v413_v48 = vadd.f32 %v676_v34, %v374_v46 }
  0x98   : > { %v235_v49 = vpop.permute.xlu1 %234  ;;  %v230_v50 = vpop.permute.xlu0 %229 }
  0x99   : > { %v447_v51 = vmax.f32 %v415_v47, 0.0  ;;  %v445_v52 = vmax.f32 %v413_v48, 0.0  ;;  %v378_v53 = vmul.f32 %v671_v33, %v235_v49  ;;  %v377_v54 = vmul.f32 %v671_v33, %v230_v50 }
  0x9b   : > { %480 = vst.msk [vmem:[%s687_s25 + $0x18] sm:$0xff] %vm476_vm0, %v447_v51  ;;  %478 = vst.msk [vmem:[%s687_s25 + $0x8] sm:$0xff] %vm476_vm0, %v445_v52  ;;  %v417_v55 = vadd.f32 %v676_v34, %v378_v53  ;;  %v416_v56 = vadd.f32 %v676_v34, %v377_v54 }
  0x9c   : > { %v245_v57 = vpop.permute.xlu1 %244  ;;  %v240_v58 = vpop.permute.xlu0 %239 }
  0x9d   : > { %v449_v59 = vmax.f32 %v417_v55, 0.0  ;;  %v448_v60 = vmax.f32 %v416_v56, 0.0  ;;  %v380_v61 = vmul.f32 %v671_v33, %v245_v57  ;;  %v379_v62 = vmul.f32 %v671_v33, %v240_v58 }
  0x9f   : > { %482 = vst.msk [vmem:[%s687_s25 + $0x28] sm:$0xff] %vm476_vm0, %v449_v59  ;;  %481 = vst.msk [vmem:[%s687_s25 + $0x20] sm:$0xff] %vm476_vm0, %v448_v60  ;;  %v419_v63 = vadd.f32 %v676_v34, %v380_v61  ;;  %v418_v0 = vadd.f32 %v676_v34, %v379_v62 }
  0xa0   : > { %v255_v1 = vpop.permute.xlu1 %254  ;;  %v250_v2 = vpop.permute.xlu0 %249 }
  0xa1   : > { %v451_v3 = vmax.f32 %v419_v63, 0.0  ;;  %v450_v4 = vmax.f32 %v418_v0, 0.0  ;;  %v382_v5 = vmul.f32 %v671_v33, %v255_v1  ;;  %v381_v6 = vmul.f32 %v671_v33, %v250_v2 }
  0xa3   : > { %484 = vst.msk [vmem:[%s687_s25 + $0x38] sm:$0xff] %vm476_vm0, %v451_v3  ;;  %483 = vst.msk [vmem:[%s687_s25 + $0x30] sm:$0xff] %vm476_vm0, %v450_v4  ;;  %v421_v7 = vadd.f32 %v676_v34, %v382_v5  ;;  %v420_v8 = vadd.f32 %v676_v34, %v381_v6 }
  0xa4   : > { %v265_v9 = vpop.permute.xlu1 %264  ;;  %v260_v10 = vpop.permute.xlu0 %259 }
  0xa5   : > { %v453_v11 = vmax.f32 %v421_v7, 0.0  ;;  %v452_v12 = vmax.f32 %v420_v8, 0.0  ;;  %v384_v13 = vmul.f32 %v671_v33, %v265_v9  ;;  %v383_v14 = vmul.f32 %v671_v33, %v260_v10 }
  0xa7   : > { %486 = vst.msk [vmem:[%s687_s25 + $0x48] sm:$0xff] %vm476_vm0, %v453_v11  ;;  %485 = vst.msk [vmem:[%s687_s25 + $0x40] sm:$0xff] %vm476_vm0, %v452_v12  ;;  %v423_v15 = vadd.f32 %v676_v34, %v384_v13  ;;  %v422_v16 = vadd.f32 %v676_v34, %v383_v14 }
  0xa8   : > { %v275_v17 = vpop.permute.xlu1 %274  ;;  %v270_v18 = vpop.permute.xlu0 %269 }
  0xa9   : > { %v455_v19 = vmax.f32 %v423_v15, 0.0  ;;  %v454_v20 = vmax.f32 %v422_v16, 0.0  ;;  %v386_v21 = vmul.f32 %v671_v33, %v275_v17  ;;  %v385_v22 = vmul.f32 %v671_v33, %v270_v18 }
  0xab   : > { %488 = vst.msk [vmem:[%s687_s25 + $0x58] sm:$0xff] %vm476_vm0, %v455_v19  ;;  %487 = vst.msk [vmem:[%s687_s25 + $0x50] sm:$0xff] %vm476_vm0, %v454_v20  ;;  %v425_v23 = vadd.f32 %v676_v34, %v386_v21  ;;  %v424_v24 = vadd.f32 %v676_v34, %v385_v22 }
  0xac   : > { %v285_v25 = vpop.permute.xlu1 %284  ;;  %v280_v26 = vpop.permute.xlu0 %279 }
  0xad   : > { %v457_v27 = vmax.f32 %v425_v23, 0.0  ;;  %v456_v28 = vmax.f32 %v424_v24, 0.0  ;;  %v388_v29 = vmul.f32 %v671_v33, %v285_v25  ;;  %v387_v30 = vmul.f32 %v671_v33, %v280_v26 }
  0xaf   : > { %490 = vst.msk [vmem:[%s687_s25 + $0x68] sm:$0xff] %vm476_vm0, %v457_v27  ;;  %489 = vst.msk [vmem:[%s687_s25 + $0x60] sm:$0xff] %vm476_vm0, %v456_v28  ;;  %v427_v31 = vadd.f32 %v676_v34, %v388_v29  ;;  %v426_v32 = vadd.f32 %v676_v34, %v387_v30 }
  0xb0   : > { %v295_v35 = vpop.permute.xlu1 %294  ;;  %v290_v36 = vpop.permute.xlu0 %289 }
  0xb1   : > { %v459_v37 = vmax.f32 %v427_v31, 0.0  ;;  %v458_v38 = vmax.f32 %v426_v32, 0.0  ;;  %v390_v39 = vmul.f32 %v671_v33, %v295_v35  ;;  %v389_v40 = vmul.f32 %v671_v33, %v290_v36 }
  0xb3   : > { %492 = vst.msk [vmem:[%s687_s25 + $0x78] sm:$0xff] %vm476_vm0, %v459_v37  ;;  %491 = vst.msk [vmem:[%s687_s25 + $0x70] sm:$0xff] %vm476_vm0, %v458_v38  ;;  %v429_v41 = vadd.f32 %v676_v34, %v390_v39  ;;  %v428_v42 = vadd.f32 %v676_v34, %v389_v40 }
  0xb4   : > { %v305_v43 = vpop.permute.xlu1 %304  ;;  %v300_v44 = vpop.permute.xlu0 %299 }
  0xb5   : > { %v461_v45 = vmax.f32 %v429_v41, 0.0  ;;  %v460_v46 = vmax.f32 %v428_v42, 0.0  ;;  %v392_v47 = vmul.f32 %v671_v33, %v305_v43  ;;  %v391_v48 = vmul.f32 %v671_v33, %v300_v44 }
  0xb7   : > { %494 = vst.msk [vmem:[%s687_s25 + $0x88] sm:$0xff] %vm476_vm0, %v461_v45  ;;  %493 = vst.msk [vmem:[%s687_s25 + $0x80] sm:$0xff] %vm476_vm0, %v460_v46  ;;  %v431_v49 = vadd.f32 %v676_v34, %v392_v47  ;;  %v430_v50 = vadd.f32 %v676_v34, %v391_v48 }
  0xb8   : > { %v315_v51 = vpop.permute.xlu1 %314  ;;  %v310_v52 = vpop.permute.xlu0 %309 }
  0xb9   : > { %v463_v53 = vmax.f32 %v431_v49, 0.0  ;;  %v462_v54 = vmax.f32 %v430_v50, 0.0  ;;  %v394_v55 = vmul.f32 %v671_v33, %v315_v51  ;;  %v393_v56 = vmul.f32 %v671_v33, %v310_v52 }
  0xbb   : > { %496 = vst.msk [vmem:[%s687_s25 + $0x98] sm:$0xff] %vm476_vm0, %v463_v53  ;;  %495 = vst.msk [vmem:[%s687_s25 + $0x90] sm:$0xff] %vm476_vm0, %v462_v54  ;;  %v433_v57 = vadd.f32 %v676_v34, %v394_v55  ;;  %v432_v58 = vadd.f32 %v676_v34, %v393_v56 }
  0xbc   : > { %v325_v59 = vpop.permute.xlu1 %324  ;;  %v320_v60 = vpop.permute.xlu0 %319 }
  0xbd   : > { %v465_v61 = vmax.f32 %v433_v57, 0.0  ;;  %v464_v62 = vmax.f32 %v432_v58, 0.0  ;;  %v396_v63 = vmul.f32 %v671_v33, %v325_v59  ;;  %v395_v0 = vmul.f32 %v671_v33, %v320_v60 }
  0xbf   : > { %498 = vst.msk [vmem:[%s687_s25 + $0xa8] sm:$0xff] %vm476_vm0, %v465_v61  ;;  %497 = vst.msk [vmem:[%s687_s25 + $0xa0] sm:$0xff] %vm476_vm0, %v464_v62  ;;  %v435_v1 = vadd.f32 %v676_v34, %v396_v63  ;;  %v434_v2 = vadd.f32 %v676_v34, %v395_v0 }
  0xc0   : > { %v335_v3 = vpop.permute.xlu1 %334  ;;  %v330_v4 = vpop.permute.xlu0 %329 }
  0xc1   : > { %v467_v5 = vmax.f32 %v435_v1, 0.0  ;;  %v466_v6 = vmax.f32 %v434_v2, 0.0  ;;  %v398_v7 = vmul.f32 %v671_v33, %v335_v3  ;;  %v397_v8 = vmul.f32 %v671_v33, %v330_v4 }
  0xc3   : > { %500 = vst.msk [vmem:[%s687_s25 + $0xb8] sm:$0xff] %vm476_vm0, %v467_v5  ;;  %499 = vst.msk [vmem:[%s687_s25 + $0xb0] sm:$0xff] %vm476_vm0, %v466_v6  ;;  %v437_v9 = vadd.f32 %v676_v34, %v398_v7  ;;  %v436_v10 = vadd.f32 %v676_v34, %v397_v8 }
  0xc4   : > { %v345_v11 = vpop.permute.xlu1 %344  ;;  %v340_v12 = vpop.permute.xlu0 %339 }
  0xc5   : > { %v469_v13 = vmax.f32 %v437_v9, 0.0  ;;  %v468_v14 = vmax.f32 %v436_v10, 0.0  ;;  %v400_v15 = vmul.f32 %v671_v33, %v345_v11  ;;  %v399_v16 = vmul.f32 %v671_v33, %v340_v12 }
  0xc7   : > { %502 = vst.msk [vmem:[%s687_s25 + $0xc8] sm:$0xff] %vm476_vm0, %v469_v13  ;;  %501 = vst.msk [vmem:[%s687_s25 + $0xc0] sm:$0xff] %vm476_vm0, %v468_v14  ;;  %v439_v17 = vadd.f32 %v676_v34, %v400_v15  ;;  %v438_v18 = vadd.f32 %v676_v34, %v399_v16 }
  0xc8   : > { %v355_v19 = vpop.permute.xlu1 %354  ;;  %v350_v20 = vpop.permute.xlu0 %349 }
  0xc9   : > { %v471_v21 = vmax.f32 %v439_v17, 0.0  ;;  %v470_v22 = vmax.f32 %v438_v18, 0.0  ;;  %v402_v23 = vmul.f32 %v671_v33, %v355_v19  ;;  %v401_v24 = vmul.f32 %v671_v33, %v350_v20 }
  0xcb   : > { %504 = vst.msk [vmem:[%s687_s25 + $0xd8] sm:$0xff] %vm476_vm0, %v471_v21  ;;  %503 = vst.msk [vmem:[%s687_s25 + $0xd0] sm:$0xff] %vm476_vm0, %v470_v22  ;;  %v441_v25 = vadd.f32 %v676_v34, %v402_v23  ;;  %v440_v26 = vadd.f32 %v676_v34, %v401_v24 }
  0xcc   : > { %v365_v27 = vpop.permute.xlu1 %364  ;;  %v360_v28 = vpop.permute.xlu0 %359 }
  0xcd   : > { %v473_v29 = vmax.f32 %v441_v25, 0.0  ;;  %v472_v30 = vmax.f32 %v440_v26, 0.0  ;;  %v404_v31 = vmul.f32 %v671_v33, %v365_v27  ;;  %v403_v32 = vmul.f32 %v671_v33, %v360_v28 }
  0xcf   : > { %506 = vst.msk [vmem:[%s687_s25 + $0xe8] sm:$0xff] %vm476_vm0, %v473_v29  ;;  %505 = vst.msk [vmem:[%s687_s25 + $0xe0] sm:$0xff] %vm476_vm0, %v472_v30  ;;  %v443_v35 = vadd.f32 %v676_v34, %v404_v31  ;;  %v442_v36 = vadd.f32 %v676_v34, %v403_v32 }
  0xd1   : > { %v475_v37 = vmax.f32 %v443_v35, 0.0  ;;  %v474_v38 = vmax.f32 %v442_v36, 0.0 }
  0xd3   : > { %508 = vst.msk [vmem:[%s687_s25 + $0xf8] sm:$0xff] %vm476_vm0, %v475_v37  ;;  %507 = vst.msk [vmem:[%s687_s25 + $0xf0] sm:$0xff] %vm476_vm0, %v474_v38 }
  0xd4 PF: > { %s13_s12 = sadd.s32 1, %s595_s12  }
  0xd5   : > { %p10_p4 = scmp.ge.s32.totalorder %s13_s12, 4  }
  0xd7   :  { %12 = sbr.rel (!%p10_p4) target bundleno = 1 (0x1), region = 62 }

// kernel: autoencoder_forward.7
= control target key start
LH: loop header
LB: loop body
LE: loop exit
PB: predicated region body
PF: predicated region fallthrough
CT: control target
= control target key end

     0   :  { %s812_s12 = smov 0   ;;  %s926_s0 = inlined_call_operand.vmem [shape: bf16[128,288], index: 0, kind: input, shape index: {}]   ;;  %s927_s1 = inlined_call_operand.vmem [shape: bf16[288,64], index: 1, kind: input, shape index: {}]   ;;  %s928_s2 = inlined_call_operand.vmem [shape: f32[1,64], index: 2, kind: input, shape index: {}]   ;;  %s929_s3 = inlined_call_operand.vmem [shape: f32[128,64], index: 3, kind: output, shape index: {}]  }
   0x1 LB: > { %s621_s13 = sadd.s32 4294967295, %s790_s12   ;;  %p625_p0 = scmp.ge.s32.totalorder %s790_s12, 1  ;;  %s790_s12 = sphi %s812_s12, %s13_s12  }
   0x2   : > { %p139_p1 = scmp.lt.s32.totalorder %s790_s12, 3 }
   0x4   : > { %p140_p2 = pnand %p625_p0, %p139_p1 }
   0x5   : > { %v750_v0 = vld [vmem:[%s927_s1 + $0x40] sm:$0xff] (!%p140_p2)   ;;  %s626_s16 = sshll.u32 (!%p140_p2), %s621_s13, 3  ;;  %v752_v2 = vld [vmem:[%s927_s1 + $0x48] sm:$0xff] (!%p140_p2)   ;;  %v754_v4 = vld [vmem:[%s927_s1 + $0x50] sm:$0xff] (!%p140_p2)   ;;  %vm405_vm0 = vcmask (!%p140_p2), 261120   ;;  %vm556_vm1 = vcmask (!%p140_p2), 523264  }
   0x6   : > { %143 = sbr.rel (%p140_p2) target bundleno = 278 (0x116), region = 32  ;;  %v751_v1 = vld [vmem:[%s927_s1] sm:$0xff] (!%p140_p2)   ;;  %667 = vmatprep.subr.bf16.mxu0 (!%p140_p2), %v750_v0  ;;  %725 = vmatprep.subr.bf16.mxu1 (!%p140_p2), %v750_v0  ;;  %p165_p3 = scmp.lt.s32.totalorder (!%p140_p2), %s626_s16, 15  ;;  %v753_v3 = vld [vmem:[%s927_s1 + $0x8] sm:$0xff] (!%p140_p2)   ;;  %v755_v5 = vld [vmem:[%s927_s1 + $0x10] sm:$0xff] (!%p140_p2)  }
   0x7   : > { %668 = vmatpush3.bf16.msra.mxu0 (!%p140_p2), %v751_v1  ;;  %733 = vmatpush3.bf16.msra.mxu1 (!%p140_p2), %v751_v1  ;;  %v756_v6 = vld [vmem:[%s927_s1 + $0x58] sm:$0xff] (!%p140_p2)   ;;  %v758_v8 = vld [vmem:[%s927_s1 + $0x60] sm:$0xff] (!%p140_p2)   ;;  %v760_v10 = vld [vmem:[%s927_s1 + $0x68] sm:$0xff] (!%p140_p2)  }
   0x8   : > { %669 = vmatprep.subr.bf16.mxu0 (!%p140_p2), %v752_v2  ;;  %726 = vmatprep.subr.bf16.mxu1 (!%p140_p2), %v752_v2  ;;  %v757_v7 = vld [vmem:[%s927_s1 + $0x18] sm:$0xff] (!%p140_p2)   ;;  %v759_v9 = vld [vmem:[%s927_s1 + $0x20] sm:$0xff] (!%p140_p2)   ;;  %v761_v13 = vld [vmem:[%s927_s1 + $0x28] sm:$0xff] (!%p140_p2)  }
   0x9   : > { %v762_v14 = vld [vmem:[%s927_s1 + $0x70] sm:$0xff] (!%p140_p2)   ;;  %v764_v16 = vld [vmem:[%s927_s1 + $0x78] sm:$0xff] (!%p140_p2)   ;;  %v772_v18 = vld [vmem:[%s927_s1 + $0x80] sm:$0xff] (!%p140_p2)  }
   0xa   : > { %v763_v15 = vld [vmem:[%s927_s1 + $0x30] sm:$0xff] (!%p140_p2)   ;;  %v765_v17 = vld [vmem:[%s927_s1 + $0x38] sm:$0xff] (!%p140_p2)   ;;  %v773_v22 = vld [vmem:[%s927_s1 + $0x88] sm:$0xff] (!%p140_p2)  }
   0xb   : > { %670 = vmatpush3.bf16.msra.mxu0 (!%p140_p2), %v753_v3  ;;  %734 = vmatpush3.bf16.msra.mxu1 (!%p140_p2), %v753_v3  ;;  %v630_v42 = vld [vmem:[%s928_s2] ss:$0 sm:$0xff] (!%p140_p2) }
   0xc   : > { %671 = vmatprep.subr.bf16.mxu0 (!%p140_p2), %v754_v4  ;;  %727 = vmatprep.subr.bf16.mxu1 (!%p140_p2), %v754_v4 }
   0xd   : > { %s931_s16 = smov (!%p165_p3, %s626_s16), 15 }
   0xe   : > { %s741_s29 = smul.u32 12, %s931_s16  ;;  %s629_s5 = sshll.u32 %s931_s16, 3 }
   0xf   : > { %672 = vmatpush3.bf16.msra.mxu0 %v755_v5  ;;  %735 = vmatpush3.bf16.msra.mxu1 %v755_v5  ;;  %s905_s8 = scalar_lea.vmem %s929_s3, %s629_s5 }
  0x10   : > { %673 = vmatprep.subr.bf16.mxu0 %v756_v6  ;;  %728 = vmatprep.subr.bf16.mxu1 %v756_v6  ;;  %s853_s9 = scalar_lea.vmem %s926_s0, %s741_s29 }
  0x11   : > { %v768_v11 = vld [vmem:[%s853_s9 + $0x4] ss:$12 sps:$4 sm:$0xff]   ;;  %v771_v12 = vld [vmem:[%s853_s9 + $0x4c] ss:$12 sps:$4 sm:$0xff]   ;;  %v769_v20 = vld [vmem:[%s853_s9 + $0x48] ss:$12 sps:$4 sm:$0xff]  }
  0x12   : > { %450 = vmatprep.mubr.bf16.mxu0 %v768_v11  ;;  %474 = vmatprep.mubr.bf16.mxu1 %v771_v12  ;;  %v766_v19 = vld [vmem:[%s853_s9] ss:$12 sps:$4 sm:$0xff]   ;;  %v774_v21 = vld [vmem:[%s853_s9 + $0x1c] ss:$12 sps:$4 sm:$0xff]   ;;  %v777_v24 = vld [vmem:[%s853_s9 + $0x18] ss:$12 sps:$4 sm:$0xff]  }
  0x13   : > { %674 = vmatpush3.bf16.msra.mxu0 %v757_v7  ;;  %736 = vmatpush3.bf16.msra.mxu1 %v757_v7  ;;  %v776_v23 = vld [vmem:[%s853_s9 + $0x8] ss:$12 sps:$4 sm:$0xff]   ;;  %v778_v25 = vld [vmem:[%s853_s9 + $0x20] ss:$12 sps:$4 sm:$0xff]   ;;  %v781_v27 = vld [vmem:[%s853_s9 + $0x38] ss:$12 sps:$4 sm:$0xff]  }
  0x14   : > { %675 = vmatprep.subr.bf16.mxu0 %v758_v8  ;;  %729 = vmatprep.subr.bf16.mxu1 %v758_v8  ;;  %v779_v26 = vld [vmem:[%s853_s9 + $0x34] ss:$12 sps:$4 sm:$0xff]   ;;  %v782_v28 = vld [vmem:[%s853_s9 + $0x30] ss:$12 sps:$4 sm:$0xff]  }
  0x15   : > { %v783_v29 = vld [vmem:[%s853_s9 + $0x50] ss:$12 sps:$4 sm:$0xff]  }
  0x17   : > { %676 = vmatpush3.bf16.msra.mxu0 %v759_v9  ;;  %737 = vmatpush3.bf16.msra.mxu1 %v759_v9 }
  0x18   : > { %677 = vmatprep.subr.bf16.mxu0 %v760_v10  ;;  %730 = vmatprep.subr.bf16.mxu1 %v760_v10 }
  0x1b   : > { %678 = vmatpush3.bf16.msra.mxu0 %v761_v13  ;;  %738 = vmatpush3.bf16.msra.mxu1 %v761_v13 }
  0x1c   : > { %679 = vmatprep.subr.bf16.mxu0 %v762_v14  ;;  %731 = vmatprep.subr.bf16.mxu1 %v762_v14 }
  0x1f   : > { %680 = vmatpush3.bf16.msra.mxu0 %v763_v15  ;;  %739 = vmatpush3.bf16.msra.mxu1 %v763_v15 }
  0x20   : > { %681 = vmatprep.subr.bf16.mxu0 %v764_v16  ;;  %732 = vmatprep.subr.bf16.mxu1 %v764_v16 }
  0x23   : > { %682 = vmatpush3.bf16.msra.mxu0 %v765_v17  ;;  %740 = vmatpush3.bf16.msra.mxu1 %v765_v17 }
  0x24   : > { %713 = vmatprep.subr.bf16.mxu1 %v772_v18 }
  0x26   : > { %451 = vmatmul.mubr.bf16.vlgmr.msra.gmra.mrb[0].mxu0 %v766_v19  ;;  %475 = vmatmul.mubr.bf16.vlgmr.msra.gmra.mrb[0].mxu1 %v769_v20 }
  0x27   : > { %714 = vmatpush3.bf16.msra.mxu1 %v772_v18  ;;  %458 = vmatprep.mubr.bf16.mxu0 %v774_v21 }
  0x28   : > { %715 = vmatprep.subr.bf16.mxu1 %v773_v22  ;;  %717 = vmatprep.mubr.msk.bf16.mxu1 %vm405_vm0, %v776_v23 }
  0x2b   : > { %716 = vmatpush3.bf16.msra.mxu1 %v773_v22 }
  0x2e   : > { %459 = vmatmul.mubr.bf16.gmra.mrb[4].mxu0 %v777_v24  ;;  %718 = vmatmul.mubr.msk.bf16.vlgmr.msra.gmra.mrb[4].mxu1 %vm405_vm0, %v778_v25 }
  0x2f   : > { %466 = vmatprep.mubr.bf16.mxu0 %v779_v26  ;;  %721 = vmatprep.mubr.msk.bf16.mxu1 %vm405_vm0, %v781_v27 }
  0x36   : > { %467 = vmatmul.mubr.bf16.gmra.mrb[8].mxu0 %v782_v28  ;;  %722 = vmatmul.mubr.msk.bf16.gmra.mrb[8].mxu1 %vm405_vm0, %v783_v29 }
  0xf9   : > { %v683_v30 = vpop.f32.mrb[0].mxu0  ;;  %v701_v31 = vpop.f32.mrb[0].mxu1 }
  0xfa   : > { %v684_v32 = vpop.f32.mrb[1].mxu0  ;;  %v702_v33 = vpop.f32.mrb[1].mxu1 }
  0xfb   : > { %v685_v34 = vadd.f32 %v684_v32, %v683_v30  ;;  %v686_v35 = vpop.f32.mrb[2].mxu0  ;;  %v703_v36 = vadd.f32 %v702_v33, %v701_v31  ;;  %v704_v37 = vpop.f32.mrb[2].mxu1 }
  0xfc   : > { %v687_v38 = vpop.f32.mrb[3].mxu0  ;;  %v705_v39 = vpop.f32.mrb[3].mxu1 }
  0xfd   : > { %v688_v40 = vadd.f32 %v687_v38, %v686_v35  ;;  %v706_v41 = vadd.f32 %v705_v39, %v704_v37  ;;  %v453_v45 = vadd.f32 %v685_v34, %v630_v42  ;;  %v477_v62 = vadd.f32 %v703_v36, %v630_v42 }
  0xff   : > { %v456_v52 = vadd.f32 %v688_v40, %v630_v42  ;;  %v480_v6 = vadd.f32 %v706_v41, %v630_v42 }
 0x101   : > { %v689_v43 = vpop.f32.mrb[4].mxu0  ;;  %v719_v44 = vpop.f32.mrb[4].mxu1 }
 0x102   : > { %v690_v46 = vpop.f32.mrb[5].mxu0  ;;  %v517_v47 = vpop.f32.mrb[5].mxu1 }
 0x103   : > { %v691_v48 = vadd.f32 %v690_v46, %v689_v43  ;;  %v518_v49 = vadd.f32 %v517_v47, %v453_v45  ;;  %v692_v50 = vpop.f32.mrb[6].mxu0  ;;  %v720_v51 = vpop.f32.mrb[6].mxu1 }
 0x104   : > { %v693_v53 = vpop.f32.mrb[7].mxu0  ;;  %v520_v54 = vpop.f32.mrb[7].mxu1 }
 0x105   : > { %v461_v55 = vadd.f32 %v691_v48, %v630_v42  ;;  %v548_v56 = vmax.f32 %v518_v49, 0.0  ;;  %v694_v57 = vadd.f32 %v693_v53, %v692_v50  ;;  %v521_v58 = vadd.f32 %v520_v54, %v456_v52 }
 0x107   : > { %v526_v59 = vadd.f32 %v719_v44, %v461_v55  ;;  %557 = vst.msk [vmem:[%s905_s8] sm:$0xff] %vm556_vm1, %v548_v56  ;;  %v464_v60 = vadd.f32 %v694_v57, %v630_v42  ;;  %v549_v61 = vmax.f32 %v521_v58, 0.0 }
 0x109   : > { %v550_v63 = vmax.f32 %v526_v59, 0.0  ;;  %v529_v0 = vadd.f32 %v720_v51, %v464_v60  ;;  %558 = vst.msk [vmem:[%s905_s8 + $0x8] sm:$0xff] %vm556_vm1, %v549_v61  ;;  %v695_v1 = vpop.f32.mrb[8].mxu0  ;;  %v723_v2 = vpop.f32.mrb[8].mxu1 }
 0x10a   : > { %v542_v3 = vadd.f32 %v723_v2, %v477_v62  ;;  %v696_v4 = vpop.f32.mrb[9].mxu0  ;;  %v533_v5 = vpop.f32.mrb[9].mxu1 }
 0x10b   : > { %559 = vst.msk [vmem:[%s905_s8 + $0x10] sm:$0xff] %vm556_vm1, %v550_v63  ;;  %v551_v7 = vmax.f32 %v529_v0, 0.0  ;;  %v697_v8 = vadd.f32 %v696_v4, %v695_v1  ;;  %v698_v9 = vpop.f32.mrb[10].mxu0  ;;  %v724_v10 = vpop.f32.mrb[10].mxu1 }
 0x10c   : > { %v554_v11 = vmax.f32 %v542_v3, 0.0  ;;  %v545_v12 = vadd.f32 %v724_v10, %v480_v6  ;;  %v699_v13 = vpop.f32.mrb[11].mxu0  ;;  %v536_v14 = vpop.f32.mrb[11].mxu1 }
 0x10d   : > { %560 = vst.msk [vmem:[%s905_s8 + $0x18] sm:$0xff] %vm556_vm1, %v551_v7  ;;  %v469_v15 = vadd.f32 %v697_v8, %v630_v42  ;;  %v700_v16 = vadd.f32 %v699_v13, %v698_v9 }
 0x10e   : > { %563 = vst.msk [vmem:[%s905_s8 + $0x30] sm:$0xff] %vm556_vm1, %v554_v11  ;;  %v555_v17 = vmax.f32 %v545_v12, 0.0 }
 0x10f   : > { %v534_v18 = vadd.f32 %v533_v5, %v469_v15  ;;  %v472_v19 = vadd.f32 %v700_v16, %v630_v42 }
 0x110   : > { %564 = vst.msk [vmem:[%s905_s8 + $0x38] sm:$0xff] %vm556_vm1, %v555_v17 }
 0x111   : > { %v552_v20 = vmax.f32 %v534_v18, 0.0  ;;  %v537_v21 = vadd.f32 %v536_v14, %v472_v19 }
 0x113   : > { %561 = vst.msk [vmem:[%s905_s8 + $0x20] sm:$0xff] %vm556_vm1, %v552_v20  ;;  %v553_v22 = vmax.f32 %v537_v21, 0.0 }
 0x115   : > { %562 = vst.msk [vmem:[%s905_s8 + $0x28] sm:$0xff] %vm556_vm1, %v553_v22 }
 0x116 PF: > { %s13_s12 = sadd.s32 1, %s790_s12  }
 0x117   : > { %p10_p4 = scmp.ge.s32.totalorder %s13_s12, 4  }
 0x119   :  { %12 = sbr.rel (!%p10_p4) target bundleno = 1 (0x1), region = 62 }

// kernel: autoencoder_forward.8
= control target key start
LH: loop header
LB: loop body
LE: loop exit
PB: predicated region body
PF: predicated region fallthrough
CT: control target
= control target key end

     0   :  { %vm384_vm0 = vcmask 523264   ;;  %v1355_v47 = vmov 0.0   ;;  %vm1356_vm1 = vmmov 0   ;;  %vm595_vm2 = vcmask 1041409   ;;  %s1676_s1 = inlined_call_operand.vmem [shape: bf16[576,128], index: 1, kind: input, shape index: {}]   ;;  %s1677_s0 = inlined_call_operand.vmem [shape: bf16[32,576], index: 0, kind: input, shape index: {}]   ;;  %s1678_s3 = inlined_call_operand.vmem [shape: bf16[128,16], index: 3, kind: input, shape index: {}]   ;;  %s1679_s2 = inlined_call_operand.vmem [shape: f32[1,128], index: 2, kind: input, shape index: {}]   ;;  %s1680_s4 = inlined_call_operand.vmem [shape: bf16[16,128], index: 4, kind: input, shape index: {}]   ;;  %s1681_s6 = inlined_call_operand.vmem [shape: bf16[16,16], index: 6, kind: input, shape index: {}]   ;;  %s1682_s5 = inlined_call_operand.vmem [shape: bf16[16,16], index: 5, kind: input, shape index: {}]   ;;  %s1683_s7 = inlined_call_operand.vmem [shape: f32[2,16,128], index: 7, kind: output, shape index: {}]  }
   0x1   :  { %v1286_v0 = vld [vmem:[%s1676_s1 + $0x40] sm:$0xff]   ;;  %v1290_v4 = vld [vmem:[%s1676_s1 + $0x48] sm:$0xff]   ;;  %v1294_v8 = vld [vmem:[%s1676_s1 + $0x50] sm:$0xff]   ;;  %vm748_vm3 = vcmask 130048   ;;  %vm881_vm4 = vcmask 130112  }
   0x2   :  { %v1287_v1 = vld [vmem:[%s1676_s1] sm:$0xff]   ;;  %1123 = vmatprep.subr.bf16.mxu0 %v1286_v0  ;;  %v1291_v5 = vld [vmem:[%s1676_s1 + $0x8] sm:$0xff]   ;;  %v1295_v9 = vld [vmem:[%s1676_s1 + $0x10] sm:$0xff]  }
   0x3   :  { %v1288_v2 = vld [vmem:[%s1676_s1 + $0xc0] sm:$0xff]   ;;  %1124 = vmatpush3.bf16.msra.mxu0 %v1287_v1  ;;  %v1292_v6 = vld [vmem:[%s1676_s1 + $0xc8] sm:$0xff]   ;;  %v1296_v10 = vld [vmem:[%s1676_s1 + $0xd0] sm:$0xff]  }
   0x4   :  { %v1289_v3 = vld [vmem:[%s1676_s1 + $0x80] sm:$0xff]   ;;  %1151 = vmatprep.subr.bf16.mxu1 %v1288_v2  ;;  %1125 = vmatprep.subr.bf16.mxu0 %v1290_v4  ;;  %v1293_v7 = vld [vmem:[%s1676_s1 + $0x88] sm:$0xff]   ;;  %v1297_v11 = vld [vmem:[%s1676_s1 + $0x90] sm:$0xff]  }
   0x5   :  { %1152 = vmatpush3.bf16.msra.mxu1 %v1289_v3  ;;  %v1298_v12 = vld [vmem:[%s1676_s1 + $0x58] sm:$0xff]   ;;  %v1302_v16 = vld [vmem:[%s1676_s1 + $0x60] sm:$0xff]   ;;  %v1306_v20 = vld [vmem:[%s1676_s1 + $0x68] sm:$0xff]  }
   0x6   :  { %1153 = vmatprep.subr.bf16.mxu1 %v1292_v6  ;;  %v1299_v13 = vld [vmem:[%s1676_s1 + $0x18] sm:$0xff]   ;;  %v1303_v17 = vld [vmem:[%s1676_s1 + $0x20] sm:$0xff]   ;;  %v1307_v21 = vld [vmem:[%s1676_s1 + $0x28] sm:$0xff]  }
   0x7   :  { %1126 = vmatpush3.bf16.msra.mxu0 %v1291_v5  ;;  %v1300_v14 = vld [vmem:[%s1676_s1 + $0xd8] sm:$0xff]   ;;  %v1304_v18 = vld [vmem:[%s1676_s1 + $0xe0] sm:$0xff]   ;;  %v1308_v22 = vld [vmem:[%s1676_s1 + $0xe8] sm:$0xff]  }
   0x8   :  { %1127 = vmatprep.subr.bf16.mxu0 %v1294_v8  ;;  %v1301_v15 = vld [vmem:[%s1676_s1 + $0x98] sm:$0xff]   ;;  %v1305_v19 = vld [vmem:[%s1676_s1 + $0xa0] sm:$0xff]   ;;  %v1309_v23 = vld [vmem:[%s1676_s1 + $0xa8] sm:$0xff]  }
   0x9   :  { %1154 = vmatpush3.bf16.msra.mxu1 %v1293_v7  ;;  %v1310_v24 = vld [vmem:[%s1676_s1 + $0x70] sm:$0xff]   ;;  %v1314_v28 = vld [vmem:[%s1676_s1 + $0x78] sm:$0xff]   ;;  %v1321_v34 = vld [vmem:[%s1676_s1 + $0x100] sm:$0xff]  }
   0xa   :  { %1155 = vmatprep.subr.bf16.mxu1 %v1296_v10  ;;  %v1311_v25 = vld [vmem:[%s1676_s1 + $0x30] sm:$0xff]   ;;  %v1315_v29 = vld [vmem:[%s1676_s1 + $0x38] sm:$0xff]   ;;  %v1324_v36 = vld [vmem:[%s1677_s0 + $0xc] ss:$20 sps:$4 sm:$0xff]  }
   0xb   :  { %1128 = vmatpush3.bf16.msra.mxu0 %v1295_v9  ;;  %v1312_v26 = vld [vmem:[%s1676_s1 + $0xf0] sm:$0xff]   ;;  %v1316_v30 = vld [vmem:[%s1676_s1 + $0xf8] sm:$0xff]   ;;  %v1325_v37 = vld [vmem:[%s1676_s1 + $0x108] sm:$0xff]   ;;  %472 = vmatprep.mubr.bf16.mxu1 %v1324_v36 }
   0xc   :  { %1129 = vmatprep.subr.bf16.mxu0 %v1298_v12  ;;  %v1313_v27 = vld [vmem:[%s1676_s1 + $0xb0] sm:$0xff]   ;;  %v1319_v32 = vld [vmem:[%s1677_s0 + $0x4] ss:$20 sps:$4 sm:$0xff]   ;;  %v1322_v35 = vld [vmem:[%s1677_s0 + $0x8] ss:$20 sps:$4 sm:$0xff]  }
   0xd   :  { %1156 = vmatpush3.bf16.msra.mxu1 %v1297_v11  ;;  %v1317_v31 = vld [vmem:[%s1677_s0] ss:$20 sps:$4 sm:$0xff]   ;;  %v1320_v33 = vld [vmem:[%s1676_s1 + $0xb8] sm:$0xff]   ;;  %423 = vmatprep.mubr.bf16.mxu0 %v1319_v32  ;;  %v1332_v42 = vld [vmem:[%s1677_s0 + $0x30] ss:$20 sps:$4 sm:$0xff]  }
   0xe   :  { %1157 = vmatprep.subr.bf16.mxu1 %v1300_v14  ;;  %v1326_v38 = vld [vmem:[%s1677_s0 + $0x2c] ss:$20 sps:$4 sm:$0xff]   ;;  %v1328_v39 = vld [vmem:[%s1677_s0 + $0x28] ss:$20 sps:$4 sm:$0xff]   ;;  %v1329_v40 = vld [vmem:[%s1676_s1 + $0x110] sm:$0xff]  }
   0xf   :  { %1130 = vmatpush3.bf16.msra.mxu0 %v1299_v13  ;;  %v1330_v41 = vld [vmem:[%s1677_s0 + $0x34] ss:$20 sps:$4 sm:$0xff]   ;;  %v1333_v43 = vld [vmem:[%s1676_s1 + $0x118] sm:$0xff]   ;;  %v1334_v44 = vld [vmem:[%s1677_s0 + $0x10] ss:$20 sps:$4 sm:$0xff]  }
  0x10   :  { %1131 = vmatprep.subr.bf16.mxu0 %v1302_v16  ;;  %v1335_v45 = vld [vmem:[%s1677_s0 + $0x38] ss:$20 sps:$4 sm:$0xff]   ;;  %v1336_v46 = vld [vmem:[%s1678_s3] sm:$0xff]   ;;  %v1338_v49 = vld [vmem:[%s1678_s3 + $0x10] sm:$0xff]  }
  0x11   :  { %1158 = vmatpush3.bf16.msra.mxu1 %v1301_v15  ;;  %v1337_v48 = vld [vmem:[%s1678_s3 + $0x8] sm:$0xff]   ;;  %v1339_v50 = vld [vmem:[%s1678_s3 + $0x18] sm:$0xff]   ;;  %v1340_v51 = vld [vmem:[%s1678_s3 + $0x20] sm:$0xff]  }
  0x12   :  { %1159 = vmatprep.subr.bf16.mxu1 %v1304_v18  ;;  %v1341_v52 = vld [vmem:[%s1678_s3 + $0x28] sm:$0xff]   ;;  %v1342_v53 = vld [vmem:[%s1678_s3 + $0x30] sm:$0xff]   ;;  %v1343_v54 = vld [vmem:[%s1678_s3 + $0x38] sm:$0xff]  }
  0x13   :  { %1132 = vmatpush3.bf16.msra.mxu0 %v1303_v17  ;;  %v1058_v56 = vld [vmem:[%s1679_s2] ss:$0 sm:$0xff] }
  0x14   :  { %1133 = vmatprep.subr.bf16.mxu0 %v1306_v20 }
  0x15   :  { %1160 = vmatpush3.bf16.msra.mxu1 %v1305_v19 }
  0x16   :  { %1161 = vmatprep.subr.bf16.mxu1 %v1308_v22 }
  0x17   :  { %1134 = vmatpush3.bf16.msra.mxu0 %v1307_v21 }
  0x18   :  { %1135 = vmatprep.subr.bf16.mxu0 %v1310_v24 }
  0x19   :  { %1162 = vmatpush3.bf16.msra.mxu1 %v1309_v23 }
  0x1a   :  { %1163 = vmatprep.subr.bf16.mxu1 %v1312_v26 }
  0x1b   :  { %1136 = vmatpush3.bf16.msra.mxu0 %v1311_v25 }
  0x1c   :  { %1137 = vmatprep.subr.bf16.mxu0 %v1314_v28 }
  0x1d   :  { %1164 = vmatpush3.bf16.msra.mxu1 %v1313_v27 }
  0x1e   :  { %1165 = vmatprep.subr.bf16.mxu1 %v1316_v30 }
  0x1f   :  { %1138 = vmatpush3.bf16.msra.mxu0 %v1315_v29 }
  0x20   :  { %1209 = vmatprep.subr.bf16.mxu0 %v1321_v34 }
  0x21   :  { %1166 = vmatpush3.bf16.msra.mxu1 %v1320_v33 }
  0x22   :  { %424 = vmatmul.mubr.bf16.vlgmr.msra.gmra.mrb[0].mxu0 %v1317_v31  ;;  %1221 = vmatprep.subr.bf16.mxu1 %v1355_v47 }
  0x23   :  { %1210 = vmatpush3.bf16.msra.mxu0 %v1321_v34  ;;  %431 = vmatprep.mubr.bf16.mxu0 %v1326_v38 }
  0x24   :  { %473 = vmatmul.mubr.bf16.vlgmr.msra.gmra.mrb[0].mxu1 %v1322_v35  ;;  %1211 = vmatprep.subr.bf16.mxu0 %v1325_v37 }
  0x25   :  { %480 = vmatprep.mubr.bf16.mxu1 %v1330_v41  ;;  %1222 = vmatpush3.bf16.msra.mxu1 %v1336_v46 }
  0x26   :  { %1223 = vmatprep.subr.bf16.mxu1 %v1355_v47 }
  0x27   :  { %1212 = vmatpush3.bf16.msra.mxu0 %v1325_v37 }
  0x28   :  { %1213 = vmatprep.subr.bf16.mxu0 %v1329_v40 }
  0x29   :  { %1224 = vmatpush3.bf16.msra.mxu1 %v1337_v48 }
  0x2a   :  { %432 = vmatmul.mubr.bf16.gmra.mrb[4].mxu0 %v1328_v39  ;;  %1225 = vmatprep.subr.bf16.mxu1 %v1355_v47 }
  0x2b   :  { %1217 = vmatprep.mubr.msk.bf16.mxu0 %vm384_vm0, %v1334_v44  ;;  %1214 = vmatpush3.bf16.msra.mxu0 %v1329_v40 }
  0x2c   :  { %481 = vmatmul.mubr.bf16.gmra.mrb[4].mxu1 %v1332_v42  ;;  %1215 = vmatprep.subr.bf16.mxu0 %v1333_v43 }
  0x2d   :  { %1226 = vmatpush3.bf16.msra.mxu1 %v1338_v49  ;;  %1237 = vmatprep.mubr.msk.bf16.mxu1 %vm1356_vm1, %v1355_v47 }
  0x2e   :  { %1227 = vmatprep.subr.bf16.mxu1 %v1355_v47 }
  0x2f   :  { %1216 = vmatpush3.bf16.msra.mxu0 %v1333_v43 }
  0x30   :  { %1241 = vmatprep.subr.bf16.mxu0 %v1355_v47 }
  0x31   :  { %1228 = vmatpush3.bf16.msra.mxu1 %v1339_v50 }
  0x32   :  { %1218 = vmatmul.mubr.msk.bf16.vlgmr.msra.gmra.mrb[8].mxu0 %vm384_vm0, %v1335_v45  ;;  %1229 = vmatprep.subr.bf16.mxu1 %v1355_v47 }
  0x33   :  { %1242 = vmatpush3.bf16.msra.mxu0 %v1336_v46  ;;  %1257 = vmatprep.mubr.msk.bf16.mxu0 %vm1356_vm1, %v1355_v47 }
  0x34   :  { %1243 = vmatprep.subr.bf16.mxu0 %v1355_v47 }
  0x35   :  { %1230 = vmatpush3.bf16.msra.mxu1 %v1340_v51 }
  0x36   :  { %1231 = vmatprep.subr.bf16.mxu1 %v1355_v47 }
  0x37   :  { %1244 = vmatpush3.bf16.msra.mxu0 %v1337_v48 }
  0x38   :  { %1245 = vmatprep.subr.bf16.mxu0 %v1355_v47 }
  0x39   :  { %1232 = vmatpush3.bf16.msra.mxu1 %v1341_v52 }
  0x3a   :  { %1233 = vmatprep.subr.bf16.mxu1 %v1355_v47 }
  0x3b   :  { %1246 = vmatpush3.bf16.msra.mxu0 %v1338_v49 }
  0x3c   :  { %1247 = vmatprep.subr.bf16.mxu0 %v1355_v47 }
  0x3d   :  { %1234 = vmatpush3.bf16.msra.mxu1 %v1342_v53 }
  0x3e   :  { %1235 = vmatprep.subr.bf16.mxu1 %v1355_v47 }
  0x3f   :  { %1248 = vmatpush3.bf16.msra.mxu0 %v1339_v50 }
  0x40   :  { %1249 = vmatprep.subr.bf16.mxu0 %v1355_v47 }
  0x41   :  { %1236 = vmatpush3.bf16.msra.mxu1 %v1343_v54 }
  0x42   :  { %1261 = vmatprep.subr.bf16.mxu1 %v1355_v47 }
  0x43   :  { %1250 = vmatpush3.bf16.msra.mxu0 %v1340_v51 }
  0x44   :  { %1251 = vmatprep.subr.bf16.mxu0 %v1355_v47 }
  0x47   :  { %1252 = vmatpush3.bf16.msra.mxu0 %v1341_v52 }
  0x48   :  { %1253 = vmatprep.subr.bf16.mxu0 %v1355_v47 }
  0x4b   :  { %1254 = vmatpush3.bf16.msra.mxu0 %v1342_v53 }
  0x4c   :  { %1255 = vmatprep.subr.bf16.mxu0 %v1355_v47 }
  0x4f   :  { %1256 = vmatpush3.bf16.msra.mxu0 %v1343_v54 }
  0xf5   :  { %v1139_v55 = vpop.f32.mrb[0].mxu0 }
  0xf6   :  { %v1140_v57 = vpop.f32.mrb[1].mxu0 }
  0xf7   :  { %v1141_v58 = vadd.f32 %v1140_v57, %v1139_v55  ;;  %v1142_v59 = vpop.f32.mrb[2].mxu0  ;;  %v1167_v60 = vpop.f32.mrb[0].mxu1 }
  0xf8   :  { %v1143_v61 = vpop.f32.mrb[3].mxu0  ;;  %v1168_v0 = vpop.f32.mrb[1].mxu1 }
  0xf9   :  { %v426_v62 = vadd.f32 %v1141_v58, %v1058_v56  ;;  %v1144_v63 = vadd.f32 %v1143_v61, %v1142_v59  ;;  %v1169_v1 = vadd.f32 %v1168_v0, %v1167_v60  ;;  %v1170_v2 = vpop.f32.mrb[2].mxu1 }
  0xfa   :  { %v1171_v4 = vpop.f32.mrb[3].mxu1 }
  0xfb   :  { %v429_v3 = vadd.f32 %v1144_v63, %v1058_v56  ;;  %v1172_v5 = vadd.f32 %v1171_v4, %v1170_v2  ;;  %v475_v6 = vadd.f32 %v1169_v1, %v426_v62 }
  0xfd   :  { %v1145_v7 = vpop.f32.mrb[4].mxu0  ;;  %v478_v9 = vadd.f32 %v1172_v5, %v429_v3 }
  0xfe   :  { %v1146_v8 = vpop.f32.mrb[5].mxu0 }
  0xff   :  { %v1147_v10 = vadd.f32 %v1146_v8, %v1145_v7  ;;  %v1148_v11 = vpop.f32.mrb[6].mxu0  ;;  %v1173_v12 = vpop.f32.mrb[4].mxu1 }
 0x100   :  { %v1149_v13 = vpop.f32.mrb[7].mxu0  ;;  %v1174_v16 = vpop.f32.mrb[5].mxu1 }
 0x101   :  { %v434_v14 = vadd.f32 %v1147_v10, %v1058_v56  ;;  %v1150_v15 = vadd.f32 %v1149_v13, %v1148_v11  ;;  %v1175_v17 = vadd.f32 %v1174_v16, %v1173_v12  ;;  %v1176_v18 = vpop.f32.mrb[6].mxu1 }
 0x102   :  { %v1177_v20 = vpop.f32.mrb[7].mxu1 }
 0x103   :  { %v437_v19 = vadd.f32 %v1150_v15, %v1058_v56  ;;  %v1178_v21 = vadd.f32 %v1177_v20, %v1176_v18  ;;  %v483_v22 = vadd.f32 %v1175_v17, %v434_v14  ;;  %v1344_v15 = vld [vmem:[%s1680_s4] sm:$0xff]  }
 0x105   :  { %v1219_v23 = vpop.f32.mrb[8].mxu0  ;;  %v486_v24 = vadd.f32 %v1178_v21, %v437_v19 }
 0x106   :  { %v532_v25 = vadd.f32 %v1219_v23, %v483_v22  ;;  %v523_v26 = vpop.f32.mrb[9].mxu0 }
 0x107   :  { %v524_v27 = vadd.f32 %v523_v26, %v475_v6  ;;  %v1220_v28 = vpop.f32.mrb[10].mxu0 }
 0x108   :  { %v535_v29 = vadd.f32 %v1220_v28, %v486_v24  ;;  %v526_v30 = vpop.f32.mrb[11].mxu0  ;;  %v1584_v32 = vmax.f32 %v532_v25, 0.0 }
 0x109   :  { %v527_v31 = vadd.f32 %v526_v30, %v478_v9  ;;  %v1588_v34 = vmax.f32 %v524_v27, 0.0 }
 0x10a   :  { %v1586_v33 = vmax.f32 %v535_v29, 0.0 }
 0x10b   :  { %v1590_v35 = vmax.f32 %v527_v31, 0.0 }
 0x10c   :  { %v549_v36 = vadd.f32 %v1586_v33, %v1584_v32  ;;  %v566_v37 = vmax.f32 %v1584_v32, %v1586_v33 }
 0x10d   :  { %v542_v38 = vadd.f32 %v1590_v35, %v1588_v34  ;;  %v559_v39 = vmax.f32 %v1588_v34, %v1590_v35 }
 0x10e   :  { %v550_v40 = vrot.slane %v549_v36, 4  ;;  %v567_v41 = vrot.slane %v566_v37, 4 }
 0x10f   :  { %v543_v42 = vrot.slane %v542_v38, 4  ;;  %v560_v43 = vrot.slane %v559_v39, 4 }
 0x110   :  { %v551_v44 = vadd.f32 %v550_v40, %v549_v36  ;;  %v568_v45 = vmax.f32 %v566_v37, %v567_v41  ;;  %v802_v41 = vlaneseq }
 0x111   :  { %v544_v46 = vadd.f32 %v543_v42, %v542_v38  ;;  %v561_v48 = vmax.f32 %v559_v39, %v560_v43  ;;  %v1357_v39 = vmov 1966171168  }
 0x112   :  { %v552_v49 = vrot.slane %v551_v44, 2  ;;  %v569_v50 = vrot.slane %v568_v45, 2  ;;  %v800_v40 = vunpack.c.l.s4 %v1357_v39  ;;  %v1611_v43 = vshrl.u32 %v802_v41, 7 }
 0x113   :  { %v545_v51 = vrot.slane %v544_v46, 2  ;;  %v562_v52 = vrot.slane %v561_v48, 2 }
 0x114   :  { %v553_v53 = vadd.f32 %v552_v49, %v551_v44  ;;  %v570_v54 = vmax.f32 %v568_v45, %v569_v50  ;;  %v801_v42 = vunpack.c.0.s8 %v800_v40 }
 0x115   :  { %v546_v55 = vadd.f32 %v545_v51, %v544_v46  ;;  %v563_v56 = vmax.f32 %v561_v48, %v562_v52  ;;  %v1615_v48 = vsub.s32 0, %v1611_v43 }
 0x116   :  { %v554_v57 = vrot.slane %v553_v53, 1  ;;  %v571_v58 = vrot.slane %v570_v54, 1  ;;  %v804_v44 = vsub.s32 %v801_v42, %v1611_v43 }
 0x117   :  { %v547_v59 = vrot.slane %v546_v55, 1  ;;  %v564_v60 = vrot.slane %v563_v56, 1 }
 0x118   :  { %v555_v61 = vadd.f32 %v554_v57, %v553_v53  ;;  %v572_v62 = vmax.f32 %v570_v54, %v571_v58 }
 0x119   :  { %v548_v63 = vadd.f32 %v547_v59, %v546_v55  ;;  %v565_v0 = vmax.f32 %v563_v56, %v564_v60 }
 0x11a   :  { %v558_v1 = vmul.f32 0.0625, %v555_v61  ;;  %v689_v2 = vpack.c.bf16 %v572_v62, %v572_v62 }
 0x11b   :  { %v557_v3 = vmul.f32 0.0625, %v548_v63  ;;  %v688_v4 = vpack.c.bf16 %v565_v0, %v565_v0 }
 0x11c   :  { %v590_v5 = vpack.c.bf16 %v558_v1, %v558_v1  ;;  %v693_v6 = vunpack.c.l.b16 %v689_v2 }
 0x11d   :  { %v589_v7 = vpack.c.bf16 %v557_v3, %v557_v3  ;;  %v692_v8 = vunpack.c.l.b16 %v688_v4 }
 0x11e   :  { %v594_v9 = vunpack.c.l.b16 %v590_v5 }
 0x11f   :  { %v593_v10 = vunpack.c.l.b16 %v589_v7  ;;  %v694_v11 = vsel %vm595_vm2, %v693_v6, %v692_v8 }
 0x120   :  { %v695_v12 = vpack.c.b16 %v694_v11, %v694_v11 }
 0x121   :  { %v596_v13 = vsel %vm595_vm2, %v594_v9, %v593_v10 }
 0x122   :  { %1258 = vmatmul.mubr.bf16.vlgmr.msra.gmra.mrb[12].mxu0 %v695_v12  ;;  %v597_v14 = vpack.c.b16 %v596_v13, %v596_v13 }
 0x124   :  { %1238 = vmatmul.mubr.bf16.vlgmr.msra.gmra.mrb[8].mxu1 %v597_v14 }
 0x125   :  { %1263 = vmatprep.mubr.msk.bf16.mxu1 %vm1356_vm1, %v1355_v47  ;;  %1262 = vmatpush3.bf16.msra.mxu1 %v1344_v15 }
 0x126   :  { %1267 = vmatprep.subr.bf16.mxu1 %v1355_v47 }
 0x1f5   :  { %v731_v16 = vpop.f32.mrb[12].mxu0 }
 0x1f6   :  { %v1259_v17 = vpop.f32.mrb[13].mxu0  ;;  %v737_v20 = vmax.f32 %v731_v16, 0.0 }
 0x1f7   :  { %v681_v18 = vpop.f32.mrb[8].mxu1  ;;  %v734_v19 = vpop.f32.mrb[14].mxu0 }
 0x1f8   :  { %v687_v21 = vmax.f32 %v681_v18, 0.0  ;;  %v1239_v22 = vpop.f32.mrb[9].mxu1  ;;  %v1260_v23 = vpop.f32.mrb[15].mxu0 }
 0x1f9   :  { %v684_v24 = vpop.f32.mrb[10].mxu1 }
 0x1fa   :  { %v738_v25 = vadd.f32 %v737_v20, %v687_v21  ;;  %v1240_v26 = vpop.f32.mrb[11].mxu1  ;;  %v1346_v20 = vld [vmem:[%s1682_s5] sm:$0xff]  }
 0x1fc   :  { %v739_v27 = vpack.c.bf16 %v738_v25, %v738_v25 }
 0x1fe   :  { %1264 = vmatmul.mubr.msk.bf16.vlgmr.msra.gmra.mrb[12].mxu1 %vm748_vm3, %v739_v27 }
 0x1ff   :  { %1269 = vmatprep.mubr.msk.bf16.mxu1 %vm1356_vm1, %v1355_v47 }
 0x2d1   :  { %v786_v28 = vpop.f32.mrb[12].mxu1 }
 0x2d2   :  { %v1117_v29 = vmul.f32 -1.442695, %v786_v28  ;;  %v1265_v30 = vpop.f32.mrb[13].mxu1 }
 0x2d3   :  { %v789_v31 = vpop.f32.mrb[14].mxu1 }
 0x2d4   :  { %1347 = vpow2.f32 %v1117_v29  ;;  %v1266_v36 = vpop.f32.mrb[15].mxu1 }
 0x2de   :  { %v1348_v37 = vpop.eup %1347 }
 0x2df   :  { %v795_v38 = vadd.f32 1.0, %v1348_v37 }
 0x2e1   :  { %1349 = vrcp.f32 %v795_v38 }
 0x2eb   :  { %v1350_v45 = vpop.eup %1349 }
 0x2ec   :  { %v805_v46 = vrot.slane %v1350_v45, %v804_v44 }
 0x2ee   :  { %v813_v49 = vrot.slane %v805_v46, %v804_v44  ;;  %v806_v50 = vcombine.high %v805_v46, %v805_v46 }
 0x2f0   :  { %v824_v51 = vrot.slane %v813_v49, %v1615_v48  ;;  %v820_v52 = vrot.slane %v806_v50, %v804_v44 }
 0x2f2   :  { %v1619_v53 = vmul.f32 %v824_v51, %v1588_v34  ;;  %v828_v54 = vrot.slane %v820_v52, %v1615_v48  ;;  %v1628_v56 = vmul.f32 %v824_v51, %v1590_v35  ;;  %v871_v34 = vand.u32 127, %v802_v41 }
 0x2f3   :  { %v1037_v51 = vsub.s32 1, %v1611_v43 }
 0x2f4   :  { %848 = vmax.xlane.f32.xlu0 %v1619_v53  ;;  %v1624_v55 = vmul.f32 %v828_v54, %v1584_v32  ;;  %v1632_v57 = vmul.f32 %v828_v54, %v1586_v33  ;;  %v1345_v32 = vld [vmem:[%s1681_s6] sm:$0xff]   ;;  %v876_v35 = vadd.s32 4294967288, %v871_v34  ;;  %v874_v60 = vsub.s32 %v871_v34, %v1611_v43 }
 0x2f5   :  { %1268 = vmatpush3.bf16.msra.mxu1 %v1345_v32 }
 0x2f6   :  { %852 = vmax.xlane.f32.xlu1 %v1624_v55  ;;  %1273 = vmatprep.subr.bf16.mxu1 %v1355_v47  ;;  %v879_v61 = vsub.s32 %v876_v35, %v1611_v43 }
 0x2f8   :  { %850 = vmax.xlane.f32.xlu0 %v1628_v56 }
 0x2fa   :  { %854 = vmax.xlane.f32.xlu1 %v1632_v57 }
 0x2fc   :  { %835 = vadd.xlane.f32.xlu0 %v1619_v53 }
 0x2fe   :  { %837 = vadd.xlane.f32.xlu1 %v1628_v56 }
 0x300   :  { %839 = vadd.xlane.f32.xlu0 %v1624_v55 }
 0x302   :  { %841 = vadd.xlane.f32.xlu1 %v1632_v57 }
 0x381   :  { %v849_v33 = vpop.xlane.xlu0 %848 }
 0x383   :  { %v853_v58 = vpop.xlane.xlu1 %852 }
 0x385   :  { %v851_v59 = vpop.xlane.xlu0 %850 }
 0x386   :  { %v860_v62 = vpack.c.bf16 %v851_v59, %v849_v33 }
 0x387   :  { %v855_v63 = vpop.xlane.xlu1 %854 }
 0x388   :  { %v866_v0 = vunpack.c.l.b16 %v860_v62  ;;  %v867_v1 = vunpack.c.h.b16 %v860_v62  ;;  %v861_v2 = vpack.c.bf16 %v855_v63, %v853_v58 }
 0x389   :  { %v836_v3 = vpop.xlane.xlu0 %835 }
 0x38a   :  { %v875_v4 = vrot.slane %v866_v0, %v874_v60  ;;  %v880_v5 = vrot.slane %v867_v1, %v879_v61  ;;  %v868_v6 = vunpack.c.l.b16 %v861_v2  ;;  %v869_v7 = vunpack.c.h.b16 %v861_v2 }
 0x38b   :  { %v838_v8 = vpop.xlane.xlu1 %837  ;;  %v844_v11 = vmul.f32 0.0078125, %v836_v3 }
 0x38c   :  { %v886_v9 = vrot.slane %v868_v6, %v874_v60  ;;  %v890_v10 = vrot.slane %v869_v7, %v879_v61  ;;  %v845_v12 = vmul.f32 0.0078125, %v838_v8  ;;  %v882_v14 = vsel %vm881_vm4, %v880_v5, %v875_v4 }
 0x38d   :  { %v840_v13 = vpop.xlane.xlu0 %839 }
 0x38e   :  { %v891_v15 = vsel %vm881_vm4, %v890_v10, %v886_v9  ;;  %v856_v16 = vpack.c.bf16 %v845_v12, %v844_v11  ;;  %v846_v18 = vmul.f32 0.0078125, %v840_v13 }
 0x38f   :  { %v892_v17 = vsel %vm595_vm2, %v891_v15, %v882_v14  ;;  %v842_v19 = vpop.xlane.xlu1 %841 }
 0x390   :  { %v893_v21 = vpack.c.b16 %v892_v17, %v892_v17  ;;  %v945_v22 = vunpack.c.l.b16 %v856_v16  ;;  %v946_v23 = vunpack.c.h.b16 %v856_v16  ;;  %v847_v24 = vmul.f32 0.0078125, %v842_v19 }
 0x392   :  { %v857_v25 = vpack.c.bf16 %v847_v24, %v846_v18  ;;  %1270 = vmatmul.mubr.msk.bf16.vlgmr.msra.gmra.mrb[16].mxu1 %vm748_vm3, %v893_v21  ;;  %v952_v26 = vrot.slane %v945_v22, %v874_v60  ;;  %v956_v27 = vrot.slane %v946_v23, %v879_v61 }
 0x393   :  { %1274 = vmatpush3.bf16.msra.mxu1 %v1346_v20  ;;  %1275 = vmatprep.mubr.msk.bf16.mxu1 %vm1356_vm1, %v1355_v47 }
 0x394   :  { %v947_v28 = vunpack.c.l.b16 %v857_v25  ;;  %v948_v29 = vunpack.c.h.b16 %v857_v25  ;;  %v957_v36 = vsel %vm881_vm4, %v956_v27, %v952_v26 }
 0x396   :  { %v961_v30 = vrot.slane %v947_v28, %v874_v60  ;;  %v965_v31 = vrot.slane %v948_v29, %v879_v61 }
 0x398   :  { %v966_v37 = vsel %vm881_vm4, %v965_v31, %v961_v30 }
 0x399   :  { %v967_v38 = vsel %vm595_vm2, %v966_v37, %v957_v36 }
 0x39a   :  { %v968_v39 = vpack.c.b16 %v967_v38, %v967_v38 }
 0x39e   :  { %1276 = vmatmul.mubr.msk.bf16.vlgmr.msra.gmra.mrb[16].mxu1 %vm748_vm3, %v968_v39 }
 0x471   :  { %v1012_v40 = vpop.f32.mrb[16].mxu1 }
 0x472   :  { %v1122_v41 = vmul.f32 -1.442695, %v1012_v40  ;;  %v1277_v42 = vpop.f32.mrb[17].mxu1 }
 0x473   :  { %v1015_v44 = vpop.f32.mrb[18].mxu1 }
 0x474   :  { %1351 = vpow2.f32 %v1122_v41  ;;  %v1278_v47 = vpop.f32.mrb[19].mxu1 }
 0x47e   :  { %v1352_v45 = vpop.eup %1351 }
 0x47f   :  { %v1021_v46 = vadd.f32 1.0, %v1352_v45 }
 0x481   :  { %1353 = vrcp.f32 %v1021_v46 }
 0x48b   :  { %v1354_v49 = vpop.eup %1353 }
 0x48c   :  { %v1027_v50 = vrot.slane %v1354_v49, %v1615_v48  ;;  %v1038_v52 = vrot.slane %v1354_v49, %v1037_v51 }
 0x48e   :  { %1033 = vbcast.lane.b32.xlu1 %v1027_v50, 264  ;;  %1029 = vbcast.lane.b32.xlu0 %v1027_v50, 256 }
 0x492   :  { %1040 = vbcast.lane.b32.xlu1 %v1038_v52, 256 }
 0x496   :  { %1044 = vbcast.lane.b32.xlu1 %v1038_v52, 264 }
 0x500   :  { %v1034_v54 = vpop.permute.xlu1 %1033  ;;  %v1030_v32 = vpop.permute.xlu0 %1029 }
 0x501   :  { %v1047_v34 = vmul.f32 %v1034_v54, %v1628_v56  ;;  %v1046_v33 = vmul.f32 %v1030_v32, %v1619_v53 }
 0x503   :  { %1051 = vst [vmem:[%s1683_s7 + $0x8] sm:$0xff] %v1047_v34  ;;  %1050 = vst [vmem:[%s1683_s7] sm:$0xff] %v1046_v33 }
 0x504   :  { %v1041_v43 = vpop.permute.xlu1 %1040 }
 0x505   :  { %v1048_v48 = vmul.f32 %v1041_v43, %v1624_v55 }
 0x507   :  { %1052 = vst [vmem:[%s1683_s7 + $0x10] sm:$0xff] %v1048_v48 }
 0x508   :  { %v1045_v35 = vpop.permute.xlu1 %1044 }
 0x509   :  { %v1049_v56 = vmul.f32 %v1045_v35, %v1632_v57 }
 0x50b   :  { %1053 = vst [vmem:[%s1683_s7 + $0x18] sm:$0xff] %v1049_v56 }

// kernel: autoencoder_forward.9
= control target key start
LH: loop header
LB: loop body
LE: loop exit
PB: predicated region body
PF: predicated region fallthrough
CT: control target
= control target key end

     0   :  { %s2331_s1 = inlined_call_operand.vmem [shape: bf16[1152,256], index: 1, kind: input, shape index: {}]   ;;  %s2332_s0 = inlined_call_operand.vmem [shape: bf16[32,1152], index: 0, kind: input, shape index: {}]   ;;  %s2333_s2 = inlined_call_operand.vmem [shape: f32[1,256], index: 2, kind: input, shape index: {}]   ;;  %s2334_s3 = inlined_call_operand.vmem [shape: f32[32,256], index: 3, kind: input, shape index: {}]   ;;  %s2335_s4 = inlined_call_operand.vmem [shape: f32[32,256], index: 4, kind: output, shape index: {}]  }
   0x1   :  { %v1526_v0 = vld [vmem:[%s2331_s1 + $0x4] ss:$8 sps:$4 sm:$0xff]   ;;  %v1530_v2 = vld [vmem:[%s2331_s1] ss:$8 sps:$4 sm:$0xff]   ;;  %v1532_v4 = vld [vmem:[%s2331_s1 + $0x14] ss:$8 sps:$4 sm:$0xff]  }
   0x2   :  { %v1528_v1 = vld [vmem:[%s2331_s1 + $0x204] ss:$8 sps:$4 sm:$0xff]   ;;  %1006 = vmatprep.subr.bf16.mxu1 %v1526_v0  ;;  %v1531_v3 = vld [vmem:[%s2331_s1 + $0x200] ss:$8 sps:$4 sm:$0xff]   ;;  %v1534_v5 = vld [vmem:[%s2331_s1 + $0x214] ss:$8 sps:$4 sm:$0xff]  }
   0x3   :  { %1112 = vmatprep.subr.bf16.mxu0 %v1528_v1  ;;  %1007 = vmatpush1.bf16.msra.mxu1 %v1530_v2  ;;  %v1536_v6 = vld [vmem:[%s2331_s1 + $0x10] ss:$8 sps:$4 sm:$0xff]   ;;  %v1538_v8 = vld [vmem:[%s2331_s1 + $0x24] ss:$8 sps:$4 sm:$0xff]   ;;  %v1542_v10 = vld [vmem:[%s2331_s1 + $0x20] ss:$8 sps:$4 sm:$0xff]  }
   0x4   :  { %1113 = vmatpush1.bf16.msra.mxu0 %v1531_v3  ;;  %1008 = vmatprep.subr.bf16.mxu1 %v1532_v4  ;;  %v1537_v7 = vld [vmem:[%s2331_s1 + $0x210] ss:$8 sps:$4 sm:$0xff]   ;;  %v1540_v9 = vld [vmem:[%s2331_s1 + $0x224] ss:$8 sps:$4 sm:$0xff]   ;;  %v1543_v11 = vld [vmem:[%s2331_s1 + $0x220] ss:$8 sps:$4 sm:$0xff]  }
   0x5   :  { %1114 = vmatprep.subr.bf16.mxu0 %v1534_v5  ;;  %v1544_v12 = vld [vmem:[%s2331_s1 + $0x34] ss:$8 sps:$4 sm:$0xff]   ;;  %v1548_v14 = vld [vmem:[%s2331_s1 + $0x30] ss:$8 sps:$4 sm:$0xff]   ;;  %v1550_v16 = vld [vmem:[%s2331_s1 + $0x44] ss:$8 sps:$4 sm:$0xff]  }
   0x6   :  { %v1546_v13 = vld [vmem:[%s2331_s1 + $0x234] ss:$8 sps:$4 sm:$0xff]   ;;  %v1549_v15 = vld [vmem:[%s2331_s1 + $0x230] ss:$8 sps:$4 sm:$0xff]   ;;  %v1552_v17 = vld [vmem:[%s2331_s1 + $0x244] ss:$8 sps:$4 sm:$0xff]  }
   0x7   :  { %1009 = vmatpush1.bf16.msra.mxu1 %v1536_v6  ;;  %v1554_v18 = vld [vmem:[%s2331_s1 + $0x40] ss:$8 sps:$4 sm:$0xff]   ;;  %v1556_v20 = vld [vmem:[%s2331_s1 + $0x54] ss:$8 sps:$4 sm:$0xff]   ;;  %v1560_v22 = vld [vmem:[%s2331_s1 + $0x50] ss:$8 sps:$4 sm:$0xff]  }
   0x8   :  { %1115 = vmatpush1.bf16.msra.mxu0 %v1537_v7  ;;  %1010 = vmatprep.subr.bf16.mxu1 %v1538_v8  ;;  %v1555_v19 = vld [vmem:[%s2331_s1 + $0x240] ss:$8 sps:$4 sm:$0xff]   ;;  %v1558_v21 = vld [vmem:[%s2331_s1 + $0x254] ss:$8 sps:$4 sm:$0xff]   ;;  %v1561_v23 = vld [vmem:[%s2331_s1 + $0x250] ss:$8 sps:$4 sm:$0xff]  }
   0x9   :  { %1116 = vmatprep.subr.bf16.mxu0 %v1540_v9  ;;  %v1562_v24 = vld [vmem:[%s2331_s1 + $0x64] ss:$8 sps:$4 sm:$0xff]   ;;  %v1566_v26 = vld [vmem:[%s2331_s1 + $0x60] ss:$8 sps:$4 sm:$0xff]   ;;  %v1568_v28 = vld [vmem:[%s2331_s1 + $0x74] ss:$8 sps:$4 sm:$0xff]  }
   0xa   :  { %v1564_v25 = vld [vmem:[%s2331_s1 + $0x264] ss:$8 sps:$4 sm:$0xff]   ;;  %v1567_v27 = vld [vmem:[%s2331_s1 + $0x260] ss:$8 sps:$4 sm:$0xff]   ;;  %v1570_v29 = vld [vmem:[%s2331_s1 + $0x274] ss:$8 sps:$4 sm:$0xff]  }
   0xb   :  { %1011 = vmatpush1.bf16.msra.mxu1 %v1542_v10  ;;  %v1572_v30 = vld [vmem:[%s2331_s1 + $0x70] ss:$8 sps:$4 sm:$0xff]   ;;  %v1574_v32 = vld [vmem:[%s2331_s1 + $0x84] ss:$8 sps:$4 sm:$0xff]   ;;  %v1578_v34 = vld [vmem:[%s2331_s1 + $0x80] ss:$8 sps:$4 sm:$0xff]  }
   0xc   :  { %1117 = vmatpush1.bf16.msra.mxu0 %v1543_v11  ;;  %1012 = vmatprep.subr.bf16.mxu1 %v1544_v12  ;;  %v1573_v31 = vld [vmem:[%s2331_s1 + $0x270] ss:$8 sps:$4 sm:$0xff]   ;;  %v1576_v33 = vld [vmem:[%s2331_s1 + $0x284] ss:$8 sps:$4 sm:$0xff]   ;;  %v1579_v35 = vld [vmem:[%s2331_s1 + $0x280] ss:$8 sps:$4 sm:$0xff]  }
   0xd   :  { %1118 = vmatprep.subr.bf16.mxu0 %v1546_v13  ;;  %v1580_v36 = vld [vmem:[%s2331_s1 + $0x94] ss:$8 sps:$4 sm:$0xff]   ;;  %v1584_v38 = vld [vmem:[%s2331_s1 + $0x90] ss:$8 sps:$4 sm:$0xff]   ;;  %v1586_v40 = vld [vmem:[%s2331_s1 + $0xa4] ss:$8 sps:$4 sm:$0xff]  }
   0xe   :  { %v1582_v37 = vld [vmem:[%s2331_s1 + $0x294] ss:$8 sps:$4 sm:$0xff]   ;;  %v1585_v39 = vld [vmem:[%s2331_s1 + $0x290] ss:$8 sps:$4 sm:$0xff]   ;;  %v1588_v41 = vld [vmem:[%s2331_s1 + $0x2a4] ss:$8 sps:$4 sm:$0xff]  }
   0xf   :  { %1013 = vmatpush1.bf16.msra.mxu1 %v1548_v14  ;;  %v1590_v42 = vld [vmem:[%s2331_s1 + $0xa0] ss:$8 sps:$4 sm:$0xff]   ;;  %v1592_v44 = vld [vmem:[%s2331_s1 + $0xb4] ss:$8 sps:$4 sm:$0xff]   ;;  %v1596_v46 = vld [vmem:[%s2331_s1 + $0xb0] ss:$8 sps:$4 sm:$0xff]  }
  0x10   :  { %1119 = vmatpush1.bf16.msra.mxu0 %v1549_v15  ;;  %1014 = vmatprep.subr.bf16.mxu1 %v1550_v16  ;;  %v1591_v43 = vld [vmem:[%s2331_s1 + $0x2a0] ss:$8 sps:$4 sm:$0xff]   ;;  %v1594_v45 = vld [vmem:[%s2331_s1 + $0x2b4] ss:$8 sps:$4 sm:$0xff]   ;;  %v1597_v47 = vld [vmem:[%s2331_s1 + $0x2b0] ss:$8 sps:$4 sm:$0xff]  }
  0x11   :  { %1120 = vmatprep.subr.bf16.mxu0 %v1552_v17  ;;  %v1624_v48 = vld [vmem:[%s2332_s0 + $0x4] ss:$36 sps:$4 sm:$0xff]   ;;  %v1630_v51 = vld [vmem:[%s2332_s0 + $0x14] ss:$36 sps:$4 sm:$0xff]  }
  0x12   :  { %v1598_v49 = vld [vmem:[%s2331_s1 + $0xc4] ss:$8 sps:$4 sm:$0xff]   ;;  %1038 = vmatprep.mubr.bf16.mxu1 %v1624_v48  ;;  %v1602_v52 = vld [vmem:[%s2331_s1 + $0xc0] ss:$8 sps:$4 sm:$0xff]   ;;  %v1604_v54 = vld [vmem:[%s2331_s1 + $0xd4] ss:$8 sps:$4 sm:$0xff]   ;;  %1144 = vmatprep.mubr.bf16.mxu0 %v1630_v51 }
  0x13   :  { %1015 = vmatpush1.bf16.msra.mxu1 %v1554_v18  ;;  %v1600_v50 = vld [vmem:[%s2331_s1 + $0x2c4] ss:$8 sps:$4 sm:$0xff]   ;;  %v1603_v53 = vld [vmem:[%s2331_s1 + $0x2c0] ss:$8 sps:$4 sm:$0xff]   ;;  %v1606_v55 = vld [vmem:[%s2331_s1 + $0x2d4] ss:$8 sps:$4 sm:$0xff]  }
  0x14   :  { %1121 = vmatpush1.bf16.msra.mxu0 %v1555_v19  ;;  %1016 = vmatprep.subr.bf16.mxu1 %v1556_v20  ;;  %v1608_v56 = vld [vmem:[%s2331_s1 + $0xd0] ss:$8 sps:$4 sm:$0xff]   ;;  %v1610_v58 = vld [vmem:[%s2331_s1 + $0xe4] ss:$8 sps:$4 sm:$0xff]   ;;  %v1614_v60 = vld [vmem:[%s2331_s1 + $0xe0] ss:$8 sps:$4 sm:$0xff]  }
  0x15   :  { %1122 = vmatprep.subr.bf16.mxu0 %v1558_v21  ;;  %v1609_v57 = vld [vmem:[%s2331_s1 + $0x2d0] ss:$8 sps:$4 sm:$0xff]   ;;  %v1612_v59 = vld [vmem:[%s2331_s1 + $0x2e4] ss:$8 sps:$4 sm:$0xff]   ;;  %v1615_v61 = vld [vmem:[%s2331_s1 + $0x2e0] ss:$8 sps:$4 sm:$0xff]  }
  0x16   :  { %v1616_v62 = vld [vmem:[%s2331_s1 + $0xf4] ss:$8 sps:$4 sm:$0xff]   ;;  %v1620_v0 = vld [vmem:[%s2331_s1 + $0xf0] ss:$8 sps:$4 sm:$0xff]   ;;  %v1627_v2 = vld [vmem:[%s2331_s1 + $0x104] ss:$8 sps:$4 sm:$0xff]  }
  0x17   :  { %1017 = vmatpush1.bf16.msra.mxu1 %v1560_v22  ;;  %v1618_v63 = vld [vmem:[%s2331_s1 + $0x2f4] ss:$8 sps:$4 sm:$0xff]   ;;  %v1621_v1 = vld [vmem:[%s2331_s1 + $0x2f0] ss:$8 sps:$4 sm:$0xff]   ;;  %v1633_v3 = vld [vmem:[%s2331_s1 + $0x304] ss:$8 sps:$4 sm:$0xff]  }
  0x18   :  { %1123 = vmatpush1.bf16.msra.mxu0 %v1561_v23  ;;  %1018 = vmatprep.subr.bf16.mxu1 %v1562_v24  ;;  %v1622_v4 = vld [vmem:[%s2332_s0] ss:$36 sps:$4 sm:$0xff]   ;;  %v1628_v6 = vld [vmem:[%s2332_s0 + $0x10] ss:$36 sps:$4 sm:$0xff]  }
  0x19   :  { %1124 = vmatprep.subr.bf16.mxu0 %v1564_v25  ;;  %v1625_v5 = vld [vmem:[%s2331_s1 + $0x100] ss:$8 sps:$4 sm:$0xff]   ;;  %v1636_v8 = vld [vmem:[%s2331_s1 + $0x114] ss:$8 sps:$4 sm:$0xff]   ;;  %v1634_v10 = vld [vmem:[%s2331_s1 + $0x110] ss:$8 sps:$4 sm:$0xff]  }
  0x1a   :  { %v1631_v7 = vld [vmem:[%s2331_s1 + $0x300] ss:$8 sps:$4 sm:$0xff]   ;;  %v1639_v9 = vld [vmem:[%s2331_s1 + $0x314] ss:$8 sps:$4 sm:$0xff]   ;;  %v1637_v11 = vld [vmem:[%s2331_s1 + $0x310] ss:$8 sps:$4 sm:$0xff]  }
  0x1b   :  { %1019 = vmatpush1.bf16.msra.mxu1 %v1566_v26  ;;  %v1642_v12 = vld [vmem:[%s2331_s1 + $0x124] ss:$8 sps:$4 sm:$0xff]   ;;  %v1640_v14 = vld [vmem:[%s2331_s1 + $0x120] ss:$8 sps:$4 sm:$0xff]   ;;  %v1648_v16 = vld [vmem:[%s2331_s1 + $0x134] ss:$8 sps:$4 sm:$0xff]  }
  0x1c   :  { %1125 = vmatpush1.bf16.msra.mxu0 %v1567_v27  ;;  %1020 = vmatprep.subr.bf16.mxu1 %v1568_v28  ;;  %v1645_v13 = vld [vmem:[%s2331_s1 + $0x324] ss:$8 sps:$4 sm:$0xff]   ;;  %v1643_v15 = vld [vmem:[%s2331_s1 + $0x320] ss:$8 sps:$4 sm:$0xff]   ;;  %v1651_v17 = vld [vmem:[%s2331_s1 + $0x334] ss:$8 sps:$4 sm:$0xff]  }
  0x1d   :  { %1126 = vmatprep.subr.bf16.mxu0 %v1570_v29  ;;  %v1646_v18 = vld [vmem:[%s2331_s1 + $0x130] ss:$8 sps:$4 sm:$0xff]   ;;  %v1654_v20 = vld [vmem:[%s2331_s1 + $0x144] ss:$8 sps:$4 sm:$0xff]   ;;  %v1652_v22 = vld [vmem:[%s2331_s1 + $0x140] ss:$8 sps:$4 sm:$0xff]  }
  0x1e   :  { %v1649_v19 = vld [vmem:[%s2331_s1 + $0x330] ss:$8 sps:$4 sm:$0xff]   ;;  %v1657_v21 = vld [vmem:[%s2331_s1 + $0x344] ss:$8 sps:$4 sm:$0xff]   ;;  %v1655_v23 = vld [vmem:[%s2331_s1 + $0x340] ss:$8 sps:$4 sm:$0xff]  }
  0x1f   :  { %1021 = vmatpush1.bf16.msra.mxu1 %v1572_v30  ;;  %v1660_v24 = vld [vmem:[%s2331_s1 + $0x154] ss:$8 sps:$4 sm:$0xff]   ;;  %v1658_v26 = vld [vmem:[%s2331_s1 + $0x150] ss:$8 sps:$4 sm:$0xff]   ;;  %v1666_v28 = vld [vmem:[%s2331_s1 + $0x164] ss:$8 sps:$4 sm:$0xff]  }
  0x20   :  { %1127 = vmatpush1.bf16.msra.mxu0 %v1573_v31  ;;  %1022 = vmatprep.subr.bf16.mxu1 %v1574_v32  ;;  %v1663_v25 = vld [vmem:[%s2331_s1 + $0x354] ss:$8 sps:$4 sm:$0xff]   ;;  %v1661_v27 = vld [vmem:[%s2331_s1 + $0x350] ss:$8 sps:$4 sm:$0xff]   ;;  %v1716_v31 = vld [vmem:[%s2332_s0 + $0x48] ss:$36 sps:$4 sm:$0xff]  }
  0x21   :  { %1128 = vmatprep.subr.bf16.mxu0 %v1576_v33  ;;  %v1712_v29 = vld [vmem:[%s2332_s0 + $0x4c] ss:$36 sps:$4 sm:$0xff]   ;;  %v1714_v30 = vld [vmem:[%s2332_s0 + $0x5c] ss:$36 sps:$4 sm:$0xff]  }
  0x22   :  { %v1669_v32 = vld [vmem:[%s2331_s1 + $0x364] ss:$8 sps:$4 sm:$0xff]   ;;  %v1720_v33 = vld [vmem:[%s2332_s0 + $0x58] ss:$36 sps:$4 sm:$0xff]  }
  0x23   :  { %1023 = vmatpush1.bf16.msra.mxu1 %v1578_v34  ;;  %v1664_v34 = vld [vmem:[%s2331_s1 + $0x160] ss:$8 sps:$4 sm:$0xff]   ;;  %v1682_v48 = vld [vmem:[%s2331_s1 + $0x190] ss:$8 sps:$4 sm:$0xff]   ;;  %v1693_v51 = vld [vmem:[%s2331_s1 + $0x3a4] ss:$8 sps:$4 sm:$0xff]  }
  0x24   :  { %1129 = vmatpush1.bf16.msra.mxu0 %v1579_v35  ;;  %1024 = vmatprep.subr.bf16.mxu1 %v1580_v36  ;;  %v1667_v35 = vld [vmem:[%s2331_s1 + $0x360] ss:$8 sps:$4 sm:$0xff]   ;;  %v1672_v36 = vld [vmem:[%s2331_s1 + $0x174] ss:$8 sps:$4 sm:$0xff]  }
  0x25   :  { %1130 = vmatprep.subr.bf16.mxu0 %v1582_v37  ;;  %v1675_v37 = vld [vmem:[%s2331_s1 + $0x374] ss:$8 sps:$4 sm:$0xff]  }
  0x27   :  { %1025 = vmatpush1.bf16.msra.mxu1 %v1584_v38  ;;  %v1670_v38 = vld [vmem:[%s2331_s1 + $0x170] ss:$8 sps:$4 sm:$0xff]  }
  0x28   :  { %1131 = vmatpush1.bf16.msra.mxu0 %v1585_v39  ;;  %1026 = vmatprep.subr.bf16.mxu1 %v1586_v40  ;;  %v1673_v39 = vld [vmem:[%s2331_s1 + $0x370] ss:$8 sps:$4 sm:$0xff]   ;;  %v1678_v40 = vld [vmem:[%s2331_s1 + $0x184] ss:$8 sps:$4 sm:$0xff]  }
  0x29   :  { %1132 = vmatprep.subr.bf16.mxu0 %v1588_v41  ;;  %v1732_v41 = vld [vmem:[%s2332_s0 + $0xc] ss:$36 sps:$4 sm:$0xff]  }
  0x2b   :  { %1027 = vmatpush1.bf16.msra.mxu1 %v1590_v42  ;;  %v1681_v42 = vld [vmem:[%s2331_s1 + $0x384] ss:$8 sps:$4 sm:$0xff]  }
  0x2c   :  { %1133 = vmatpush1.bf16.msra.mxu0 %v1591_v43  ;;  %1028 = vmatprep.subr.bf16.mxu1 %v1592_v44  ;;  %v1735_v43 = vld [vmem:[%s2332_s0 + $0x1c] ss:$36 sps:$4 sm:$0xff]  }
  0x2d   :  { %1134 = vmatprep.subr.bf16.mxu0 %v1594_v45  ;;  %v1676_v44 = vld [vmem:[%s2331_s1 + $0x180] ss:$8 sps:$4 sm:$0xff]  }
  0x2e   :  { %v1679_v45 = vld [vmem:[%s2331_s1 + $0x380] ss:$8 sps:$4 sm:$0xff]  }
  0x2f   :  { %1029 = vmatpush1.bf16.msra.mxu1 %v1596_v46  ;;  %v1684_v46 = vld [vmem:[%s2331_s1 + $0x194] ss:$8 sps:$4 sm:$0xff]  }
  0x30   :  { %1135 = vmatpush1.bf16.msra.mxu0 %v1597_v47  ;;  %1030 = vmatprep.subr.bf16.mxu1 %v1598_v49  ;;  %v1687_v47 = vld [vmem:[%s2331_s1 + $0x394] ss:$8 sps:$4 sm:$0xff]   ;;  %v1685_v49 = vld [vmem:[%s2331_s1 + $0x390] ss:$8 sps:$4 sm:$0xff]  }
  0x31   :  { %1136 = vmatprep.subr.bf16.mxu0 %v1600_v50  ;;  %v1690_v50 = vld [vmem:[%s2331_s1 + $0x1a4] ss:$8 sps:$4 sm:$0xff]  }
  0x33   :  { %1031 = vmatpush1.bf16.msra.mxu1 %v1602_v52  ;;  %v1688_v52 = vld [vmem:[%s2331_s1 + $0x1a0] ss:$8 sps:$4 sm:$0xff]  }
  0x34   :  { %1137 = vmatpush1.bf16.msra.mxu0 %v1603_v53  ;;  %1032 = vmatprep.subr.bf16.mxu1 %v1604_v54  ;;  %v1691_v53 = vld [vmem:[%s2331_s1 + $0x3a0] ss:$8 sps:$4 sm:$0xff]   ;;  %v1696_v54 = vld [vmem:[%s2331_s1 + $0x1b4] ss:$8 sps:$4 sm:$0xff]  }
  0x35   :  { %1138 = vmatprep.subr.bf16.mxu0 %v1606_v55  ;;  %v1699_v55 = vld [vmem:[%s2331_s1 + $0x3b4] ss:$8 sps:$4 sm:$0xff]  }
  0x37   :  { %1033 = vmatpush1.bf16.msra.mxu1 %v1608_v56  ;;  %v1694_v56 = vld [vmem:[%s2331_s1 + $0x1b0] ss:$8 sps:$4 sm:$0xff]  }
  0x38   :  { %1139 = vmatpush1.bf16.msra.mxu0 %v1609_v57  ;;  %1034 = vmatprep.subr.bf16.mxu1 %v1610_v58  ;;  %v1697_v57 = vld [vmem:[%s2331_s1 + $0x3b0] ss:$8 sps:$4 sm:$0xff]   ;;  %v1702_v58 = vld [vmem:[%s2331_s1 + $0x1c4] ss:$8 sps:$4 sm:$0xff]  }
  0x39   :  { %1140 = vmatprep.subr.bf16.mxu0 %v1612_v59  ;;  %v1705_v59 = vld [vmem:[%s2331_s1 + $0x3c4] ss:$8 sps:$4 sm:$0xff]  }
  0x3b   :  { %1035 = vmatpush1.bf16.msra.mxu1 %v1614_v60  ;;  %v1700_v60 = vld [vmem:[%s2331_s1 + $0x1c0] ss:$8 sps:$4 sm:$0xff]  }
  0x3c   :  { %1141 = vmatpush1.bf16.msra.mxu0 %v1615_v61  ;;  %1036 = vmatprep.subr.bf16.mxu1 %v1616_v62  ;;  %v1703_v61 = vld [vmem:[%s2331_s1 + $0x3c0] ss:$8 sps:$4 sm:$0xff]   ;;  %v1708_v62 = vld [vmem:[%s2331_s1 + $0x1d4] ss:$8 sps:$4 sm:$0xff]  }
  0x3d   :  { %1142 = vmatprep.subr.bf16.mxu0 %v1618_v63  ;;  %v1711_v63 = vld [vmem:[%s2331_s1 + $0x3d4] ss:$8 sps:$4 sm:$0xff]  }
  0x3f   :  { %1037 = vmatpush1.bf16.msra.mxu1 %v1620_v0  ;;  %v1706_v0 = vld [vmem:[%s2331_s1 + $0x1d0] ss:$8 sps:$4 sm:$0xff]  }
  0x40   :  { %1143 = vmatpush1.bf16.msra.mxu0 %v1621_v1  ;;  %1059 = vmatprep.subr.bf16.mxu1 %v1627_v2  ;;  %v1709_v1 = vld [vmem:[%s2331_s1 + $0x3d0] ss:$8 sps:$4 sm:$0xff]   ;;  %v1719_v2 = vld [vmem:[%s2331_s1 + $0x1e4] ss:$8 sps:$4 sm:$0xff]  }
  0x41   :  { %1165 = vmatprep.subr.bf16.mxu0 %v1633_v3  ;;  %v1723_v3 = vld [vmem:[%s2331_s1 + $0x3e4] ss:$8 sps:$4 sm:$0xff]  }
  0x42   :  { %1039 = vmatmul.mubr.bf16.vlgmr.msra.gmra.mrb[0].mxu1 %v1622_v4  ;;  %v1717_v4 = vld [vmem:[%s2331_s1 + $0x1e0] ss:$8 sps:$4 sm:$0xff]  }
  0x43   :  { %1145 = vmatmul.mubr.bf16.vlgmr.msra.gmra.mrb[0].mxu0 %v1628_v6  ;;  %1060 = vmatpush1.bf16.msra.mxu1 %v1625_v5  ;;  %v1721_v5 = vld [vmem:[%s2331_s1 + $0x3e0] ss:$8 sps:$4 sm:$0xff]   ;;  %v1726_v6 = vld [vmem:[%s2331_s1 + $0x1f4] ss:$8 sps:$4 sm:$0xff]  }
  0x44   :  { %1166 = vmatpush1.bf16.msra.mxu0 %v1631_v7  ;;  %1061 = vmatprep.subr.bf16.mxu1 %v1636_v8  ;;  %v1729_v7 = vld [vmem:[%s2331_s1 + $0x3f4] ss:$8 sps:$4 sm:$0xff]   ;;  %v1724_v8 = vld [vmem:[%s2331_s1 + $0x1f0] ss:$8 sps:$4 sm:$0xff]  }
  0x45   :  { %1167 = vmatprep.subr.bf16.mxu0 %v1639_v9  ;;  %1048 = vmatprep.mubr.bf16.mxu1 %v1712_v29  ;;  %v1727_v9 = vld [vmem:[%s2331_s1 + $0x3f0] ss:$8 sps:$4 sm:$0xff]   ;;  %v1762_v29 = vld [vmem:[%s2331_s1 + $0x464] ss:$8 sps:$4 sm:$0xff]  }
  0x46   :  { %1154 = vmatprep.mubr.bf16.mxu0 %v1714_v30  ;;  %v1760_v30 = vld [vmem:[%s2331_s1 + $0x460] ss:$8 sps:$4 sm:$0xff]  }
  0x47   :  { %1062 = vmatpush1.bf16.msra.mxu1 %v1634_v10  ;;  %v1738_v10 = vld [vmem:[%s2331_s1 + $0x404] ss:$8 sps:$4 sm:$0xff]  }
  0x48   :  { %1168 = vmatpush1.bf16.msra.mxu0 %v1637_v11  ;;  %1063 = vmatprep.subr.bf16.mxu1 %v1642_v12  ;;  %v1730_v11 = vld [vmem:[%s2332_s0 + $0x8] ss:$36 sps:$4 sm:$0xff]   ;;  %v1733_v12 = vld [vmem:[%s2332_s0 + $0x18] ss:$36 sps:$4 sm:$0xff]  }
  0x49   :  { %1169 = vmatprep.subr.bf16.mxu0 %v1645_v13  ;;  %v1736_v13 = vld [vmem:[%s2331_s1 + $0x400] ss:$8 sps:$4 sm:$0xff]  }
  0x4a   :  { %1049 = vmatmul.mubr.bf16.gmra.mrb[4].mxu1 %v1716_v31  ;;  %v1765_v31 = vld [vmem:[%s2331_s1 + $0x474] ss:$8 sps:$4 sm:$0xff]  }
  0x4b   :  { %1064 = vmatpush1.bf16.msra.mxu1 %v1640_v14  ;;  %1155 = vmatmul.mubr.bf16.gmra.mrb[4].mxu0 %v1720_v33  ;;  %v1741_v14 = vld [vmem:[%s2331_s1 + $0x414] ss:$8 sps:$4 sm:$0xff]   ;;  %v1766_v33 = vld [vmem:[%s2332_s0 + $0x20] ss:$36 sps:$4 sm:$0xff]  }
  0x4c   :  { %1170 = vmatpush1.bf16.msra.mxu0 %v1643_v15  ;;  %1065 = vmatprep.subr.bf16.mxu1 %v1648_v16  ;;  %v1742_v15 = vld [vmem:[%s2332_s0 + $0x54] ss:$36 sps:$4 sm:$0xff]   ;;  %v1744_v16 = vld [vmem:[%s2332_s0 + $0x64] ss:$36 sps:$4 sm:$0xff]  }
  0x4d   :  { %1171 = vmatprep.subr.bf16.mxu0 %v1651_v17  ;;  %1091 = vmatprep.mubr.bf16.mxu1 %v1732_v41  ;;  %v1739_v17 = vld [vmem:[%s2331_s1 + $0x410] ss:$8 sps:$4 sm:$0xff]  }
  0x4e   :  { %1197 = vmatprep.mubr.bf16.mxu0 %v1735_v43 }
  0x4f   :  { %1066 = vmatpush1.bf16.msra.mxu1 %v1646_v18  ;;  %v1750_v18 = vld [vmem:[%s2331_s1 + $0x424] ss:$8 sps:$4 sm:$0xff]  }
  0x50   :  { %1172 = vmatpush1.bf16.msra.mxu0 %v1649_v19  ;;  %1067 = vmatprep.subr.bf16.mxu1 %v1654_v20  ;;  %v1746_v19 = vld [vmem:[%s2332_s0 + $0x50] ss:$36 sps:$4 sm:$0xff]   ;;  %v1747_v20 = vld [vmem:[%s2332_s0 + $0x60] ss:$36 sps:$4 sm:$0xff]  }
  0x51   :  { %1173 = vmatprep.subr.bf16.mxu0 %v1657_v21  ;;  %v1748_v21 = vld [vmem:[%s2331_s1 + $0x420] ss:$8 sps:$4 sm:$0xff]  }
  0x53   :  { %1068 = vmatpush1.bf16.msra.mxu1 %v1652_v22  ;;  %v1753_v22 = vld [vmem:[%s2331_s1 + $0x434] ss:$8 sps:$4 sm:$0xff]  }
  0x54   :  { %1174 = vmatpush1.bf16.msra.mxu0 %v1655_v23  ;;  %1069 = vmatprep.subr.bf16.mxu1 %v1660_v24  ;;  %v1751_v23 = vld [vmem:[%s2331_s1 + $0x430] ss:$8 sps:$4 sm:$0xff]   ;;  %v1756_v24 = vld [vmem:[%s2331_s1 + $0x444] ss:$8 sps:$4 sm:$0xff]  }
  0x55   :  { %1175 = vmatprep.subr.bf16.mxu0 %v1663_v25  ;;  %v1768_v25 = vmov 0  }
  0x57   :  { %1070 = vmatpush1.bf16.msra.mxu1 %v1658_v26  ;;  %v1754_v26 = vld [vmem:[%s2331_s1 + $0x440] ss:$8 sps:$4 sm:$0xff]  }
  0x58   :  { %1176 = vmatpush1.bf16.msra.mxu0 %v1661_v27  ;;  %1071 = vmatprep.subr.bf16.mxu1 %v1666_v28  ;;  %v1759_v27 = vld [vmem:[%s2331_s1 + $0x454] ss:$8 sps:$4 sm:$0xff]   ;;  %v1757_v28 = vld [vmem:[%s2331_s1 + $0x450] ss:$8 sps:$4 sm:$0xff]  }
  0x59   :  { %1177 = vmatprep.subr.bf16.mxu0 %v1669_v32  ;;  %v1763_v32 = vld [vmem:[%s2331_s1 + $0x470] ss:$8 sps:$4 sm:$0xff]  }
  0x5b   :  { %1072 = vmatpush1.bf16.msra.mxu1 %v1664_v34  ;;  %v1767_v34 = vld [vmem:[%s2332_s0 + $0x68] ss:$36 sps:$4 sm:$0xff]  }
  0x5c   :  { %1178 = vmatpush1.bf16.msra.mxu0 %v1667_v35  ;;  %1073 = vmatprep.subr.bf16.mxu1 %v1672_v36  ;;  %v184_v35 = vlaneseq }
  0x5d   :  { %1179 = vmatprep.subr.bf16.mxu0 %v1675_v37 }
  0x5e   :  { %v185_v36 = vshrl.u32 %v184_v35, 7 }
  0x5f   :  { %1074 = vmatpush1.bf16.msra.mxu1 %v1670_v38 }
  0x60   :  { %1180 = vmatpush1.bf16.msra.mxu0 %v1673_v39  ;;  %1075 = vmatprep.subr.bf16.mxu1 %v1678_v40  ;;  %v186_v40 = vsub.s32 0, %v185_v36  ;;  %v190_v43 = vsub.s32 1, %v185_v36 }
  0x61   :  { %1181 = vmatprep.subr.bf16.mxu0 %v1681_v42  ;;  %v182_v42 = vld [vmem:[%s2333_s2] sm:$0x3] }
  0x63   :  { %1076 = vmatpush1.bf16.msra.mxu1 %v1676_v44  ;;  %v187_v44 = vrot.slane %v182_v42, %v186_v40 }
  0x64   :  { %1182 = vmatpush1.bf16.msra.mxu0 %v1679_v45  ;;  %1077 = vmatprep.subr.bf16.mxu1 %v1684_v46  ;;  %v191_v45 = vrot.slane %v182_v42, %v190_v43 }
  0x65   :  { %1183 = vmatprep.subr.bf16.mxu0 %v1687_v47 }
  0x67   :  { %1078 = vmatpush1.bf16.msra.mxu1 %v1682_v48 }
  0x68   :  { %1184 = vmatpush1.bf16.msra.mxu0 %v1685_v49  ;;  %1079 = vmatprep.subr.bf16.mxu1 %v1690_v50 }
  0x69   :  { %1185 = vmatprep.subr.bf16.mxu0 %v1693_v51 }
  0x6b   :  { %1080 = vmatpush1.bf16.msra.mxu1 %v1688_v52 }
  0x6c   :  { %1186 = vmatpush1.bf16.msra.mxu0 %v1691_v53  ;;  %1081 = vmatprep.subr.bf16.mxu1 %v1696_v54 }
  0x6d   :  { %1187 = vmatprep.subr.bf16.mxu0 %v1699_v55 }
  0x6f   :  { %1082 = vmatpush1.bf16.msra.mxu1 %v1694_v56 }
  0x70   :  { %1188 = vmatpush1.bf16.msra.mxu0 %v1697_v57  ;;  %1083 = vmatprep.subr.bf16.mxu1 %v1702_v58 }
  0x71   :  { %1189 = vmatprep.subr.bf16.mxu0 %v1705_v59 }
  0x73   :  { %1084 = vmatpush1.bf16.msra.mxu1 %v1700_v60 }
  0x74   :  { %1190 = vmatpush1.bf16.msra.mxu0 %v1703_v61  ;;  %1085 = vmatprep.subr.bf16.mxu1 %v1708_v62 }
  0x75   :  { %1191 = vmatprep.subr.bf16.mxu0 %v1711_v63 }
  0x77   :  { %1086 = vmatpush1.bf16.msra.mxu1 %v1706_v0 }
  0x78   :  { %1192 = vmatpush1.bf16.msra.mxu0 %v1709_v1  ;;  %1087 = vmatprep.subr.bf16.mxu1 %v1719_v2 }
  0x79   :  { %1193 = vmatprep.subr.bf16.mxu0 %v1723_v3 }
  0x7b   :  { %1088 = vmatpush1.bf16.msra.mxu1 %v1717_v4 }
  0x7c   :  { %1194 = vmatpush1.bf16.msra.mxu0 %v1721_v5  ;;  %1089 = vmatprep.subr.bf16.mxu1 %v1726_v6 }
  0x7d   :  { %1195 = vmatprep.subr.bf16.mxu0 %v1729_v7 }
  0x7f   :  { %1090 = vmatpush1.bf16.msra.mxu1 %v1724_v8  ;;  %v1279_v8 = vld [vmem:[%s2334_s3] sm:$0xff] }
  0x80   :  { %1196 = vmatpush1.bf16.msra.mxu0 %v1727_v9  ;;  %1469 = vmatprep.subr.bf16.mxu1 %v1738_v10  ;;  %v1283_v9 = vld [vmem:[%s2334_s3 + $0x20] sm:$0xff] }
  0x81   :  { %1218 = vmatprep.subr.bf16.mxu0 %v1738_v10 }
  0x82   :  { %1092 = vmatmul.mubr.bf16.vlgmr.msra.gmra.mrb[0].mxu1 %v1730_v11 }
  0x83   :  { %1198 = vmatmul.mubr.bf16.vlgmr.msra.gmra.mrb[0].mxu0 %v1733_v12  ;;  %1477 = vmatpush1.bf16.msra.mxu1 %v1736_v13 }
  0x84   :  { %1219 = vmatpush1.bf16.msra.mxu0 %v1736_v13  ;;  %1470 = vmatprep.subr.bf16.mxu1 %v1741_v14 }
  0x85   :  { %1220 = vmatprep.subr.bf16.mxu0 %v1741_v14  ;;  %1101 = vmatprep.mubr.bf16.mxu1 %v1742_v15 }
  0x86   :  { %1207 = vmatprep.mubr.bf16.mxu0 %v1744_v16  ;;  %v1280_v16 = vld [vmem:[%s2334_s3 + $0x8] sm:$0xff] }
  0x87   :  { %1478 = vmatpush1.bf16.msra.mxu1 %v1739_v17 }
  0x88   :  { %1221 = vmatpush1.bf16.msra.mxu0 %v1739_v17  ;;  %1471 = vmatprep.subr.bf16.mxu1 %v1750_v18  ;;  %v1284_v17 = vld [vmem:[%s2334_s3 + $0x28] sm:$0xff] }
  0x89   :  { %1222 = vmatprep.subr.bf16.mxu0 %v1750_v18 }
  0x8a   :  { %1102 = vmatmul.mubr.bf16.gmra.mrb[4].mxu1 %v1746_v19 }
  0x8b   :  { %1208 = vmatmul.mubr.bf16.gmra.mrb[4].mxu0 %v1747_v20  ;;  %1479 = vmatpush1.bf16.msra.mxu1 %v1748_v21 }
  0x8c   :  { %1223 = vmatpush1.bf16.msra.mxu0 %v1748_v21  ;;  %1472 = vmatprep.subr.bf16.mxu1 %v1753_v22 }
  0x8d   :  { %1224 = vmatprep.subr.bf16.mxu0 %v1753_v22  ;;  %1250 = vmatprep.mubr.bf16.mxu0 %v1768_v25 }
  0x8e   :  { %1260 = vmatprep.mubr.bf16.mxu1 %v1768_v25  ;;  %v1285_v25 = vld [vmem:[%s2334_s3 + $0x30] sm:$0xff] }
  0x8f   :  { %1480 = vmatpush1.bf16.msra.mxu1 %v1751_v23 }
  0x90   :  { %1225 = vmatpush1.bf16.msra.mxu0 %v1751_v23  ;;  %1473 = vmatprep.subr.bf16.mxu1 %v1756_v24 }
  0x91   :  { %1226 = vmatprep.subr.bf16.mxu0 %v1756_v24  ;;  %v1281_v24 = vld [vmem:[%s2334_s3 + $0x10] sm:$0xff] }
  0x93   :  { %1481 = vmatpush1.bf16.msra.mxu1 %v1754_v26 }
  0x94   :  { %1227 = vmatpush1.bf16.msra.mxu0 %v1754_v26  ;;  %1474 = vmatprep.subr.bf16.mxu1 %v1759_v27 }
  0x95   :  { %1228 = vmatprep.subr.bf16.mxu0 %v1759_v27 }
  0x97   :  { %1482 = vmatpush1.bf16.msra.mxu1 %v1757_v28 }
  0x98   :  { %1229 = vmatpush1.bf16.msra.mxu0 %v1757_v28  ;;  %1475 = vmatprep.subr.bf16.mxu1 %v1762_v29 }
  0x99   :  { %1230 = vmatprep.subr.bf16.mxu0 %v1762_v29 }
  0x9b   :  { %1483 = vmatpush1.bf16.msra.mxu1 %v1760_v30 }
  0x9c   :  { %1231 = vmatpush1.bf16.msra.mxu0 %v1760_v30  ;;  %1476 = vmatprep.subr.bf16.mxu1 %v1765_v31 }
  0x9d   :  { %1232 = vmatprep.subr.bf16.mxu0 %v1765_v31 }
  0x9f   :  { %1484 = vmatpush1.bf16.msra.mxu1 %v1763_v32 }
  0xa0   :  { %1233 = vmatpush1.bf16.msra.mxu0 %v1763_v32  ;;  %v1282_v32 = vld [vmem:[%s2334_s3 + $0x18] sm:$0xff] }
  0xa2   :  { %1261 = vmatmul.mubr.bf16.vlgmr.msra.gmra.mrb[8].mxu1 %v1767_v34 }
  0xa3   :  { %1251 = vmatmul.mubr.bf16.vlgmr.msra.gmra.mrb[0].mxu0 %v1766_v33  ;;  %v1286_v33 = vld [vmem:[%s2334_s3 + $0x38] sm:$0xff] }
 0x155   :  { %v1093_v37 = vpop.f32.mrb[0].mxu1 }
 0x156   :  { %v1095_v38 = vpop.f32.mrb[1].mxu1  ;;  %v1485_v62 = vadd.f32 %v1093_v37, %v187_v44 }
 0x157   :  { %v1097_v39 = vpop.f32.mrb[2].mxu1  ;;  %v1487_v63 = vadd.f32 %v1095_v38, %v191_v45 }
 0x158   :  { %v1099_v41 = vpop.f32.mrb[3].mxu1  ;;  %v1489_v2 = vadd.f32 %v1097_v39, %v187_v44 }
 0x159   :  { %v1491_v7 = vadd.f32 %v1099_v41, %v191_v45 }
 0x15d   :  { %v1103_v46 = vpop.f32.mrb[4].mxu1 }
 0x15e   :  { %v1209_v47 = vpop.f32.mrb[4].mxu0  ;;  %v1493_v48 = vadd.f32 %v1103_v46, %v187_v44  ;;  %v1105_v49 = vpop.f32.mrb[5].mxu1 }
 0x15f   :  { %v1211_v50 = vpop.f32.mrb[5].mxu0  ;;  %v1496_v51 = vadd.f32 %v1105_v49, %v191_v45  ;;  %v1107_v52 = vpop.f32.mrb[6].mxu1 }
 0x160   :  { %v1213_v53 = vpop.f32.mrb[6].mxu0  ;;  %v1494_v54 = vadd.f32 %v1493_v48, %v1209_v47  ;;  %v1499_v55 = vadd.f32 %v1107_v52, %v187_v44  ;;  %v1109_v56 = vpop.f32.mrb[7].mxu1 }
 0x161   :  { %v1215_v57 = vpop.f32.mrb[7].mxu0  ;;  %v1497_v58 = vadd.f32 %v1496_v51, %v1211_v50  ;;  %v1502_v59 = vadd.f32 %v1109_v56, %v191_v45 }
 0x162   :  { %v1500_v60 = vadd.f32 %v1499_v55, %v1213_v53 }
 0x163   :  { %v1503_v61 = vadd.f32 %v1502_v59, %v1215_v57 }
 0x175   :  { %v1262_v1 = vpop.f32.mrb[8].mxu1 }
 0x176   :  { %v1252_v0 = vpop.f32.mrb[0].mxu0  ;;  %v1495_v4 = vadd.f32 %v1494_v54, %v1262_v1  ;;  %v1264_v6 = vpop.f32.mrb[9].mxu1 }
 0x177   :  { %v1486_v3 = vadd.f32 %v1485_v62, %v1252_v0  ;;  %v1254_v5 = vpop.f32.mrb[1].mxu0  ;;  %v1498_v11 = vadd.f32 %v1497_v58, %v1264_v6  ;;  %v1266_v13 = vpop.f32.mrb[10].mxu1 }
 0x178   :  { %v1488_v10 = vadd.f32 %v1487_v63, %v1254_v5  ;;  %v1256_v12 = vpop.f32.mrb[2].mxu0  ;;  %v1275_v15 = vmax.f32 %v1495_v4, 0.0  ;;  %v1501_v19 = vadd.f32 %v1500_v60, %v1266_v13  ;;  %v1268_v21 = vpop.f32.mrb[11].mxu1 }
 0x179   :  { %v1271_v14 = vmax.f32 %v1486_v3, 0.0  ;;  %v1490_v18 = vadd.f32 %v1489_v2, %v1256_v12  ;;  %v1258_v20 = vpop.f32.mrb[3].mxu0  ;;  %v1276_v23 = vmax.f32 %v1498_v11, 0.0  ;;  %v1504_v27 = vadd.f32 %v1503_v61, %v1268_v21 }
 0x17a   :  { %v1272_v22 = vmax.f32 %v1488_v10, 0.0  ;;  %v1492_v26 = vadd.f32 %v1491_v7, %v1258_v20  ;;  %v1291_v29 = vadd.f32 %v1283_v9, %v1275_v15  ;;  %v1277_v31 = vmax.f32 %v1501_v19, 0.0 }
 0x17b   :  { %v1287_v28 = vadd.f32 %v1279_v8, %v1271_v14  ;;  %v1273_v30 = vmax.f32 %v1490_v18, 0.0  ;;  %v1292_v35 = vadd.f32 %v1284_v17, %v1276_v23  ;;  %v1278_v37 = vmax.f32 %v1504_v27, 0.0 }
 0x17c   :  { %v1288_v34 = vadd.f32 %v1280_v16, %v1272_v22  ;;  %v1274_v36 = vmax.f32 %v1492_v26, 0.0  ;;  %1299 = vst [vmem:[%s2335_s4 + $0x20] sm:$0xff] %v1291_v29  ;;  %v1293_v39 = vadd.f32 %v1285_v25, %v1277_v31 }
 0x17d   :  { %1295 = vst [vmem:[%s2335_s4] sm:$0xff] %v1287_v28  ;;  %v1289_v38 = vadd.f32 %v1281_v24, %v1273_v30  ;;  %1300 = vst [vmem:[%s2335_s4 + $0x28] sm:$0xff] %v1292_v35  ;;  %v1294_v41 = vadd.f32 %v1286_v33, %v1278_v37 }
 0x17e   :  { %1296 = vst [vmem:[%s2335_s4 + $0x8] sm:$0xff] %v1288_v34  ;;  %v1290_v40 = vadd.f32 %v1282_v32, %v1274_v36  ;;  %1301 = vst [vmem:[%s2335_s4 + $0x30] sm:$0xff] %v1293_v39 }
 0x17f   :  { %1297 = vst [vmem:[%s2335_s4 + $0x10] sm:$0xff] %v1289_v38  ;;  %1302 = vst [vmem:[%s2335_s4 + $0x38] sm:$0xff] %v1294_v41 }
 0x180   :  { %1298 = vst [vmem:[%s2335_s4 + $0x18] sm:$0xff] %v1290_v40 }

// kernel: autoencoder_forward.10
= control target key start
LH: loop header
LB: loop body
LE: loop exit
PB: predicated region body
PF: predicated region fallthrough
CT: control target
= control target key end

     0   :  { %s1246_s15 = smov 0   ;;  %s1428_s0 = inlined_call_operand.vmem [shape: bf16[128,576], index: 0, kind: input, shape index: {}]   ;;  %s1429_s1 = inlined_call_operand.vmem [shape: bf16[576,128], index: 1, kind: input, shape index: {}]   ;;  %s1430_s2 = inlined_call_operand.vmem [shape: f32[1,128], index: 2, kind: input, shape index: {}]   ;;  %s1431_s3 = inlined_call_operand.vmem [shape: f32[128,128], index: 3, kind: input, shape index: {}]   ;;  %s1432_s4 = inlined_call_operand.vmem [shape: f32[128,128], index: 4, kind: output, shape index: {}]  }
   0x1 LB: > { %s954_s16 = sadd.s32 4294967295, %s1219_s15   ;;  %p958_p0 = scmp.ge.s32.totalorder %s1219_s15, 1  ;;  %s1219_s15 = sphi %s1246_s15, %s14_s15  }
   0x2   : > { %p175_p1 = scmp.lt.s32.totalorder %s1219_s15, 3 }
   0x4   : > { %p176_p2 = pnand %p958_p0, %p175_p1 }
   0x5   : > { %v1149_v0 = vld [vmem:[%s1429_s1 + $0x40] sm:$0xff] (!%p176_p2)   ;;  %v1153_v4 = vld [vmem:[%s1429_s1 + $0x48] sm:$0xff] (!%p176_p2)   ;;  %v1157_v8 = vld [vmem:[%s1429_s1 + $0x50] sm:$0xff] (!%p176_p2)   ;;  %s959_s23 = sshll.u32 (!%p176_p2), %s954_s16, 3  ;;  %vm646_vm0 = vcmask (!%p176_p2), 523264  }
   0x6   : > { %179 = sbr.rel (%p176_p2) target bundleno = 294 (0x126), region = 36  ;;  %v1150_v1 = vld [vmem:[%s1429_s1 + $0xc0] sm:$0xff] (!%p176_p2)   ;;  %1028 = vmatprep.subr.bf16.mxu0 (!%p176_p2), %v1149_v0  ;;  %v1154_v5 = vld [vmem:[%s1429_s1 + $0xc8] sm:$0xff] (!%p176_p2)   ;;  %v1158_v9 = vld [vmem:[%s1429_s1 + $0xd0] sm:$0xff] (!%p176_p2)   ;;  %p208_p3 = scmp.lt.s32.totalorder (!%p176_p2), %s959_s23, 15 }
   0x7   : > { %v1151_v2 = vld [vmem:[%s1429_s1] sm:$0xff] (!%p176_p2)   ;;  %1068 = vmatprep.subr.bf16.mxu1 (!%p176_p2), %v1150_v1  ;;  %v1155_v6 = vld [vmem:[%s1429_s1 + $0x8] sm:$0xff] (!%p176_p2)   ;;  %v1159_v10 = vld [vmem:[%s1429_s1 + $0x10] sm:$0xff] (!%p176_p2)  }
   0x8   : > { %v1152_v3 = vld [vmem:[%s1429_s1 + $0x80] sm:$0xff] (!%p176_p2)   ;;  %1029 = vmatpush3.bf16.msra.mxu0 (!%p176_p2), %v1151_v2  ;;  %v1156_v7 = vld [vmem:[%s1429_s1 + $0x88] sm:$0xff] (!%p176_p2)   ;;  %v1160_v11 = vld [vmem:[%s1429_s1 + $0x90] sm:$0xff] (!%p176_p2)  }
   0x9   : > { %1069 = vmatpush3.bf16.msra.mxu1 (!%p176_p2), %v1152_v3  ;;  %1030 = vmatprep.subr.bf16.mxu0 (!%p176_p2), %v1153_v4  ;;  %v1161_v12 = vld [vmem:[%s1429_s1 + $0x58] sm:$0xff] (!%p176_p2)   ;;  %v1165_v16 = vld [vmem:[%s1429_s1 + $0x60] sm:$0xff] (!%p176_p2)   ;;  %v1169_v20 = vld [vmem:[%s1429_s1 + $0x68] sm:$0xff] (!%p176_p2)  }
   0xa   : > { %1070 = vmatprep.subr.bf16.mxu1 (!%p176_p2), %v1154_v5  ;;  %v1162_v13 = vld [vmem:[%s1429_s1 + $0xd8] sm:$0xff] (!%p176_p2)   ;;  %v1166_v17 = vld [vmem:[%s1429_s1 + $0xe0] sm:$0xff] (!%p176_p2)   ;;  %v1170_v21 = vld [vmem:[%s1429_s1 + $0xe8] sm:$0xff] (!%p176_p2)  }
   0xb   : > { %v1163_v14 = vld [vmem:[%s1429_s1 + $0x18] sm:$0xff] (!%p176_p2)   ;;  %v1167_v18 = vld [vmem:[%s1429_s1 + $0x20] sm:$0xff] (!%p176_p2)   ;;  %v1171_v22 = vld [vmem:[%s1429_s1 + $0x28] sm:$0xff] (!%p176_p2)  }
   0xc   : > { %1031 = vmatpush3.bf16.msra.mxu0 (!%p176_p2), %v1155_v6  ;;  %v1164_v15 = vld [vmem:[%s1429_s1 + $0x98] sm:$0xff] (!%p176_p2)   ;;  %v1168_v19 = vld [vmem:[%s1429_s1 + $0xa0] sm:$0xff] (!%p176_p2)   ;;  %v1172_v23 = vld [vmem:[%s1429_s1 + $0xa8] sm:$0xff] (!%p176_p2)  }
   0xd   : > { %1071 = vmatpush3.bf16.msra.mxu1 %v1156_v7  ;;  %1032 = vmatprep.subr.bf16.mxu0 %v1157_v8  ;;  %s1434_s23 = smov (!%p208_p3, %s959_s23), 15  ;;  %v1173_v24 = vld [vmem:[%s1429_s1 + $0x70] sm:$0xff]   ;;  %v1177_v28 = vld [vmem:[%s1429_s1 + $0x78] sm:$0xff]   ;;  %v1187_v36 = vld [vmem:[%s1429_s1 + $0x100] sm:$0xff]  }
   0xe   : > { %1072 = vmatprep.subr.bf16.mxu1 %v1158_v9  ;;  %v1174_v25 = vld [vmem:[%s1429_s1 + $0xf0] sm:$0xff]   ;;  %s1140_s21 = smul.u32 20, %s1434_s23  ;;  %v1178_v29 = vld [vmem:[%s1429_s1 + $0xf8] sm:$0xff]   ;;  %v1194_v39 = vld [vmem:[%s1429_s1 + $0x108] sm:$0xff]   ;;  %s962_s24 = sshll.u32 %s1434_s23, 3 }
   0xf   : > { %v1175_v26 = vld [vmem:[%s1429_s1 + $0x30] sm:$0xff]   ;;  %v1179_v30 = vld [vmem:[%s1429_s1 + $0x38] sm:$0xff]   ;;  %v965_v58 = vld [vmem:[%s1430_s2] ss:$0 sm:$0xff]  ;;  %s1401_s27 = scalar_lea.vmem %s1431_s3, %s962_s24  ;;  %s1409_s29 = scalar_lea.vmem %s1432_s4, %s962_s24 }
  0x10   : > { %1033 = vmatpush3.bf16.msra.mxu0 %v1159_v10  ;;  %v1176_v27 = vld [vmem:[%s1429_s1 + $0xb0] sm:$0xff]   ;;  %s1352_s6 = scalar_lea.vmem %s1428_s0, %s1140_s21  ;;  %v1180_v31 = vld [vmem:[%s1429_s1 + $0xb8] sm:$0xff]  }
  0x11   : > { %1073 = vmatpush3.bf16.msra.mxu1 %v1160_v11  ;;  %1034 = vmatprep.subr.bf16.mxu0 %v1161_v12  ;;  %v1181_v32 = vld [vmem:[%s1352_s6] ss:$20 sps:$4 sm:$0xff]   ;;  %v1183_v33 = vld [vmem:[%s1352_s6 + $0x4] ss:$20 sps:$4 sm:$0xff]   ;;  %v1184_v34 = vld [vmem:[%s1352_s6 + $0x8] ss:$20 sps:$4 sm:$0xff]  }
  0x12   : > { %1074 = vmatprep.subr.bf16.mxu1 %v1162_v13  ;;  %v1186_v35 = vld [vmem:[%s1352_s6 + $0xc] ss:$20 sps:$4 sm:$0xff]   ;;  %691 = vmatprep.mubr.bf16.mxu0 %v1183_v33  ;;  %v1190_v38 = vld [vmem:[%s1352_s6 + $0x34] ss:$20 sps:$4 sm:$0xff]   ;;  %v1193_v41 = vld [vmem:[%s1352_s6 + $0x30] ss:$20 sps:$4 sm:$0xff]  }
  0x13   : > { %756 = vmatprep.mubr.bf16.mxu1 %v1186_v35  ;;  %v1188_v37 = vld [vmem:[%s1352_s6 + $0x2c] ss:$20 sps:$4 sm:$0xff]   ;;  %v1192_v40 = vld [vmem:[%s1352_s6 + $0x28] ss:$20 sps:$4 sm:$0xff]   ;;  %v1201_v44 = vld [vmem:[%s1429_s1 + $0x110] sm:$0xff]  }
  0x14   : > { %1035 = vmatpush3.bf16.msra.mxu0 %v1163_v14  ;;  %v1195_v42 = vld [vmem:[%s1352_s6 + $0x54] ss:$20 sps:$4 sm:$0xff]   ;;  %v1197_v43 = vld [vmem:[%s1352_s6 + $0x5c] ss:$20 sps:$4 sm:$0xff]   ;;  %v1200_v47 = vld [vmem:[%s1352_s6 + $0x58] ss:$20 sps:$4 sm:$0xff]  }
  0x15   : > { %1075 = vmatpush3.bf16.msra.mxu1 %v1164_v15  ;;  %1036 = vmatprep.subr.bf16.mxu0 %v1165_v16  ;;  %v1208_v45 = vld [vmem:[%s1429_s1 + $0x118] sm:$0xff]   ;;  %v1199_v46 = vld [vmem:[%s1352_s6 + $0x50] ss:$20 sps:$4 sm:$0xff]   ;;  %v1207_v51 = vld [vmem:[%s1352_s6 + $0x80] ss:$20 sps:$4 sm:$0xff]  }
  0x16   : > { %1076 = vmatprep.subr.bf16.mxu1 %v1166_v17  ;;  %v1202_v48 = vld [vmem:[%s1352_s6 + $0x7c] ss:$20 sps:$4 sm:$0xff]   ;;  %v1204_v49 = vld [vmem:[%s1352_s6 + $0x84] ss:$20 sps:$4 sm:$0xff]   ;;  %v1210_v53 = vld [vmem:[%s1352_s6 + $0x60] ss:$20 sps:$4 sm:$0xff]  }
  0x17   : > { %v1206_v50 = vld [vmem:[%s1352_s6 + $0x78] ss:$20 sps:$4 sm:$0xff]   ;;  %v1209_v52 = vld [vmem:[%s1352_s6 + $0x10] ss:$20 sps:$4 sm:$0xff]   ;;  %v1212_v55 = vld [vmem:[%s1352_s6 + $0x88] ss:$20 sps:$4 sm:$0xff]  }
  0x18   : > { %1037 = vmatpush3.bf16.msra.mxu0 %v1167_v18  ;;  %v1211_v54 = vld [vmem:[%s1352_s6 + $0x38] ss:$20 sps:$4 sm:$0xff]  }
  0x19   : > { %1077 = vmatpush3.bf16.msra.mxu1 %v1168_v19  ;;  %1038 = vmatprep.subr.bf16.mxu0 %v1169_v20 }
  0x1a   : > { %1078 = vmatprep.subr.bf16.mxu1 %v1170_v21 }
  0x1c   : > { %1039 = vmatpush3.bf16.msra.mxu0 %v1171_v22 }
  0x1d   : > { %1079 = vmatpush3.bf16.msra.mxu1 %v1172_v23  ;;  %1040 = vmatprep.subr.bf16.mxu0 %v1173_v24 }
  0x1e   : > { %1080 = vmatprep.subr.bf16.mxu1 %v1174_v25 }
  0x20   : > { %1041 = vmatpush3.bf16.msra.mxu0 %v1175_v26 }
  0x21   : > { %1081 = vmatpush3.bf16.msra.mxu1 %v1176_v27  ;;  %1042 = vmatprep.subr.bf16.mxu0 %v1177_v28 }
  0x22   : > { %1082 = vmatprep.subr.bf16.mxu1 %v1178_v29 }
  0x24   : > { %1043 = vmatpush3.bf16.msra.mxu0 %v1179_v30 }
  0x25   : > { %1083 = vmatpush3.bf16.msra.mxu1 %v1180_v31  ;;  %1116 = vmatprep.subr.bf16.mxu0 %v1187_v36 }
  0x26   : > { %1132 = vmatprep.subr.bf16.mxu1 %v1187_v36 }
  0x27   : > { %692 = vmatmul.mubr.bf16.vlgmr.msra.gmra.mrb[0].mxu0 %v1181_v32 }
  0x28   : > { %757 = vmatmul.mubr.bf16.vlgmr.msra.gmra.mrb[0].mxu1 %v1184_v34  ;;  %1117 = vmatpush3.bf16.msra.mxu0 %v1187_v36 }
  0x29   : > { %1136 = vmatpush3.bf16.msra.mxu1 %v1187_v36  ;;  %699 = vmatprep.mubr.bf16.mxu0 %v1188_v37 }
  0x2a   : > { %764 = vmatprep.mubr.bf16.mxu1 %v1190_v38  ;;  %1118 = vmatprep.subr.bf16.mxu0 %v1194_v39 }
  0x2b   : > { %1133 = vmatprep.subr.bf16.mxu1 %v1194_v39 }
  0x2c   : > { %1119 = vmatpush3.bf16.msra.mxu0 %v1194_v39 }
  0x2d   : > { %1137 = vmatpush3.bf16.msra.mxu1 %v1194_v39  ;;  %1120 = vmatprep.subr.bf16.mxu0 %v1201_v44 }
  0x2e   : > { %1134 = vmatprep.subr.bf16.mxu1 %v1201_v44 }
  0x2f   : > { %700 = vmatmul.mubr.bf16.gmra.mrb[4].mxu0 %v1192_v40 }
  0x30   : > { %765 = vmatmul.mubr.bf16.gmra.mrb[4].mxu1 %v1193_v41  ;;  %707 = vmatprep.mubr.bf16.mxu0 %v1195_v42 }
  0x31   : > { %772 = vmatprep.mubr.bf16.mxu1 %v1197_v43  ;;  %1121 = vmatpush3.bf16.msra.mxu0 %v1201_v44 }
  0x32   : > { %1138 = vmatpush3.bf16.msra.mxu1 %v1201_v44  ;;  %1122 = vmatprep.subr.bf16.mxu0 %v1208_v45 }
  0x33   : > { %1135 = vmatprep.subr.bf16.mxu1 %v1208_v45 }
  0x35   : > { %1123 = vmatpush3.bf16.msra.mxu0 %v1208_v45 }
  0x36   : > { %1139 = vmatpush3.bf16.msra.mxu1 %v1208_v45 }
  0x37   : > { %708 = vmatmul.mubr.bf16.gmra.mrb[8].mxu0 %v1199_v46 }
  0x38   : > { %773 = vmatmul.mubr.bf16.gmra.mrb[8].mxu1 %v1200_v47  ;;  %715 = vmatprep.mubr.bf16.mxu0 %v1202_v48 }
  0x39   : > { %780 = vmatprep.mubr.bf16.mxu1 %v1204_v49 }
  0x3f   : > { %716 = vmatmul.mubr.bf16.gmra.mrb[12].mxu0 %v1206_v50 }
  0x40   : > { %781 = vmatmul.mubr.bf16.gmra.mrb[12].mxu1 %v1207_v51  ;;  %1124 = vmatprep.mubr.msk.bf16.mxu0 %vm646_vm0, %v1209_v52 }
  0x41   : > { %1128 = vmatprep.mubr.msk.bf16.mxu1 %vm646_vm0, %v1210_v53 }
  0x47   : > { %1125 = vmatmul.mubr.msk.bf16.vlgmr.msra.gmra.mrb[16].mxu0 %vm646_vm0, %v1211_v54 }
  0x48   : > { %1129 = vmatmul.mubr.msk.bf16.vlgmr.msra.gmra.mrb[16].mxu1 %vm646_vm0, %v1212_v55 }
  0xfa   : > { %v1044_v56 = vpop.f32.mrb[0].mxu0 }
  0xfb   : > { %v1084_v57 = vpop.f32.mrb[0].mxu1  ;;  %v1045_v59 = vpop.f32.mrb[1].mxu0 }
  0xfc   : > { %v1046_v60 = vadd.f32 %v1045_v59, %v1044_v56  ;;  %v1085_v61 = vpop.f32.mrb[1].mxu1  ;;  %v1047_v62 = vpop.f32.mrb[2].mxu0 }
  0xfd   : > { %v1086_v63 = vadd.f32 %v1085_v61, %v1084_v57  ;;  %v1087_v0 = vpop.f32.mrb[2].mxu1  ;;  %v1048_v1 = vpop.f32.mrb[3].mxu0 }
  0xfe   : > { %v694_v2 = vadd.f32 %v1046_v60, %v965_v58  ;;  %v1049_v3 = vadd.f32 %v1048_v1, %v1047_v62  ;;  %v1088_v4 = vpop.f32.mrb[3].mxu1  ;;  %v864_v62 = vld [vmem:[%s1401_s27 + $0x10] sm:$0xff] }
  0xff   : > { %v1089_v5 = vadd.f32 %v1088_v4, %v1087_v0  ;;  %v862_v4 = vld [vmem:[%s1401_s27] sm:$0xff] }
 0x100   : > { %v697_v6 = vadd.f32 %v1049_v3, %v965_v58  ;;  %v759_v7 = vadd.f32 %v1086_v63, %v694_v2  ;;  %v868_v3 = vld [vmem:[%s1401_s27 + $0x30] sm:$0xff] }
 0x102   : > { %v1050_v8 = vpop.f32.mrb[4].mxu0  ;;  %v1395_v9 = vadd.f32 %v1089_v5, %v697_v6 }
 0x103   : > { %v1090_v10 = vpop.f32.mrb[4].mxu1  ;;  %v1051_v11 = vpop.f32.mrb[5].mxu0 }
 0x104   : > { %v1052_v12 = vadd.f32 %v1051_v11, %v1050_v8  ;;  %v1091_v13 = vpop.f32.mrb[5].mxu1  ;;  %v1053_v14 = vpop.f32.mrb[6].mxu0 }
 0x105   : > { %v1092_v15 = vadd.f32 %v1091_v13, %v1090_v10  ;;  %v1093_v16 = vpop.f32.mrb[6].mxu1  ;;  %v1054_v17 = vpop.f32.mrb[7].mxu0  ;;  %v865_v13 = vld [vmem:[%s1401_s27 + $0x18] sm:$0xff] }
 0x106   : > { %v702_v18 = vadd.f32 %v1052_v12, %v965_v58  ;;  %v1055_v19 = vadd.f32 %v1054_v17, %v1053_v14  ;;  %v1094_v20 = vpop.f32.mrb[7].mxu1 }
 0x107   : > { %v1095_v21 = vadd.f32 %v1094_v20, %v1093_v16  ;;  %v869_v20 = vld [vmem:[%s1401_s27 + $0x38] sm:$0xff] }
 0x108   : > { %v705_v22 = vadd.f32 %v1055_v19, %v965_v58  ;;  %v767_v23 = vadd.f32 %v1092_v15, %v702_v18 }
 0x10a   : > { %v1056_v24 = vpop.f32.mrb[8].mxu0  ;;  %v770_v25 = vadd.f32 %v1095_v21, %v705_v22  ;;  %v863_v21 = vld [vmem:[%s1401_s27 + $0x8] sm:$0xff] }
 0x10b   : > { %v1096_v26 = vpop.f32.mrb[8].mxu1  ;;  %v1057_v27 = vpop.f32.mrb[9].mxu0 }
 0x10c   : > { %v1058_v28 = vadd.f32 %v1057_v27, %v1056_v24  ;;  %v1097_v29 = vpop.f32.mrb[9].mxu1  ;;  %v1059_v30 = vpop.f32.mrb[10].mxu0  ;;  %v867_v27 = vld [vmem:[%s1401_s27 + $0x28] sm:$0xff] }
 0x10d   : > { %v1098_v31 = vadd.f32 %v1097_v29, %v1096_v26  ;;  %v1099_v32 = vpop.f32.mrb[10].mxu1  ;;  %v1060_v33 = vpop.f32.mrb[11].mxu0 }
 0x10e   : > { %v710_v34 = vadd.f32 %v1058_v28, %v965_v58  ;;  %v1061_v35 = vadd.f32 %v1060_v33, %v1059_v30  ;;  %v1100_v36 = vpop.f32.mrb[11].mxu1 }
 0x10f   : > { %v1101_v37 = vadd.f32 %v1100_v36, %v1099_v32 }
 0x110   : > { %v713_v38 = vadd.f32 %v1061_v35, %v965_v58  ;;  %v775_v39 = vadd.f32 %v1098_v31, %v710_v34 }
 0x112   : > { %v1062_v40 = vpop.f32.mrb[12].mxu0  ;;  %v778_v41 = vadd.f32 %v1101_v37, %v713_v38 }
 0x113   : > { %v1102_v42 = vpop.f32.mrb[12].mxu1  ;;  %v1063_v43 = vpop.f32.mrb[13].mxu0 }
 0x114   : > { %v1064_v44 = vadd.f32 %v1063_v43, %v1062_v40  ;;  %v1103_v45 = vpop.f32.mrb[13].mxu1  ;;  %v1065_v46 = vpop.f32.mrb[14].mxu0 }
 0x115   : > { %v1104_v47 = vadd.f32 %v1103_v45, %v1102_v42  ;;  %v1105_v48 = vpop.f32.mrb[14].mxu1  ;;  %v1066_v49 = vpop.f32.mrb[15].mxu0 }
 0x116   : > { %v718_v50 = vadd.f32 %v1064_v44, %v965_v58  ;;  %v1067_v51 = vadd.f32 %v1066_v49, %v1065_v46  ;;  %v1106_v52 = vpop.f32.mrb[15].mxu1 }
 0x117   : > { %v1107_v53 = vadd.f32 %v1106_v52, %v1105_v48 }
 0x118   : > { %v721_v54 = vadd.f32 %v1067_v51, %v965_v58  ;;  %v783_v55 = vadd.f32 %v1104_v47, %v718_v50 }
 0x11a   : > { %v1126_v56 = vpop.f32.mrb[16].mxu0  ;;  %v786_v57 = vadd.f32 %v1107_v53, %v721_v54 }
 0x11b   : > { %v832_v59 = vadd.f32 %v1126_v56, %v767_v23  ;;  %v1130_v60 = vpop.f32.mrb[16].mxu1  ;;  %v823_v61 = vpop.f32.mrb[17].mxu0 }
 0x11c   : > { %v848_v63 = vadd.f32 %v1130_v60, %v783_v55  ;;  %v824_v0 = vadd.f32 %v823_v61, %v759_v7  ;;  %v839_v58 = vpop.f32.mrb[17].mxu1  ;;  %v1127_v1 = vpop.f32.mrb[18].mxu0  ;;  %v866_v7 = vld [vmem:[%s1401_s27 + $0x20] sm:$0xff] }
 0x11d   : > { %v856_v2 = vmax.f32 %v832_v59, 0.0  ;;  %v840_v5 = vadd.f32 %v839_v58, %v775_v39  ;;  %v835_v6 = vadd.f32 %v1127_v1, %v770_v25  ;;  %v1131_v8 = vpop.f32.mrb[18].mxu1  ;;  %v826_v10 = vpop.f32.mrb[19].mxu0 }
 0x11e   : > { %v860_v11 = vmax.f32 %v848_v63, 0.0  ;;  %v854_v12 = vmax.f32 %v824_v0, 0.0  ;;  %v851_v14 = vadd.f32 %v1131_v8, %v786_v57  ;;  %v827_v15 = vadd.f32 %v826_v10, %v1395_v9  ;;  %v842_v16 = vpop.f32.mrb[19].mxu1 }
 0x11f   : > { %v872_v17 = vadd.f32 %v864_v62, %v856_v2  ;;  %v858_v18 = vmax.f32 %v840_v5, 0.0  ;;  %v857_v19 = vmax.f32 %v835_v6, 0.0  ;;  %v843_v22 = vadd.f32 %v842_v16, %v778_v41 }
 0x120   : > { %v876_v23 = vadd.f32 %v868_v3, %v860_v11  ;;  %v870_v24 = vadd.f32 %v862_v4, %v854_v12  ;;  %v861_v25 = vmax.f32 %v851_v14, 0.0  ;;  %v855_v26 = vmax.f32 %v827_v15, 0.0 }
 0x121   : > { %880 = vst [vmem:[%s1409_s29 + $0x10] sm:$0xff] %v872_v17  ;;  %v874_v9 = vadd.f32 %v866_v7, %v858_v18  ;;  %v873_v28 = vadd.f32 %v865_v13, %v857_v19  ;;  %v859_v29 = vmax.f32 %v843_v22, 0.0 }
 0x122   : > { %884 = vst [vmem:[%s1409_s29 + $0x30] sm:$0xff] %v876_v23  ;;  %878 = vst [vmem:[%s1409_s29] sm:$0xff] %v870_v24  ;;  %v877_v30 = vadd.f32 %v869_v20, %v861_v25  ;;  %v871_v31 = vadd.f32 %v863_v21, %v855_v26 }
 0x123   : > { %882 = vst [vmem:[%s1409_s29 + $0x20] sm:$0xff] %v874_v9  ;;  %881 = vst [vmem:[%s1409_s29 + $0x18] sm:$0xff] %v873_v28  ;;  %v875_v32 = vadd.f32 %v867_v27, %v859_v29 }
 0x124   : > { %885 = vst [vmem:[%s1409_s29 + $0x38] sm:$0xff] %v877_v30  ;;  %879 = vst [vmem:[%s1409_s29 + $0x8] sm:$0xff] %v871_v31 }
 0x125   : > { %883 = vst [vmem:[%s1409_s29 + $0x28] sm:$0xff] %v875_v32 }
 0x126 PF: > { %s14_s15 = sadd.s32 1, %s1219_s15  }
 0x127   : > { %p11_p4 = scmp.ge.s32.totalorder %s14_s15, 4  }
 0x129   :  { %13 = sbr.rel (!%p11_p4) target bundleno = 1 (0x1), region = 69 }

// kernel: autoencoder_forward.11
= control target key start
LH: loop header
LB: loop body
LE: loop exit
PB: predicated region body
PF: predicated region fallthrough
CT: control target
= control target key end

     0   :  { %v860_v1 = vmov 0   ;;  %v861_v38 = vmov 1983009808   ;;  %v105_v40 = vlaneseq  ;;  %vm479_vm0 = vcmask 261120   ;;  %s1122_s1 = inlined_call_operand.vmem [shape: bf16[288,512], index: 1, kind: input, shape index: {}]   ;;  %s1123_s2 = inlined_call_operand.<no memory space> [shape: f32[1,1], index: 2, kind: input, shape index: {}]   ;;  %s1124_s0 = inlined_call_operand.vmem [shape: bf16[4,288], index: 0, kind: input, shape index: {}]   ;;  %s1125_s3 = inlined_call_operand.vmem [shape: f32[4,512], index: 3, kind: output, shape index: {}]  }
   0x1   :  { %v751_v0 = vld [vmem:[%s1122_s1 + $0x4] ss:$16 sps:$4 sm:$0xff]   ;;  %750 = vset.pattern.permute.xlu0 %v860_v1  ;;  %v8_v2 = vstv %s1123_s2  ;;  %v753_v3 = vld [vmem:[%s1122_s1 + $0xc] ss:$16 sps:$4 sm:$0xff]   ;;  %v755_v4 = vld [vmem:[%s1122_s1] ss:$16 sps:$4 sm:$0xff]   ;;  %v103_v39 = vunpack.c.l.s4 %v861_v38 }
   0x2   :  { %9 = vst [vmem:[#allocation2] sm:$0x1] %v8_v2  ;;  %483 = vmatprep.subr.bf16.mxu0 %v751_v0  ;;  %v756_v5 = vld [vmem:[%s1122_s1 + $0x8] ss:$16 sps:$4 sm:$0xff]   ;;  %565 = vmatprep.subr.bf16.mxu1 %v753_v3  ;;  %v757_v6 = vld [vmem:[%s1122_s1 + $0x24] ss:$16 sps:$4 sm:$0xff]  }
   0x3   :  { %484 = vmatpush1.bf16.msra.mxu0 %v755_v4  ;;  %566 = vmatpush1.bf16.msra.mxu1 %v756_v5  ;;  %v759_v7 = vld [vmem:[%s1122_s1 + $0x2c] ss:$16 sps:$4 sm:$0xff]   ;;  %v761_v8 = vld [vmem:[%s1122_s1 + $0x20] ss:$16 sps:$4 sm:$0xff]   ;;  %v762_v9 = vld [vmem:[%s1122_s1 + $0x28] ss:$16 sps:$4 sm:$0xff]   ;;  %v104_v44 = vunpack.c.0.s8 %v103_v39 }
   0x4   :  { %485 = vmatprep.subr.bf16.mxu0 %v757_v6  ;;  %567 = vmatprep.subr.bf16.mxu1 %v759_v7  ;;  %v763_v10 = vld [vmem:[%s1122_s1 + $0x44] ss:$16 sps:$4 sm:$0xff]   ;;  %v765_v11 = vld [vmem:[%s1122_s1 + $0x4c] ss:$16 sps:$4 sm:$0xff]   ;;  %v767_v12 = vld [vmem:[%s1122_s1 + $0x40] ss:$16 sps:$4 sm:$0xff]  }
   0x5   :  { %v768_v13 = vld [vmem:[%s1122_s1 + $0x48] ss:$16 sps:$4 sm:$0xff]   ;;  %v769_v14 = vld [vmem:[%s1122_s1 + $0x64] ss:$16 sps:$4 sm:$0xff]   ;;  %v771_v15 = vld [vmem:[%s1122_s1 + $0x6c] ss:$16 sps:$4 sm:$0xff]  }
   0x6   :  { %v773_v16 = vld [vmem:[%s1122_s1 + $0x60] ss:$16 sps:$4 sm:$0xff]   ;;  %v774_v17 = vld [vmem:[%s1122_s1 + $0x68] ss:$16 sps:$4 sm:$0xff]   ;;  %v775_v18 = vld [vmem:[%s1122_s1 + $0x84] ss:$16 sps:$4 sm:$0xff]  }
   0x7   :  { %486 = vmatpush1.bf16.msra.mxu0 %v761_v8  ;;  %568 = vmatpush1.bf16.msra.mxu1 %v762_v9  ;;  %v777_v19 = vld [vmem:[%s1122_s1 + $0x8c] ss:$16 sps:$4 sm:$0xff]   ;;  %v779_v20 = vld [vmem:[%s1122_s1 + $0x80] ss:$16 sps:$4 sm:$0xff]   ;;  %v780_v21 = vld [vmem:[%s1122_s1 + $0x88] ss:$16 sps:$4 sm:$0xff]  }
   0x8   :  { %487 = vmatprep.subr.bf16.mxu0 %v763_v10  ;;  %569 = vmatprep.subr.bf16.mxu1 %v765_v11  ;;  %v781_v22 = vld [vmem:[%s1122_s1 + $0xa4] ss:$16 sps:$4 sm:$0xff]   ;;  %v783_v23 = vld [vmem:[%s1122_s1 + $0xac] ss:$16 sps:$4 sm:$0xff]   ;;  %v785_v24 = vld [vmem:[%s1122_s1 + $0xa0] ss:$16 sps:$4 sm:$0xff]  }
   0x9   :  { %v786_v25 = vld [vmem:[%s1122_s1 + $0xa8] ss:$16 sps:$4 sm:$0xff]   ;;  %v787_v26 = vld [vmem:[%s1122_s1 + $0xc4] ss:$16 sps:$4 sm:$0xff]   ;;  %v789_v27 = vld [vmem:[%s1122_s1 + $0xcc] ss:$16 sps:$4 sm:$0xff]  }
   0xa   :  { %v791_v28 = vld [vmem:[%s1122_s1 + $0xc0] ss:$16 sps:$4 sm:$0xff]   ;;  %v792_v29 = vld [vmem:[%s1122_s1 + $0xc8] ss:$16 sps:$4 sm:$0xff]   ;;  %v793_v30 = vld [vmem:[%s1122_s1 + $0xe4] ss:$16 sps:$4 sm:$0xff]  }
   0xb   :  { %488 = vmatpush1.bf16.msra.mxu0 %v767_v12  ;;  %570 = vmatpush1.bf16.msra.mxu1 %v768_v13  ;;  %v795_v31 = vld [vmem:[%s1122_s1 + $0xec] ss:$16 sps:$4 sm:$0xff]   ;;  %v797_v32 = vld [vmem:[%s1122_s1 + $0xe0] ss:$16 sps:$4 sm:$0xff]   ;;  %v798_v33 = vld [vmem:[%s1122_s1 + $0xe8] ss:$16 sps:$4 sm:$0xff]  }
   0xc   :  { %489 = vmatprep.subr.bf16.mxu0 %v769_v14  ;;  %571 = vmatprep.subr.bf16.mxu1 %v771_v15  ;;  %v799_v34 = vld [vmem:[%s1122_s1 + $0x104] ss:$16 sps:$4 sm:$0xff]   ;;  %v801_v35 = vld [vmem:[%s1122_s1 + $0x10c] ss:$16 sps:$4 sm:$0xff]   ;;  %v803_v36 = vld [vmem:[%s1122_s1 + $0x100] ss:$16 sps:$4 sm:$0xff]  }
   0xd   :  { %v804_v37 = vld [vmem:[%s1122_s1 + $0x108] ss:$16 sps:$4 sm:$0xff]   ;;  %v805_v41 = vld [vmem:[%s1122_s1 + $0x124] ss:$16 sps:$4 sm:$0xff]   ;;  %v807_v42 = vld [vmem:[%s1122_s1 + $0x12c] ss:$16 sps:$4 sm:$0xff]  }
   0xe   :  { %v809_v43 = vld [vmem:[%s1122_s1 + $0x120] ss:$16 sps:$4 sm:$0xff]   ;;  %v106_v45 = vshrl.u32 %v105_v40, 7  ;;  %v810_v46 = vld [vmem:[%s1122_s1 + $0x128] ss:$16 sps:$4 sm:$0xff]  }
   0xf   :  { %490 = vmatpush1.bf16.msra.mxu0 %v773_v16  ;;  %572 = vmatpush1.bf16.msra.mxu1 %v774_v17  ;;  %v811_v47 = vld [vmem:[%s1122_s1 + $0x144] ss:$16 sps:$4 sm:$0xff]   ;;  %v813_v48 = vld [vmem:[%s1122_s1 + $0x14c] ss:$16 sps:$4 sm:$0xff]   ;;  %v815_v49 = vld [vmem:[%s1122_s1 + $0x140] ss:$16 sps:$4 sm:$0xff]  }
  0x10   :  { %491 = vmatprep.subr.bf16.mxu0 %v775_v18  ;;  %573 = vmatprep.subr.bf16.mxu1 %v777_v19  ;;  %v816_v50 = vld [vmem:[%s1122_s1 + $0x148] ss:$16 sps:$4 sm:$0xff]   ;;  %v1018_v51 = vsub.s32 %v104_v44, %v106_v45  ;;  %v817_v52 = vld [vmem:[%s1122_s1 + $0x164] ss:$16 sps:$4 sm:$0xff]   ;;  %v819_v53 = vld [vmem:[%s1122_s1 + $0x16c] ss:$16 sps:$4 sm:$0xff]  }
  0x11   :  { %v1029_v54 = vld [vmem:[%s1124_s0] sm:$0x3f]  ;;  %v822_v57 = vld [vmem:[%s1122_s1 + $0x168] ss:$16 sps:$4 sm:$0xff]   ;;  %v825_v59 = vld [vmem:[%s1122_s1 + $0x18c] ss:$16 sps:$4 sm:$0xff]  }
  0x12   :  { %v821_v55 = vld [vmem:[%s1122_s1 + $0x160] ss:$16 sps:$4 sm:$0xff]   ;;  %v108_v56 = vrot.slane %v1029_v54, %v1018_v51  ;;  %v823_v58 = vld [vmem:[%s1122_s1 + $0x184] ss:$16 sps:$4 sm:$0xff]   ;;  %v828_v62 = vld [vmem:[%s1122_s1 + $0x188] ss:$16 sps:$4 sm:$0xff]  }
  0x13   :  { %492 = vmatpush1.bf16.msra.mxu0 %v779_v20  ;;  %574 = vmatpush1.bf16.msra.mxu1 %v780_v21  ;;  %v827_v61 = vld [vmem:[%s1122_s1 + $0x180] ss:$16 sps:$4 sm:$0xff]   ;;  %v829_v0 = vld [vmem:[%s1122_s1 + $0x1a4] ss:$16 sps:$4 sm:$0xff]   ;;  %v831_v2 = vld [vmem:[%s1122_s1 + $0x1ac] ss:$16 sps:$4 sm:$0xff]   ;;  %v101_v21 = vcombine.high %v1029_v54, %v1029_v54 }
  0x14   :  { %493 = vmatprep.subr.bf16.mxu0 %v781_v22  ;;  %575 = vmatprep.subr.bf16.mxu1 %v783_v23  ;;  %v116_v60 = vcombine.high %v108_v56, %v108_v56  ;;  %v661_v63 = vld [vmem:[#allocation2] ss:$0 sm:$0xff]  ;;  %v834_v4 = vld [vmem:[%s1122_s1 + $0x1a8] ss:$16 sps:$4 sm:$0xff]   ;;  %v835_v5 = vld [vmem:[%s1122_s1 + $0x1c4] ss:$16 sps:$4 sm:$0xff]  }
  0x15   :  { %97 = vperm.xlu0 %750, %v661_v63   ;;  %v833_v3 = vld [vmem:[%s1122_s1 + $0x1a0] ss:$16 sps:$4 sm:$0xff]   ;;  %v837_v6 = vld [vmem:[%s1122_s1 + $0x1cc] ss:$16 sps:$4 sm:$0xff]   ;;  %v840_v8 = vld [vmem:[%s1122_s1 + $0x1c8] ss:$16 sps:$4 sm:$0xff]   ;;  %v115_v22 = vrot.slane %v101_v21, %v1018_v51 }
  0x16   :  { %515 = vmatprep.mubr.bf16.mxu0 %v116_v60  ;;  %597 = vmatprep.mubr.bf16.mxu1 %v116_v60  ;;  %v839_v7 = vld [vmem:[%s1122_s1 + $0x1c0] ss:$16 sps:$4 sm:$0xff]   ;;  %v841_v9 = vld [vmem:[%s1122_s1 + $0x1e4] ss:$16 sps:$4 sm:$0xff]   ;;  %v843_v10 = vld [vmem:[%s1122_s1 + $0x1ec] ss:$16 sps:$4 sm:$0xff]  }
  0x17   :  { %494 = vmatpush1.bf16.msra.mxu0 %v785_v24  ;;  %576 = vmatpush1.bf16.msra.mxu1 %v786_v25  ;;  %v845_v11 = vld [vmem:[%s1122_s1 + $0x1e0] ss:$16 sps:$4 sm:$0xff]   ;;  %v846_v12 = vld [vmem:[%s1122_s1 + $0x1e8] ss:$16 sps:$4 sm:$0xff]   ;;  %v850_v13 = vld [vmem:[%s1122_s1 + $0x204] ss:$16 sps:$4 sm:$0xff]  }
  0x18   :  { %495 = vmatprep.subr.bf16.mxu0 %v787_v26  ;;  %577 = vmatprep.subr.bf16.mxu1 %v789_v27  ;;  %v853_v14 = vld [vmem:[%s1122_s1 + $0x20c] ss:$16 sps:$4 sm:$0xff]   ;;  %v848_v15 = vld [vmem:[%s1122_s1 + $0x200] ss:$16 sps:$4 sm:$0xff]   ;;  %v851_v16 = vld [vmem:[%s1122_s1 + $0x208] ss:$16 sps:$4 sm:$0xff]  }
  0x19   :  { %v856_v17 = vld [vmem:[%s1122_s1 + $0x224] ss:$16 sps:$4 sm:$0xff]   ;;  %v859_v18 = vld [vmem:[%s1122_s1 + $0x22c] ss:$16 sps:$4 sm:$0xff]   ;;  %v854_v19 = vld [vmem:[%s1122_s1 + $0x220] ss:$16 sps:$4 sm:$0xff]  }
  0x1a   :  { %v857_v20 = vld [vmem:[%s1122_s1 + $0x228] ss:$16 sps:$4 sm:$0xff]  }
  0x1b   :  { %496 = vmatpush1.bf16.msra.mxu0 %v791_v28  ;;  %578 = vmatpush1.bf16.msra.mxu1 %v792_v29 }
  0x1c   :  { %497 = vmatprep.subr.bf16.mxu0 %v793_v30  ;;  %579 = vmatprep.subr.bf16.mxu1 %v795_v31 }
  0x1f   :  { %498 = vmatpush1.bf16.msra.mxu0 %v797_v32  ;;  %580 = vmatpush1.bf16.msra.mxu1 %v798_v33 }
  0x20   :  { %499 = vmatprep.subr.bf16.mxu0 %v799_v34  ;;  %581 = vmatprep.subr.bf16.mxu1 %v801_v35 }
  0x23   :  { %500 = vmatpush1.bf16.msra.mxu0 %v803_v36  ;;  %582 = vmatpush1.bf16.msra.mxu1 %v804_v37 }
  0x24   :  { %501 = vmatprep.subr.bf16.mxu0 %v805_v41  ;;  %583 = vmatprep.subr.bf16.mxu1 %v807_v42 }
  0x27   :  { %502 = vmatpush1.bf16.msra.mxu0 %v809_v43  ;;  %584 = vmatpush1.bf16.msra.mxu1 %v810_v46 }
  0x28   :  { %503 = vmatprep.subr.bf16.mxu0 %v811_v47  ;;  %585 = vmatprep.subr.bf16.mxu1 %v813_v48 }
  0x2b   :  { %504 = vmatpush1.bf16.msra.mxu0 %v815_v49  ;;  %586 = vmatpush1.bf16.msra.mxu1 %v816_v50 }
  0x2c   :  { %505 = vmatprep.subr.bf16.mxu0 %v817_v52  ;;  %587 = vmatprep.subr.bf16.mxu1 %v819_v53 }
  0x2f   :  { %506 = vmatpush1.bf16.msra.mxu0 %v821_v55  ;;  %588 = vmatpush1.bf16.msra.mxu1 %v822_v57 }
  0x30   :  { %507 = vmatprep.subr.bf16.mxu0 %v823_v58  ;;  %589 = vmatprep.subr.bf16.mxu1 %v825_v59 }
  0x33   :  { %508 = vmatpush1.bf16.msra.mxu0 %v827_v61  ;;  %590 = vmatpush1.bf16.msra.mxu1 %v828_v62 }
  0x34   :  { %509 = vmatprep.subr.bf16.mxu0 %v829_v0  ;;  %591 = vmatprep.subr.bf16.mxu1 %v831_v2 }
  0x37   :  { %510 = vmatpush1.bf16.msra.mxu0 %v833_v3  ;;  %592 = vmatpush1.bf16.msra.mxu1 %v834_v4 }
  0x38   :  { %511 = vmatprep.subr.bf16.mxu0 %v835_v5  ;;  %593 = vmatprep.subr.bf16.mxu1 %v837_v6 }
  0x3b   :  { %512 = vmatpush1.bf16.msra.mxu0 %v839_v7  ;;  %594 = vmatpush1.bf16.msra.mxu1 %v840_v8 }
  0x3c   :  { %513 = vmatprep.subr.bf16.mxu0 %v841_v9  ;;  %595 = vmatprep.subr.bf16.mxu1 %v843_v10 }
  0x3f   :  { %514 = vmatpush1.bf16.msra.mxu0 %v845_v11  ;;  %596 = vmatpush1.bf16.msra.mxu1 %v846_v12 }
  0x40   :  { %524 = vmatprep.subr.bf16.mxu0 %v850_v13  ;;  %606 = vmatprep.subr.bf16.mxu1 %v853_v14 }
  0x42   :  { %516 = vmatmul.mubr.bf16.vlgmr.msra.gmra.mrb[0].mxu0 %v108_v56  ;;  %598 = vmatmul.mubr.bf16.vlgmr.msra.gmra.mrb[0].mxu1 %v108_v56 }
  0x43   :  { %525 = vmatpush1.bf16.msra.mxu0 %v848_v15  ;;  %607 = vmatpush1.bf16.msra.mxu1 %v851_v16 }
  0x44   :  { %526 = vmatprep.subr.bf16.mxu0 %v856_v17  ;;  %608 = vmatprep.subr.bf16.mxu1 %v859_v18 }
  0x45   :  { %556 = vmatprep.mubr.bf16.mxu0 %v860_v1  ;;  %638 = vmatprep.mubr.bf16.mxu1 %v860_v1 }
  0x47   :  { %527 = vmatpush1.bf16.msra.mxu0 %v854_v19  ;;  %609 = vmatpush1.bf16.msra.mxu1 %v857_v20 }
  0x4e   :  { %734 = vmatmul.mubr.msk.bf16.vlgmr.msra.gmra.mrb[0].mxu0 %vm479_vm0, %v115_v22  ;;  %735 = vmatmul.mubr.msk.bf16.vlgmr.msra.gmra.mrb[0].mxu1 %vm479_vm0, %v115_v22 }
  0x94   :  { %v98_v23 = vpop.permute.xlu0 %97 }
 0x121   :  { %v558_v24 = vpop.f32.mrb[0].mxu0  ;;  %v640_v25 = vpop.f32.mrb[0].mxu1 }
 0x122   :  { %v736_v26 = vadd.f32 %v558_v24, %v98_v23  ;;  %v738_v27 = vadd.f32 %v640_v25, %v98_v23  ;;  %v560_v28 = vpop.f32.mrb[1].mxu0  ;;  %v642_v29 = vpop.f32.mrb[1].mxu1 }
 0x123   :  { %v737_v30 = vadd.f32 %v560_v28, %v98_v23  ;;  %v739_v31 = vadd.f32 %v642_v29, %v98_v23  ;;  %v562_v1 = vpop.f32.mrb[2].mxu0  ;;  %v644_v32 = vpop.f32.mrb[2].mxu1 }
 0x124   :  { %v563_v33 = vpop.f32.mrb[3].mxu0  ;;  %v645_v34 = vpop.f32.mrb[3].mxu1 }
 0x125   :  { %v651_v35 = vcombine.low %v736_v26, %v737_v30  ;;  %v652_v36 = vcombine.low %v738_v27, %v739_v31 }
 0x127   :  { %655 = vst [vmem:[%s1125_s3] sm:$0xff] %v651_v35  ;;  %656 = vst [vmem:[%s1125_s3 + $0x8] sm:$0xff] %v652_v36 }

</bundles_post_ra>
